<compile_context>
chip_gen: v7x
topology: tpu7x:2x2x1
jax: 0.10.0
libtpu: 0.0.40
codegen_flags: <defaults>
</compile_context>

<pallas_src>
import functools

import jax
import jax.numpy as jnp
from jax.experimental import pallas as pl
from jax.experimental.pallas import tpu as pltpu


def _round_up(n, m):
    return (n + m - 1) // m * m


def _upsample_kernel(x_ref, w_ref, e_ref, o_ref, *, th, co, cop8):
    """One batch image x TH conv rows -> 2*TH shuffled output rows.

    x_ref: (1, H+2, Cp, Wpad)  padded image (VMEM-resident across row tiles)
    w_ref: (4*cop8, 9*Cp)      tap-fused weights, rows grouped by quadrant g
    e_ref: (2, Wpad, 2*W)      0/1 interleave matrices (even / odd lanes)
    o_ref: (1, co, 2*TH, 2*W)  final shuffled output tile
    """
    wmat = w_ref[...]
    e0 = e_ref[0, :, :]
    e1 = e_ref[1, :, :]
    base = pl.multiple_of(pl.program_id(1) * th, th)

    for hl in range(th):                       # static unroll, th <= 8
        # Assemble the tap-fused operand: 9 (di, dj)-shifted copies of the 3
        # halo rows stacked along K (K = 9*Cp), then a single MXU contraction.
        pieces = []
        for di in range(3):
            row = x_ref[0, base + hl + di, :, :]          # (Cp, Wpad)
            for dj in range(3):
                # Lane shift x[:, w] -> x[:, w + dj]; wrapped lanes land at
                # w >= W and are zeroed by the interleave matrices below.
                pieces.append(row if dj == 0 else jnp.roll(row, -dj, axis=1))
        operand = jnp.concatenate(pieces, axis=0)         # (9*Cp, Wpad)
        y = jnp.dot(wmat, operand,
                    preferred_element_type=jnp.float32)   # (4*cop8, Wpad)

        # Fused PixelShuffle(2): quadrants g=0/1 feed the even output row
        # (even/odd lanes), g=2/3 the odd output row.  E0/E1 spread conv
        # column w to output lane 2w / 2w+1 on the MXU, keeping stores
        # lane-dense in the final layout.
        even = (jnp.dot(y[0 * cop8:1 * cop8], e0,
                        preferred_element_type=jnp.float32)
                + jnp.dot(y[1 * cop8:2 * cop8], e1,
                          preferred_element_type=jnp.float32))
        odd = (jnp.dot(y[2 * cop8:3 * cop8], e0,
                       preferred_element_type=jnp.float32)
               + jnp.dot(y[3 * cop8:4 * cop8], e1,
                         preferred_element_type=jnp.float32))
        o_ref[0, :, 2 * hl, :] = even[:co].astype(o_ref.dtype)
        o_ref[0, :, 2 * hl + 1, :] = odd[:co].astype(o_ref.dtype)


@jax.jit
def upsample_forward(x, weight):
    """Equivalent of Upsample(n_feat).forward(x); x NCHW, weight (2C, C, 3, 3)."""
    B, C_in, H, W = x.shape
    C_out = weight.shape[0]
    assert weight.shape == (C_out, C_in, 3, 3)
    assert C_out % 4 == 0, "PixelShuffle(2) needs conv output channels % 4 == 0"

    co = C_out // 4                                  # shuffled output channels
    itemsize = jnp.dtype(x.dtype).itemsize
    sub = {4: 8, 2: 16, 1: 32}.get(itemsize, 8)      # sublane packing for dtype
    Cp = _round_up(C_in, sub)                        # padded input channels
    cop8 = _round_up(co, 8)                          # padded rows per quadrant
    Wpad = _round_up(W + 2, 128)                     # lane-aligned padded width

    # Conv rows per grid step (output block second-minor = 2*TH must be a
    # multiple of 8 or the full extent; odd H falls back to one full tile).
    TH = 8 if H % 8 == 0 else (4 if H % 4 == 0 else H)

    # Single fused transpose+pad pass: (B,C,H,W) -> (B, H+2, Cp, Wpad) with the
    # conv halo, channel padding and lane padding done at once.  Row axis is a
    # leading (untiled) dim so halo rows are plain dynamic indexing in-kernel.
    x_pad = jnp.pad(jnp.transpose(x, (0, 2, 1, 3)),
                    ((0, 0), (1, 1), (0, Cp - C_in), (1, Wpad - W - 1)))

    # Tap-fused weights, rows grouped by PixelShuffle quadrant g = 2*r1 + r2:
    #   wmat[g*cop8 + c, (di*3 + dj)*Cp + ci] = weight[4c + g, ci, di, dj]
    wt = weight.reshape(co, 2, 2, C_in, 3, 3)
    wt = jnp.transpose(wt, (1, 2, 0, 3, 4, 5)).reshape(4, co, C_in, 3, 3)
    wt = jnp.pad(wt, ((0, 0), (0, cop8 - co), (0, Cp - C_in), (0, 0), (0, 0)))
    wmat = jnp.transpose(wt, (0, 1, 3, 4, 2)).reshape(4 * cop8, 9 * Cp)
    wmat = wmat.astype(x.dtype)

    # Interleave matrices: E0 maps conv column w -> output lane 2w, E1 -> 2w+1;
    # rows w >= W are all-zero (kills padded / wrapped lanes).
    w_idx = jnp.arange(Wpad, dtype=jnp.int32)[:, None]
    l_idx = jnp.arange(2 * W, dtype=jnp.int32)[None, :]
    emat = jnp.stack([(l_idx == 2 * w_idx).astype(jnp.float32),
                      (l_idx == 2 * w_idx + 1).astype(jnp.float32)], axis=0)

    kernel = functools.partial(_upsample_kernel, th=TH, co=co, cop8=cop8)

    # VMEM budget from the actual blocks (resident image, output tile, weights).
    xb = (H + 2) * Cp * Wpad * itemsize
    ob = co * (2 * TH) * (2 * W) * itemsize
    wb = 4 * cop8 * 9 * Cp * itemsize
    eb = 2 * Wpad * 2 * W * 4
    need = 2 * (xb + ob) + wb + eb + (4 << 20)
    vmem_limit = int(min(110 * 2 ** 20, max(32 * 2 ** 20, need)))

    flops = B * H * (2 * (4 * cop8) * (9 * Cp) * Wpad
                     + 4 * 2 * cop8 * Wpad * (2 * W))
    bytes_accessed = (B * xb + B * co * (2 * H) * (2 * W) * itemsize + wb + eb)

    return pl.pallas_call(
        kernel,
        out_shape=jax.ShapeDtypeStruct((B, co, 2 * H, 2 * W), x.dtype),
        grid=(B, H // TH),
        in_specs=[
            pl.BlockSpec((1, H + 2, Cp, Wpad), lambda b, t: (b, 0, 0, 0)),
            pl.BlockSpec((4 * cop8, 9 * Cp), lambda b, t: (0, 0)),
            pl.BlockSpec((2, Wpad, 2 * W), lambda b, t: (0, 0, 0)),
        ],
        out_specs=pl.BlockSpec((1, co, 2 * TH, 2 * W),
                               lambda b, t: (b, 0, t, 0)),
        compiler_params=pltpu.CompilerParams(
            dimension_semantics=("parallel", "parallel"),
            vmem_limit_bytes=vmem_limit),
        cost_estimate=pl.CostEstimate(flops=flops, transcendentals=0,
                                      bytes_accessed=bytes_accessed),
    )(x_pad, wmat, emat)


def _pixel_shuffle(y, r=2):
    b, c, h, w = y.shape
    co = c // (r * r)
    y6 = y.reshape(b, co, r, r, h, w)
    return jnp.transpose(y6, (0, 1, 4, 2, 5, 3)).reshape(b, co, h * r, w * r)


def _reference(x, weight):
    y = jax.lax.conv_general_dilated(
        x, weight, window_strides=(1, 1), padding=((1, 1), (1, 1)),
        dimension_numbers=("NCHW", "OIHW", "NCHW"),
        precision=jax.lax.Precision.HIGHEST)
    return _pixel_shuffle(y, 2)


if __name__ == "__main__":
    key = jax.random.PRNGKey(0)
    B, n_feat, H, W = 2, 4, 16, 16
    kx, kw = jax.random.split(key)

    # Small, bf16-exact values (integers / multiples of 1/16) so the conv
    # contraction is exact through any MXU pass mode; the tolerance below only
    # needs to absorb possible reduced-precision passes in the small 0/1
    # interleave matmuls (<= ~2^-9 relative).
    x = jnp.clip(jnp.round(jax.random.normal(kx, (B, n_feat, H, W)) * 3.0),
                 -8.0, 8.0).astype(jnp.float32)
    weight = jnp.clip(
        jnp.round(jax.random.normal(kw, (2 * n_feat, n_feat, 3, 3)) * 8.0) / 16.0,
        -2.0, 2.0).astype(jnp.float32)

    out = jax.block_until_ready(upsample_forward(x, weight))
    ref = _reference(x, weight)

    ok = out.shape == (B, n_feat // 2, 2 * H, 2 * W) and out.shape == ref.shape
    if ok:
        ok = bool(jnp.allclose(out, ref, atol=1e-3, rtol=5e-3))
    if ok:
        print("KERNEL_OK")
    else:
        err = (float(jnp.max(jnp.abs(out - ref)))
               if out.shape == ref.shape else float("nan"))
        print("MISMATCH", out.shape, ref.shape, err)
</pallas_src>

<mosaic_0001>
module attributes {stable_mosaic.version = 11 : i64} {
  func.func @_upsample_kernel(%arg0: i32, %arg1: i32, %arg2: memref<1x18x8x128xf32, #tpu.memory_space<vmem>>, %arg3: memref<32x72xf32, #tpu.memory_space<vmem>>, %arg4: memref<2x128x32xf32, #tpu.memory_space<vmem>>, %arg5: memref<1x2x16x32xf32, #tpu.memory_space<vmem>>) attributes {dimension_semantics = [#tpu.dimension_semantics<parallel>, #tpu.dimension_semantics<parallel>], iteration_bounds = array<i64: 2, 2>, scalar_prefetch = 0 : i64, scratch_operands = 0 : i64, tpu.core_type = #tpu.core_type<tc>, window_params = [{transform_indices = @transform_0, window_bounds = array<i64: 1, 18, 8, 128>}, {pipeline_mode = #tpu.pipeline_mode<synchronous>, transform_indices = @transform_1, window_bounds = array<i64: 32, 72>}, {pipeline_mode = #tpu.pipeline_mode<synchronous>, transform_indices = @transform_2, window_bounds = array<i64: 2, 128, 32>}, {transform_indices = @transform_3, window_bounds = array<i64: 1, 2, 16, 32>}]} {
    %c0 = arith.constant 0 : index
    %c0_0 = arith.constant 0 : index
    %0 = vector.load %arg3[%c0, %c0_0] : memref<32x72xf32, #tpu.memory_space<vmem>>, vector<32x72xf32>
    %c0_1 = arith.constant 0 : index
    %c0_2 = arith.constant 0 : index
    %c0_3 = arith.constant 0 : index
    %1 = vector.load %arg4[%c0_1, %c0_2, %c0_3] : memref<2x128x32xf32, #tpu.memory_space<vmem>>, vector<1x128x32xf32>
    %2 = vector.shape_cast %1 : vector<1x128x32xf32> to vector<128x32xf32>
    %c1 = arith.constant 1 : index
    %c0_4 = arith.constant 0 : index
    %c0_5 = arith.constant 0 : index
    %3 = vector.load %arg4[%c1, %c0_4, %c0_5] : memref<2x128x32xf32, #tpu.memory_space<vmem>>, vector<1x128x32xf32>
    %4 = vector.shape_cast %3 : vector<1x128x32xf32> to vector<128x32xf32>
    %c8_i32 = arith.constant 8 : i32
    %5 = arith.muli %arg1, %c8_i32 : i32
    %6 = tpu.assume_multiple %5, 8 : i32
    %c0_i32 = arith.constant 0 : i32
    %7 = arith.addi %6, %c0_i32 : i32
    %c0_i32_6 = arith.constant 0 : i32
    %8 = arith.addi %7, %c0_i32_6 : i32
    %c0_7 = arith.constant 0 : index
    %9 = arith.index_cast %8 : i32 to index
    %c0_8 = arith.constant 0 : index
    %c0_9 = arith.constant 0 : index
    %10 = vector.load %arg2[%c0_7, %9, %c0_8, %c0_9] : memref<1x18x8x128xf32, #tpu.memory_space<vmem>>, vector<1x1x8x128xf32>
    %11 = vector.shape_cast %10 : vector<1x1x8x128xf32> to vector<8x128xf32>
    %12 = vector.extract_strided_slice %11 {offsets = [0, 1], sizes = [8, 127], strides = [1, 1]} : vector<8x128xf32> to vector<8x127xf32>
    %13 = vector.extract_strided_slice %11 {offsets = [0, 0], sizes = [8, 1], strides = [1, 1]} : vector<8x128xf32> to vector<8x1xf32>
    %14 = tpu.concatenate %12, %13 in 1 : vector<8x127xf32>, vector<8x1xf32> -> vector<8x128xf32>
    %15 = vector.extract_strided_slice %11 {offsets = [0, 2], sizes = [8, 126], strides = [1, 1]} : vector<8x128xf32> to vector<8x126xf32>
    %16 = vector.extract_strided_slice %11 {offsets = [0, 0], sizes = [8, 2], strides = [1, 1]} : vector<8x128xf32> to vector<8x2xf32>
    %17 = tpu.concatenate %15, %16 in 1 : vector<8x126xf32>, vector<8x2xf32> -> vector<8x128xf32>
    %c0_i32_10 = arith.constant 0 : i32
    %18 = arith.addi %6, %c0_i32_10 : i32
    %c1_i32 = arith.constant 1 : i32
    %19 = arith.addi %18, %c1_i32 : i32
    %c0_11 = arith.constant 0 : index
    %20 = arith.index_cast %19 : i32 to index
    %c0_12 = arith.constant 0 : index
    %c0_13 = arith.constant 0 : index
    %21 = vector.load %arg2[%c0_11, %20, %c0_12, %c0_13] : memref<1x18x8x128xf32, #tpu.memory_space<vmem>>, vector<1x1x8x128xf32>
    %22 = vector.shape_cast %21 : vector<1x1x8x128xf32> to vector<8x128xf32>
    %23 = vector.extract_strided_slice %22 {offsets = [0, 1], sizes = [8, 127], strides = [1, 1]} : vector<8x128xf32> to vector<8x127xf32>
    %24 = vector.extract_strided_slice %22 {offsets = [0, 0], sizes = [8, 1], strides = [1, 1]} : vector<8x128xf32> to vector<8x1xf32>
    %25 = tpu.concatenate %23, %24 in 1 : vector<8x127xf32>, vector<8x1xf32> -> vector<8x128xf32>
    %26 = vector.extract_strided_slice %22 {offsets = [0, 2], sizes = [8, 126], strides = [1, 1]} : vector<8x128xf32> to vector<8x126xf32>
    %27 = vector.extract_strided_slice %22 {offsets = [0, 0], sizes = [8, 2], strides = [1, 1]} : vector<8x128xf32> to vector<8x2xf32>
    %28 = tpu.concatenate %26, %27 in 1 : vector<8x126xf32>, vector<8x2xf32> -> vector<8x128xf32>
    %c0_i32_14 = arith.constant 0 : i32
    %29 = arith.addi %6, %c0_i32_14 : i32
    %c2_i32 = arith.constant 2 : i32
    %30 = arith.addi %29, %c2_i32 : i32
    %c0_15 = arith.constant 0 : index
    %31 = arith.index_cast %30 : i32 to index
    %c0_16 = arith.constant 0 : index
    %c0_17 = arith.constant 0 : index
    %32 = vector.load %arg2[%c0_15, %31, %c0_16, %c0_17] : memref<1x18x8x128xf32, #tpu.memory_space<vmem>>, vector<1x1x8x128xf32>
    %33 = vector.shape_cast %32 : vector<1x1x8x128xf32> to vector<8x128xf32>
    %34 = vector.extract_strided_slice %33 {offsets = [0, 1], sizes = [8, 127], strides = [1, 1]} : vector<8x128xf32> to vector<8x127xf32>
    %35 = vector.extract_strided_slice %33 {offsets = [0, 0], sizes = [8, 1], strides = [1, 1]} : vector<8x128xf32> to vector<8x1xf32>
    %36 = tpu.concatenate %34, %35 in 1 : vector<8x127xf32>, vector<8x1xf32> -> vector<8x128xf32>
    %37 = vector.extract_strided_slice %33 {offsets = [0, 2], sizes = [8, 126], strides = [1, 1]} : vector<8x128xf32> to vector<8x126xf32>
    %38 = vector.extract_strided_slice %33 {offsets = [0, 0], sizes = [8, 2], strides = [1, 1]} : vector<8x128xf32> to vector<8x2xf32>
    %39 = tpu.concatenate %37, %38 in 1 : vector<8x126xf32>, vector<8x2xf32> -> vector<8x128xf32>
    %40 = tpu.concatenate %11, %14, %17, %22, %25, %28, %33, %36, %39 in 0 : vector<8x128xf32>, vector<8x128xf32>, vector<8x128xf32>, vector<8x128xf32>, vector<8x128xf32>, vector<8x128xf32>, vector<8x128xf32>, vector<8x128xf32>, vector<8x128xf32> -> vector<72x128xf32>
    %cst = arith.constant dense<0.000000e+00> : vector<32x128xf32>
    %41 = tpu.matmul %0, %40, %cst {dimension_numbers = #tpu.dot_dimension_numbers<[1], [0], [0], [1], [0, 0, 1, 1], [], []>} : vector<32x72xf32>, vector<72x128xf32>, vector<32x128xf32> -> vector<32x128xf32>
    %42 = vector.extract_strided_slice %41 {offsets = [0, 0], sizes = [8, 128], strides = [1, 1]} : vector<32x128xf32> to vector<8x128xf32>
    %cst_18 = arith.constant dense<0.000000e+00> : vector<8x32xf32>
    %43 = tpu.matmul %42, %2, %cst_18 {dimension_numbers = #tpu.dot_dimension_numbers<[1], [0], [0], [1], [0, 0, 1, 1], [], []>} : vector<8x128xf32>, vector<128x32xf32>, vector<8x32xf32> -> vector<8x32xf32>
    %44 = vector.extract_strided_slice %41 {offsets = [8, 0], sizes = [8, 128], strides = [1, 1]} : vector<32x128xf32> to vector<8x128xf32>
    %cst_19 = arith.constant dense<0.000000e+00> : vector<8x32xf32>
    %45 = tpu.matmul %44, %4, %cst_19 {dimension_numbers = #tpu.dot_dimension_numbers<[1], [0], [0], [1], [0, 0, 1, 1], [], []>} : vector<8x128xf32>, vector<128x32xf32>, vector<8x32xf32> -> vector<8x32xf32>
    %46 = arith.addf %43, %45 : vector<8x32xf32>
    %47 = vector.extract_strided_slice %41 {offsets = [16, 0], sizes = [8, 128], strides = [1, 1]} : vector<32x128xf32> to vector<8x128xf32>
    %cst_20 = arith.constant dense<0.000000e+00> : vector<8x32xf32>
    %48 = tpu.matmul %47, %2, %cst_20 {dimension_numbers = #tpu.dot_dimension_numbers<[1], [0], [0], [1], [0, 0, 1, 1], [], []>} : vector<8x128xf32>, vector<128x32xf32>, vector<8x32xf32> -> vector<8x32xf32>
    %49 = vector.extract_strided_slice %41 {offsets = [24, 0], sizes = [8, 128], strides = [1, 1]} : vector<32x128xf32> to vector<8x128xf32>
    %cst_21 = arith.constant dense<0.000000e+00> : vector<8x32xf32>
    %50 = tpu.matmul %49, %4, %cst_21 {dimension_numbers = #tpu.dot_dimension_numbers<[1], [0], [0], [1], [0, 0, 1, 1], [], []>} : vector<8x128xf32>, vector<128x32xf32>, vector<8x32xf32> -> vector<8x32xf32>
    %51 = arith.addf %48, %50 : vector<8x32xf32>
    %52 = vector.extract_strided_slice %46 {offsets = [0, 0], sizes = [2, 32], strides = [1, 1]} : vector<8x32xf32> to vector<2x32xf32>
    %c0_22 = arith.constant 0 : index
    %c0_23 = arith.constant 0 : index
    %c0_24 = arith.constant 0 : index
    %c0_25 = arith.constant 0 : index
    %53 = vector.load %arg5[%c0_22, %c0_23, %c0_24, %c0_25] : memref<1x2x16x32xf32, #tpu.memory_space<vmem>>, vector<1x2x1x32xf32>
    %54 = vector.shape_cast %53 : vector<1x2x1x32xf32> to vector<2x32xf32>
    %55 = vector.shape_cast %52 : vector<2x32xf32> to vector<1x2x1x32xf32>
    tpu.vector_store %arg5[%c0_22, %c0_23, %c0_24, %c0_25], %55 {strides = array<i32>} : memref<1x2x16x32xf32, #tpu.memory_space<vmem>>, vector<1x2x1x32xf32>,
    %56 = vector.extract_strided_slice %51 {offsets = [0, 0], sizes = [2, 32], strides = [1, 1]} : vector<8x32xf32> to vector<2x32xf32>
    %c0_26 = arith.constant 0 : index
    %c0_27 = arith.constant 0 : index
    %c1_28 = arith.constant 1 : index
    %c0_29 = arith.constant 0 : index
    %57 = vector.load %arg5[%c0_26, %c0_27, %c1_28, %c0_29] : memref<1x2x16x32xf32, #tpu.memory_space<vmem>>, vector<1x2x1x32xf32>
    %58 = vector.shape_cast %57 : vector<1x2x1x32xf32> to vector<2x32xf32>
    %59 = vector.shape_cast %56 : vector<2x32xf32> to vector<1x2x1x32xf32>
    tpu.vector_store %arg5[%c0_26, %c0_27, %c1_28, %c0_29], %59 {strides = array<i32>} : memref<1x2x16x32xf32, #tpu.memory_space<vmem>>, vector<1x2x1x32xf32>,
    %c1_i32_30 = arith.constant 1 : i32
    %60 = arith.addi %6, %c1_i32_30 : i32
    %c0_i32_31 = arith.constant 0 : i32
    %61 = arith.addi %60, %c0_i32_31 : i32
    %c0_32 = arith.constant 0 : index
    %62 = arith.index_cast %61 : i32 to index
    %c0_33 = arith.constant 0 : index
    %c0_34 = arith.constant 0 : index
    %63 = vector.load %arg2[%c0_32, %62, %c0_33, %c0_34] : memref<1x18x8x128xf32, #tpu.memory_space<vmem>>, vector<1x1x8x128xf32>
    %64 = vector.shape_cast %63 : vector<1x1x8x128xf32> to vector<8x128xf32>
    %65 = vector.extract_strided_slice %64 {offsets = [0, 1], sizes = [8, 127], strides = [1, 1]} : vector<8x128xf32> to vector<8x127xf32>
    %66 = vector.extract_strided_slice %64 {offsets = [0, 0], sizes = [8, 1], strides = [1, 1]} : vector<8x128xf32> to vector<8x1xf32>
    %67 = tpu.concatenate %65, %66 in 1 : vector<8x127xf32>, vector<8x1xf32> -> vector<8x128xf32>
    %68 = vector.extract_strided_slice %64 {offsets = [0, 2], sizes = [8, 126], strides = [1, 1]} : vector<8x128xf32> to vector<8x126xf32>
    %69 = vector.extract_strided_slice %64 {offsets = [0, 0], sizes = [8, 2], strides = [1, 1]} : vector<8x128xf32> to vector<8x2xf32>
    %70 = tpu.concatenate %68, %69 in 1 : vector<8x126xf32>, vector<8x2xf32> -> vector<8x128xf32>
    %c1_i32_35 = arith.constant 1 : i32
    %71 = arith.addi %6, %c1_i32_35 : i32
    %c1_i32_36 = arith.constant 1 : i32
    %72 = arith.addi %71, %c1_i32_36 : i32
    %c0_37 = arith.constant 0 : index
    %73 = arith.index_cast %72 : i32 to index
    %c0_38 = arith.constant 0 : index
    %c0_39 = arith.constant 0 : index
    %74 = vector.load %arg2[%c0_37, %73, %c0_38, %c0_39] : memref<1x18x8x128xf32, #tpu.memory_space<vmem>>, vector<1x1x8x128xf32>
    %75 = vector.shape_cast %74 : vector<1x1x8x128xf32> to vector<8x128xf32>
    %76 = vector.extract_strided_slice %75 {offsets = [0, 1], sizes = [8, 127], strides = [1, 1]} : vector<8x128xf32> to vector<8x127xf32>
    %77 = vector.extract_strided_slice %75 {offsets = [0, 0], sizes = [8, 1], strides = [1, 1]} : vector<8x128xf32> to vector<8x1xf32>
    %78 = tpu.concatenate %76, %77 in 1 : vector<8x127xf32>, vector<8x1xf32> -> vector<8x128xf32>
    %79 = vector.extract_strided_slice %75 {offsets = [0, 2], sizes = [8, 126], strides = [1, 1]} : vector<8x128xf32> to vector<8x126xf32>
    %80 = vector.extract_strided_slice %75 {offsets = [0, 0], sizes = [8, 2], strides = [1, 1]} : vector<8x128xf32> to vector<8x2xf32>
    %81 = tpu.concatenate %79, %80 in 1 : vector<8x126xf32>, vector<8x2xf32> -> vector<8x128xf32>
    %c1_i32_40 = arith.constant 1 : i32
    %82 = arith.addi %6, %c1_i32_40 : i32
    %c2_i32_41 = arith.constant 2 : i32
    %83 = arith.addi %82, %c2_i32_41 : i32
    %c0_42 = arith.constant 0 : index
    %84 = arith.index_cast %83 : i32 to index
    %c0_43 = arith.constant 0 : index
    %c0_44 = arith.constant 0 : index
    %85 = vector.load %arg2[%c0_42, %84, %c0_43, %c0_44] : memref<1x18x8x128xf32, #tpu.memory_space<vmem>>, vector<1x1x8x128xf32>
    %86 = vector.shape_cast %85 : vector<1x1x8x128xf32> to vector<8x128xf32>
    %87 = vector.extract_strided_slice %86 {offsets = [0, 1], sizes = [8, 127], strides = [1, 1]} : vector<8x128xf32> to vector<8x127xf32>
    %88 = vector.extract_strided_slice %86 {offsets = [0, 0], sizes = [8, 1], strides = [1, 1]} : vector<8x128xf32> to vector<8x1xf32>
    %89 = tpu.concatenate %87, %88 in 1 : vector<8x127xf32>, vector<8x1xf32> -> vector<8x128xf32>
    %90 = vector.extract_strided_slice %86 {offsets = [0, 2], sizes = [8, 126], strides = [1, 1]} : vector<8x128xf32> to vector<8x126xf32>
    %91 = vector.extract_strided_slice %86 {offsets = [0, 0], sizes = [8, 2], strides = [1, 1]} : vector<8x128xf32> to vector<8x2xf32>
    %92 = tpu.concatenate %90, %91 in 1 : vector<8x126xf32>, vector<8x2xf32> -> vector<8x128xf32>
    %93 = tpu.concatenate %64, %67, %70, %75, %78, %81, %86, %89, %92 in 0 : vector<8x128xf32>, vector<8x128xf32>, vector<8x128xf32>, vector<8x128xf32>, vector<8x128xf32>, vector<8x128xf32>, vector<8x128xf32>, vector<8x128xf32>, vector<8x128xf32> -> vector<72x128xf32>
    %cst_45 = arith.constant dense<0.000000e+00> : vector<32x128xf32>
    %94 = tpu.matmul %0, %93, %cst_45 {dimension_numbers = #tpu.dot_dimension_numbers<[1], [0], [0], [1], [0, 0, 1, 1], [], []>} : vector<32x72xf32>, vector<72x128xf32>, vector<32x128xf32> -> vector<32x128xf32>
    %95 = vector.extract_strided_slice %94 {offsets = [0, 0], sizes = [8, 128], strides = [1, 1]} : vector<32x128xf32> to vector<8x128xf32>
    %cst_46 = arith.constant dense<0.000000e+00> : vector<8x32xf32>
    %96 = tpu.matmul %95, %2, %cst_46 {dimension_numbers = #tpu.dot_dimension_numbers<[1], [0], [0], [1], [0, 0, 1, 1], [], []>} : vector<8x128xf32>, vector<128x32xf32>, vector<8x32xf32> -> vector<8x32xf32>
    %97 = vector.extract_strided_slice %94 {offsets = [8, 0], sizes = [8, 128], strides = [1, 1]} : vector<32x128xf32> to vector<8x128xf32>
    %cst_47 = arith.constant dense<0.000000e+00> : vector<8x32xf32>
    %98 = tpu.matmul %97, %4, %cst_47 {dimension_numbers = #tpu.dot_dimension_numbers<[1], [0], [0], [1], [0, 0, 1, 1], [], []>} : vector<8x128xf32>, vector<128x32xf32>, vector<8x32xf32> -> vector<8x32xf32>
    %99 = arith.addf %96, %98 : vector<8x32xf32>
    %100 = vector.extract_strided_slice %94 {offsets = [16, 0], sizes = [8, 128], strides = [1, 1]} : vector<32x128xf32> to vector<8x128xf32>
    %cst_48 = arith.constant dense<0.000000e+00> : vector<8x32xf32>
    %101 = tpu.matmul %100, %2, %cst_48 {dimension_numbers = #tpu.dot_dimension_numbers<[1], [0], [0], [1], [0, 0, 1, 1], [], []>} : vector<8x128xf32>, vector<128x32xf32>, vector<8x32xf32> -> vector<8x32xf32>
    %102 = vector.extract_strided_slice %94 {offsets = [24, 0], sizes = [8, 128], strides = [1, 1]} : vector<32x128xf32> to vector<8x128xf32>
    %cst_49 = arith.constant dense<0.000000e+00> : vector<8x32xf32>
    %103 = tpu.matmul %102, %4, %cst_49 {dimension_numbers = #tpu.dot_dimension_numbers<[1], [0], [0], [1], [0, 0, 1, 1], [], []>} : vector<8x128xf32>, vector<128x32xf32>, vector<8x32xf32> -> vector<8x32xf32>
    %104 = arith.addf %101, %103 : vector<8x32xf32>
    %105 = vector.extract_strided_slice %99 {offsets = [0, 0], sizes = [2, 32], strides = [1, 1]} : vector<8x32xf32> to vector<2x32xf32>
    %c0_50 = arith.constant 0 : index
    %c0_51 = arith.constant 0 : index
    %c2 = arith.constant 2 : index
    %c0_52 = arith.constant 0 : index
    %106 = vector.load %arg5[%c0_50, %c0_51, %c2, %c0_52] : memref<1x2x16x32xf32, #tpu.memory_space<vmem>>, vector<1x2x1x32xf32>
    %107 = vector.shape_cast %106 : vector<1x2x1x32xf32> to vector<2x32xf32>
    %108 = vector.shape_cast %105 : vector<2x32xf32> to vector<1x2x1x32xf32>
    tpu.vector_store %arg5[%c0_50, %c0_51, %c2, %c0_52], %108 {strides = array<i32>} : memref<1x2x16x32xf32, #tpu.memory_space<vmem>>, vector<1x2x1x32xf32>,
    %109 = vector.extract_strided_slice %104 {offsets = [0, 0], sizes = [2, 32], strides = [1, 1]} : vector<8x32xf32> to vector<2x32xf32>
    %c0_53 = arith.constant 0 : index
    %c0_54 = arith.constant 0 : index
    %c3 = arith.constant 3 : index
    %c0_55 = arith.constant 0 : index
    %110 = vector.load %arg5[%c0_53, %c0_54, %c3, %c0_55] : memref<1x2x16x32xf32, #tpu.memory_space<vmem>>, vector<1x2x1x32xf32>
    %111 = vector.shape_cast %110 : vector<1x2x1x32xf32> to vector<2x32xf32>
    %112 = vector.shape_cast %109 : vector<2x32xf32> to vector<1x2x1x32xf32>
    tpu.vector_store %arg5[%c0_53, %c0_54, %c3, %c0_55], %112 {strides = array<i32>} : memref<1x2x16x32xf32, #tpu.memory_space<vmem>>, vector<1x2x1x32xf32>,
    %c2_i32_56 = arith.constant 2 : i32
    %113 = arith.addi %6, %c2_i32_56 : i32
    %c0_i32_57 = arith.constant 0 : i32
    %114 = arith.addi %113, %c0_i32_57 : i32
    %c0_58 = arith.constant 0 : index
    %115 = arith.index_cast %114 : i32 to index
    %c0_59 = arith.constant 0 : index
    %c0_60 = arith.constant 0 : index
    %116 = vector.load %arg2[%c0_58, %115, %c0_59, %c0_60] : memref<1x18x8x128xf32, #tpu.memory_space<vmem>>, vector<1x1x8x128xf32>
    %117 = vector.shape_cast %116 : vector<1x1x8x128xf32> to vector<8x128xf32>
    %118 = vector.extract_strided_slice %117 {offsets = [0, 1], sizes = [8, 127], strides = [1, 1]} : vector<8x128xf32> to vector<8x127xf32>
    %119 = vector.extract_strided_slice %117 {offsets = [0, 0], sizes = [8, 1], strides = [1, 1]} : vector<8x128xf32> to vector<8x1xf32>
    %120 = tpu.concatenate %118, %119 in 1 : vector<8x127xf32>, vector<8x1xf32> -> vector<8x128xf32>
    %121 = vector.extract_strided_slice %117 {offsets = [0, 2], sizes = [8, 126], strides = [1, 1]} : vector<8x128xf32> to vector<8x126xf32>
    %122 = vector.extract_strided_slice %117 {offsets = [0, 0], sizes = [8, 2], strides = [1, 1]} : vector<8x128xf32> to vector<8x2xf32>
    %123 = tpu.concatenate %121, %122 in 1 : vector<8x126xf32>, vector<8x2xf32> -> vector<8x128xf32>
    %c2_i32_61 = arith.constant 2 : i32
    %124 = arith.addi %6, %c2_i32_61 : i32
    %c1_i32_62 = arith.constant 1 : i32
    %125 = arith.addi %124, %c1_i32_62 : i32
    %c0_63 = arith.constant 0 : index
    %126 = arith.index_cast %125 : i32 to index
    %c0_64 = arith.constant 0 : index
    %c0_65 = arith.constant 0 : index
    %127 = vector.load %arg2[%c0_63, %126, %c0_64, %c0_65] : memref<1x18x8x128xf32, #tpu.memory_space<vmem>>, vector<1x1x8x128xf32>
    %128 = vector.shape_cast %127 : vector<1x1x8x128xf32> to vector<8x128xf32>
    %129 = vector.extract_strided_slice %128 {offsets = [0, 1], sizes = [8, 127], strides = [1, 1]} : vector<8x128xf32> to vector<8x127xf32>
    %130 = vector.extract_strided_slice %128 {offsets = [0, 0], sizes = [8, 1], strides = [1, 1]} : vector<8x128xf32> to vector<8x1xf32>
    %131 = tpu.concatenate %129, %130 in 1 : vector<8x127xf32>, vector<8x1xf32> -> vector<8x128xf32>
    %132 = vector.extract_strided_slice %128 {offsets = [0, 2], sizes = [8, 126], strides = [1, 1]} : vector<8x128xf32> to vector<8x126xf32>
    %133 = vector.extract_strided_slice %128 {offsets = [0, 0], sizes = [8, 2], strides = [1, 1]} : vector<8x128xf32> to vector<8x2xf32>
    %134 = tpu.concatenate %132, %133 in 1 : vector<8x126xf32>, vector<8x2xf32> -> vector<8x128xf32>
    %c2_i32_66 = arith.constant 2 : i32
    %135 = arith.addi %6, %c2_i32_66 : i32
    %c2_i32_67 = arith.constant 2 : i32
    %136 = arith.addi %135, %c2_i32_67 : i32
    %c0_68 = arith.constant 0 : index
    %137 = arith.index_cast %136 : i32 to index
    %c0_69 = arith.constant 0 : index
    %c0_70 = arith.constant 0 : index
    %138 = vector.load %arg2[%c0_68, %137, %c0_69, %c0_70] : memref<1x18x8x128xf32, #tpu.memory_space<vmem>>, vector<1x1x8x128xf32>
    %139 = vector.shape_cast %138 : vector<1x1x8x128xf32> to vector<8x128xf32>
    %140 = vector.extract_strided_slice %139 {offsets = [0, 1], sizes = [8, 127], strides = [1, 1]} : vector<8x128xf32> to vector<8x127xf32>
    %141 = vector.extract_strided_slice %139 {offsets = [0, 0], sizes = [8, 1], strides = [1, 1]} : vector<8x128xf32> to vector<8x1xf32>
    %142 = tpu.concatenate %140, %141 in 1 : vector<8x127xf32>, vector<8x1xf32> -> vector<8x128xf32>
    %143 = vector.extract_strided_slice %139 {offsets = [0, 2], sizes = [8, 126], strides = [1, 1]} : vector<8x128xf32> to vector<8x126xf32>
    %144 = vector.extract_strided_slice %139 {offsets = [0, 0], sizes = [8, 2], strides = [1, 1]} : vector<8x128xf32> to vector<8x2xf32>
    %145 = tpu.concatenate %143, %144 in 1 : vector<8x126xf32>, vector<8x2xf32> -> vector<8x128xf32>
    %146 = tpu.concatenate %117, %120, %123, %128, %131, %134, %139, %142, %145 in 0 : vector<8x128xf32>, vector<8x128xf32>, vector<8x128xf32>, vector<8x128xf32>, vector<8x128xf32>, vector<8x128xf32>, vector<8x128xf32>, vector<8x128xf32>, vector<8x128xf32> -> vector<72x128xf32>
    %cst_71 = arith.constant dense<0.000000e+00> : vector<32x128xf32>
    %147 = tpu.matmul %0, %146, %cst_71 {dimension_numbers = #tpu.dot_dimension_numbers<[1], [0], [0], [1], [0, 0, 1, 1], [], []>} : vector<32x72xf32>, vector<72x128xf32>, vector<32x128xf32> -> vector<32x128xf32>
    %148 = vector.extract_strided_slice %147 {offsets = [0, 0], sizes = [8, 128], strides = [1, 1]} : vector<32x128xf32> to vector<8x128xf32>
    %cst_72 = arith.constant dense<0.000000e+00> : vector<8x32xf32>
    %149 = tpu.matmul %148, %2, %cst_72 {dimension_numbers = #tpu.dot_dimension_numbers<[1], [0], [0], [1], [0, 0, 1, 1], [], []>} : vector<8x128xf32>, vector<128x32xf32>, vector<8x32xf32> -> vector<8x32xf32>
    %150 = vector.extract_strided_slice %147 {offsets = [8, 0], sizes = [8, 128], strides = [1, 1]} : vector<32x128xf32> to vector<8x128xf32>
    %cst_73 = arith.constant dense<0.000000e+00> : vector<8x32xf32>
    %151 = tpu.matmul %150, %4, %cst_73 {dimension_numbers = #tpu.dot_dimension_numbers<[1], [0], [0], [1], [0, 0, 1, 1], [], []>} : vector<8x128xf32>, vector<128x32xf32>, vector<8x32xf32> -> vector<8x32xf32>
    %152 = arith.addf %149, %151 : vector<8x32xf32>
    %153 = vector.extract_strided_slice %147 {offsets = [16, 0], sizes = [8, 128], strides = [1, 1]} : vector<32x128xf32> to vector<8x128xf32>
    %cst_74 = arith.constant dense<0.000000e+00> : vector<8x32xf32>
    %154 = tpu.matmul %153, %2, %cst_74 {dimension_numbers = #tpu.dot_dimension_numbers<[1], [0], [0], [1], [0, 0, 1, 1], [], []>} : vector<8x128xf32>, vector<128x32xf32>, vector<8x32xf32> -> vector<8x32xf32>
    %155 = vector.extract_strided_slice %147 {offsets = [24, 0], sizes = [8, 128], strides = [1, 1]} : vector<32x128xf32> to vector<8x128xf32>
    %cst_75 = arith.constant dense<0.000000e+00> : vector<8x32xf32>
    %156 = tpu.matmul %155, %4, %cst_75 {dimension_numbers = #tpu.dot_dimension_numbers<[1], [0], [0], [1], [0, 0, 1, 1], [], []>} : vector<8x128xf32>, vector<128x32xf32>, vector<8x32xf32> -> vector<8x32xf32>
    %157 = arith.addf %154, %156 : vector<8x32xf32>
    %158 = vector.extract_strided_slice %152 {offsets = [0, 0], sizes = [2, 32], strides = [1, 1]} : vector<8x32xf32> to vector<2x32xf32>
    %c0_76 = arith.constant 0 : index
    %c0_77 = arith.constant 0 : index
    %c4 = arith.constant 4 : index
    %c0_78 = arith.constant 0 : index
    %159 = vector.load %arg5[%c0_76, %c0_77, %c4, %c0_78] : memref<1x2x16x32xf32, #tpu.memory_space<vmem>>, vector<1x2x1x32xf32>
    %160 = vector.shape_cast %159 : vector<1x2x1x32xf32> to vector<2x32xf32>
    %161 = vector.shape_cast %158 : vector<2x32xf32> to vector<1x2x1x32xf32>
    tpu.vector_store %arg5[%c0_76, %c0_77, %c4, %c0_78], %161 {strides = array<i32>} : memref<1x2x16x32xf32, #tpu.memory_space<vmem>>, vector<1x2x1x32xf32>,
    %162 = vector.extract_strided_slice %157 {offsets = [0, 0], sizes = [2, 32], strides = [1, 1]} : vector<8x32xf32> to vector<2x32xf32>
    %c0_79 = arith.constant 0 : index
    %c0_80 = arith.constant 0 : index
    %c5 = arith.constant 5 : index
    %c0_81 = arith.constant 0 : index
    %163 = vector.load %arg5[%c0_79, %c0_80, %c5, %c0_81] : memref<1x2x16x32xf32, #tpu.memory_space<vmem>>, vector<1x2x1x32xf32>
    %164 = vector.shape_cast %163 : vector<1x2x1x32xf32> to vector<2x32xf32>
    %165 = vector.shape_cast %162 : vector<2x32xf32> to vector<1x2x1x32xf32>
    tpu.vector_store %arg5[%c0_79, %c0_80, %c5, %c0_81], %165 {strides = array<i32>} : memref<1x2x16x32xf32, #tpu.memory_space<vmem>>, vector<1x2x1x32xf32>,
    %c3_i32 = arith.constant 3 : i32
    %166 = arith.addi %6, %c3_i32 : i32
    %c0_i32_82 = arith.constant 0 : i32
    %167 = arith.addi %166, %c0_i32_82 : i32
    %c0_83 = arith.constant 0 : index
    %168 = arith.index_cast %167 : i32 to index
    %c0_84 = arith.constant 0 : index
    %c0_85 = arith.constant 0 : index
    %169 = vector.load %arg2[%c0_83, %168, %c0_84, %c0_85] : memref<1x18x8x128xf32, #tpu.memory_space<vmem>>, vector<1x1x8x128xf32>
    %170 = vector.shape_cast %169 : vector<1x1x8x128xf32> to vector<8x128xf32>
    %171 = vector.extract_strided_slice %170 {offsets = [0, 1], sizes = [8, 127], strides = [1, 1]} : vector<8x128xf32> to vector<8x127xf32>
    %172 = vector.extract_strided_slice %170 {offsets = [0, 0], sizes = [8, 1], strides = [1, 1]} : vector<8x128xf32> to vector<8x1xf32>
    %173 = tpu.concatenate %171, %172 in 1 : vector<8x127xf32>, vector<8x1xf32> -> vector<8x128xf32>
    %174 = vector.extract_strided_slice %170 {offsets = [0, 2], sizes = [8, 126], strides = [1, 1]} : vector<8x128xf32> to vector<8x126xf32>
    %175 = vector.extract_strided_slice %170 {offsets = [0, 0], sizes = [8, 2], strides = [1, 1]} : vector<8x128xf32> to vector<8x2xf32>
    %176 = tpu.concatenate %174, %175 in 1 : vector<8x126xf32>, vector<8x2xf32> -> vector<8x128xf32>
    %c3_i32_86 = arith.constant 3 : i32
    %177 = arith.addi %6, %c3_i32_86 : i32
    %c1_i32_87 = arith.constant 1 : i32
    %178 = arith.addi %177, %c1_i32_87 : i32
    %c0_88 = arith.constant 0 : index
    %179 = arith.index_cast %178 : i32 to index
    %c0_89 = arith.constant 0 : index
    %c0_90 = arith.constant 0 : index
    %180 = vector.load %arg2[%c0_88, %179, %c0_89, %c0_90] : memref<1x18x8x128xf32, #tpu.memory_space<vmem>>, vector<1x1x8x128xf32>
    %181 = vector.shape_cast %180 : vector<1x1x8x128xf32> to vector<8x128xf32>
    %182 = vector.extract_strided_slice %181 {offsets = [0, 1], sizes = [8, 127], strides = [1, 1]} : vector<8x128xf32> to vector<8x127xf32>
    %183 = vector.extract_strided_slice %181 {offsets = [0, 0], sizes = [8, 1], strides = [1, 1]} : vector<8x128xf32> to vector<8x1xf32>
    %184 = tpu.concatenate %182, %183 in 1 : vector<8x127xf32>, vector<8x1xf32> -> vector<8x128xf32>
    %185 = vector.extract_strided_slice %181 {offsets = [0, 2], sizes = [8, 126], strides = [1, 1]} : vector<8x128xf32> to vector<8x126xf32>
    %186 = vector.extract_strided_slice %181 {offsets = [0, 0], sizes = [8, 2], strides = [1, 1]} : vector<8x128xf32> to vector<8x2xf32>
    %187 = tpu.concatenate %185, %186 in 1 : vector<8x126xf32>, vector<8x2xf32> -> vector<8x128xf32>
    %c3_i32_91 = arith.constant 3 : i32
    %188 = arith.addi %6, %c3_i32_91 : i32
    %c2_i32_92 = arith.constant 2 : i32
    %189 = arith.addi %188, %c2_i32_92 : i32
    %c0_93 = arith.constant 0 : index
    %190 = arith.index_cast %189 : i32 to index
    %c0_94 = arith.constant 0 : index
    %c0_95 = arith.constant 0 : index
    %191 = vector.load %arg2[%c0_93, %190, %c0_94, %c0_95] : memref<1x18x8x128xf32, #tpu.memory_space<vmem>>, vector<1x1x8x128xf32>
    %192 = vector.shape_cast %191 : vector<1x1x8x128xf32> to vector<8x128xf32>
    %193 = vector.extract_strided_slice %192 {offsets = [0, 1], sizes = [8, 127], strides = [1, 1]} : vector<8x128xf32> to vector<8x127xf32>
    %194 = vector.extract_strided_slice %192 {offsets = [0, 0], sizes = [8, 1], strides = [1, 1]} : vector<8x128xf32> to vector<8x1xf32>
    %195 = tpu.concatenate %193, %194 in 1 : vector<8x127xf32>, vector<8x1xf32> -> vector<8x128xf32>
    %196 = vector.extract_strided_slice %192 {offsets = [0, 2], sizes = [8, 126], strides = [1, 1]} : vector<8x128xf32> to vector<8x126xf32>
    %197 = vector.extract_strided_slice %192 {offsets = [0, 0], sizes = [8, 2], strides = [1, 1]} : vector<8x128xf32> to vector<8x2xf32>
    %198 = tpu.concatenate %196, %197 in 1 : vector<8x126xf32>, vector<8x2xf32> -> vector<8x128xf32>
    %199 = tpu.concatenate %170, %173, %176, %181, %184, %187, %192, %195, %198 in 0 : vector<8x128xf32>, vector<8x128xf32>, vector<8x128xf32>, vector<8x128xf32>, vector<8x128xf32>, vector<8x128xf32>, vector<8x128xf32>, vector<8x128xf32>, vector<8x128xf32> -> vector<72x128xf32>
    %cst_96 = arith.constant dense<0.000000e+00> : vector<32x128xf32>
    %200 = tpu.matmul %0, %199, %cst_96 {dimension_numbers = #tpu.dot_dimension_numbers<[1], [0], [0], [1], [0, 0, 1, 1], [], []>} : vector<32x72xf32>, vector<72x128xf32>, vector<32x128xf32> -> vector<32x128xf32>
    %201 = vector.extract_strided_slice %200 {offsets = [0, 0], sizes = [8, 128], strides = [1, 1]} : vector<32x128xf32> to vector<8x128xf32>
    %cst_97 = arith.constant dense<0.000000e+00> : vector<8x32xf32>
    %202 = tpu.matmul %201, %2, %cst_97 {dimension_numbers = #tpu.dot_dimension_numbers<[1], [0], [0], [1], [0, 0, 1, 1], [], []>} : vector<8x128xf32>, vector<128x32xf32>, vector<8x32xf32> -> vector<8x32xf32>
    %203 = vector.extract_strided_slice %200 {offsets = [8, 0], sizes = [8, 128], strides = [1, 1]} : vector<32x128xf32> to vector<8x128xf32>
    %cst_98 = arith.constant dense<0.000000e+00> : vector<8x32xf32>
    %204 = tpu.matmul %203, %4, %cst_98 {dimension_numbers = #tpu.dot_dimension_numbers<[1], [0], [0], [1], [0, 0, 1, 1], [], []>} : vector<8x128xf32>, vector<128x32xf32>, vector<8x32xf32> -> vector<8x32xf32>
    %205 = arith.addf %202, %204 : vector<8x32xf32>
    %206 = vector.extract_strided_slice %200 {offsets = [16, 0], sizes = [8, 128], strides = [1, 1]} : vector<32x128xf32> to vector<8x128xf32>
    %cst_99 = arith.constant dense<0.000000e+00> : vector<8x32xf32>
    %207 = tpu.matmul %206, %2, %cst_99 {dimension_numbers = #tpu.dot_dimension_numbers<[1], [0], [0], [1], [0, 0, 1, 1], [], []>} : vector<8x128xf32>, vector<128x32xf32>, vector<8x32xf32> -> vector<8x32xf32>
    %208 = vector.extract_strided_slice %200 {offsets = [24, 0], sizes = [8, 128], strides = [1, 1]} : vector<32x128xf32> to vector<8x128xf32>
    %cst_100 = arith.constant dense<0.000000e+00> : vector<8x32xf32>
    %209 = tpu.matmul %208, %4, %cst_100 {dimension_numbers = #tpu.dot_dimension_numbers<[1], [0], [0], [1], [0, 0, 1, 1], [], []>} : vector<8x128xf32>, vector<128x32xf32>, vector<8x32xf32> -> vector<8x32xf32>
    %210 = arith.addf %207, %209 : vector<8x32xf32>
    %211 = vector.extract_strided_slice %205 {offsets = [0, 0], sizes = [2, 32], strides = [1, 1]} : vector<8x32xf32> to vector<2x32xf32>
    %c0_101 = arith.constant 0 : index
    %c0_102 = arith.constant 0 : index
    %c6 = arith.constant 6 : index
    %c0_103 = arith.constant 0 : index
    %212 = vector.load %arg5[%c0_101, %c0_102, %c6, %c0_103] : memref<1x2x16x32xf32, #tpu.memory_space<vmem>>, vector<1x2x1x32xf32>
    %213 = vector.shape_cast %212 : vector<1x2x1x32xf32> to vector<2x32xf32>
    %214 = vector.shape_cast %211 : vector<2x32xf32> to vector<1x2x1x32xf32>
    tpu.vector_store %arg5[%c0_101, %c0_102, %c6, %c0_103], %214 {strides = array<i32>} : memref<1x2x16x32xf32, #tpu.memory_space<vmem>>, vector<1x2x1x32xf32>,
    %215 = vector.extract_strided_slice %210 {offsets = [0, 0], sizes = [2, 32], strides = [1, 1]} : vector<8x32xf32> to vector<2x32xf32>
    %c0_104 = arith.constant 0 : index
    %c0_105 = arith.constant 0 : index
    %c7 = arith.constant 7 : index
    %c0_106 = arith.constant 0 : index
    %216 = vector.load %arg5[%c0_104, %c0_105, %c7, %c0_106] : memref<1x2x16x32xf32, #tpu.memory_space<vmem>>, vector<1x2x1x32xf32>
    %217 = vector.shape_cast %216 : vector<1x2x1x32xf32> to vector<2x32xf32>
    %218 = vector.shape_cast %215 : vector<2x32xf32> to vector<1x2x1x32xf32>
    tpu.vector_store %arg5[%c0_104, %c0_105, %c7, %c0_106], %218 {strides = array<i32>} : memref<1x2x16x32xf32, #tpu.memory_space<vmem>>, vector<1x2x1x32xf32>,
    %c4_i32 = arith.constant 4 : i32
    %219 = arith.addi %6, %c4_i32 : i32
    %c0_i32_107 = arith.constant 0 : i32
    %220 = arith.addi %219, %c0_i32_107 : i32
    %c0_108 = arith.constant 0 : index
    %221 = arith.index_cast %220 : i32 to index
    %c0_109 = arith.constant 0 : index
    %c0_110 = arith.constant 0 : index
    %222 = vector.load %arg2[%c0_108, %221, %c0_109, %c0_110] : memref<1x18x8x128xf32, #tpu.memory_space<vmem>>, vector<1x1x8x128xf32>
    %223 = vector.shape_cast %222 : vector<1x1x8x128xf32> to vector<8x128xf32>
    %224 = vector.extract_strided_slice %223 {offsets = [0, 1], sizes = [8, 127], strides = [1, 1]} : vector<8x128xf32> to vector<8x127xf32>
    %225 = vector.extract_strided_slice %223 {offsets = [0, 0], sizes = [8, 1], strides = [1, 1]} : vector<8x128xf32> to vector<8x1xf32>
    %226 = tpu.concatenate %224, %225 in 1 : vector<8x127xf32>, vector<8x1xf32> -> vector<8x128xf32>
    %227 = vector.extract_strided_slice %223 {offsets = [0, 2], sizes = [8, 126], strides = [1, 1]} : vector<8x128xf32> to vector<8x126xf32>
    %228 = vector.extract_strided_slice %223 {offsets = [0, 0], sizes = [8, 2], strides = [1, 1]} : vector<8x128xf32> to vector<8x2xf32>
    %229 = tpu.concatenate %227, %228 in 1 : vector<8x126xf32>, vector<8x2xf32> -> vector<8x128xf32>
    %c4_i32_111 = arith.constant 4 : i32
    %230 = arith.addi %6, %c4_i32_111 : i32
    %c1_i32_112 = arith.constant 1 : i32
    %231 = arith.addi %230, %c1_i32_112 : i32
    %c0_113 = arith.constant 0 : index
    %232 = arith.index_cast %231 : i32 to index
    %c0_114 = arith.constant 0 : index
    %c0_115 = arith.constant 0 : index
    %233 = vector.load %arg2[%c0_113, %232, %c0_114, %c0_115] : memref<1x18x8x128xf32, #tpu.memory_space<vmem>>, vector<1x1x8x128xf32>
    %234 = vector.shape_cast %233 : vector<1x1x8x128xf32> to vector<8x128xf32>
    %235 = vector.extract_strided_slice %234 {offsets = [0, 1], sizes = [8, 127], strides = [1, 1]} : vector<8x128xf32> to vector<8x127xf32>
    %236 = vector.extract_strided_slice %234 {offsets = [0, 0], sizes = [8, 1], strides = [1, 1]} : vector<8x128xf32> to vector<8x1xf32>
    %237 = tpu.concatenate %235, %236 in 1 : vector<8x127xf32>, vector<8x1xf32> -> vector<8x128xf32>
    %238 = vector.extract_strided_slice %234 {offsets = [0, 2], sizes = [8, 126], strides = [1, 1]} : vector<8x128xf32> to vector<8x126xf32>
    %239 = vector.extract_strided_slice %234 {offsets = [0, 0], sizes = [8, 2], strides = [1, 1]} : vector<8x128xf32> to vector<8x2xf32>
    %240 = tpu.concatenate %238, %239 in 1 : vector<8x126xf32>, vector<8x2xf32> -> vector<8x128xf32>
    %c4_i32_116 = arith.constant 4 : i32
    %241 = arith.addi %6, %c4_i32_116 : i32
    %c2_i32_117 = arith.constant 2 : i32
    %242 = arith.addi %241, %c2_i32_117 : i32
    %c0_118 = arith.constant 0 : index
    %243 = arith.index_cast %242 : i32 to index
    %c0_119 = arith.constant 0 : index
    %c0_120 = arith.constant 0 : index
    %244 = vector.load %arg2[%c0_118, %243, %c0_119, %c0_120] : memref<1x18x8x128xf32, #tpu.memory_space<vmem>>, vector<1x1x8x128xf32>
    %245 = vector.shape_cast %244 : vector<1x1x8x128xf32> to vector<8x128xf32>
    %246 = vector.extract_strided_slice %245 {offsets = [0, 1], sizes = [8, 127], strides = [1, 1]} : vector<8x128xf32> to vector<8x127xf32>
    %247 = vector.extract_strided_slice %245 {offsets = [0, 0], sizes = [8, 1], strides = [1, 1]} : vector<8x128xf32> to vector<8x1xf32>
    %248 = tpu.concatenate %246, %247 in 1 : vector<8x127xf32>, vector<8x1xf32> -> vector<8x128xf32>
    %249 = vector.extract_strided_slice %245 {offsets = [0, 2], sizes = [8, 126], strides = [1, 1]} : vector<8x128xf32> to vector<8x126xf32>
    %250 = vector.extract_strided_slice %245 {offsets = [0, 0], sizes = [8, 2], strides = [1, 1]} : vector<8x128xf32> to vector<8x2xf32>
    %251 = tpu.concatenate %249, %250 in 1 : vector<8x126xf32>, vector<8x2xf32> -> vector<8x128xf32>
    %252 = tpu.concatenate %223, %226, %229, %234, %237, %240, %245, %248, %251 in 0 : vector<8x128xf32>, vector<8x128xf32>, vector<8x128xf32>, vector<8x128xf32>, vector<8x128xf32>, vector<8x128xf32>, vector<8x128xf32>, vector<8x128xf32>, vector<8x128xf32> -> vector<72x128xf32>
    %cst_121 = arith.constant dense<0.000000e+00> : vector<32x128xf32>
    %253 = tpu.matmul %0, %252, %cst_121 {dimension_numbers = #tpu.dot_dimension_numbers<[1], [0], [0], [1], [0, 0, 1, 1], [], []>} : vector<32x72xf32>, vector<72x128xf32>, vector<32x128xf32> -> vector<32x128xf32>
    %254 = vector.extract_strided_slice %253 {offsets = [0, 0], sizes = [8, 128], strides = [1, 1]} : vector<32x128xf32> to vector<8x128xf32>
    %cst_122 = arith.constant dense<0.000000e+00> : vector<8x32xf32>
    %255 = tpu.matmul %254, %2, %cst_122 {dimension_numbers = #tpu.dot_dimension_numbers<[1], [0], [0], [1], [0, 0, 1, 1], [], []>} : vector<8x128xf32>, vector<128x32xf32>, vector<8x32xf32> -> vector<8x32xf32>
    %256 = vector.extract_strided_slice %253 {offsets = [8, 0], sizes = [8, 128], strides = [1, 1]} : vector<32x128xf32> to vector<8x128xf32>
    %cst_123 = arith.constant dense<0.000000e+00> : vector<8x32xf32>
    %257 = tpu.matmul %256, %4, %cst_123 {dimension_numbers = #tpu.dot_dimension_numbers<[1], [0], [0], [1], [0, 0, 1, 1], [], []>} : vector<8x128xf32>, vector<128x32xf32>, vector<8x32xf32> -> vector<8x32xf32>
    %258 = arith.addf %255, %257 : vector<8x32xf32>
    %259 = vector.extract_strided_slice %253 {offsets = [16, 0], sizes = [8, 128], strides = [1, 1]} : vector<32x128xf32> to vector<8x128xf32>
    %cst_124 = arith.constant dense<0.000000e+00> : vector<8x32xf32>
    %260 = tpu.matmul %259, %2, %cst_124 {dimension_numbers = #tpu.dot_dimension_numbers<[1], [0], [0], [1], [0, 0, 1, 1], [], []>} : vector<8x128xf32>, vector<128x32xf32>, vector<8x32xf32> -> vector<8x32xf32>
    %261 = vector.extract_strided_slice %253 {offsets = [24, 0], sizes = [8, 128], strides = [1, 1]} : vector<32x128xf32> to vector<8x128xf32>
    %cst_125 = arith.constant dense<0.000000e+00> : vector<8x32xf32>
    %262 = tpu.matmul %261, %4, %cst_125 {dimension_numbers = #tpu.dot_dimension_numbers<[1], [0], [0], [1], [0, 0, 1, 1], [], []>} : vector<8x128xf32>, vector<128x32xf32>, vector<8x32xf32> -> vector<8x32xf32>
    %263 = arith.addf %260, %262 : vector<8x32xf32>
    %264 = vector.extract_strided_slice %258 {offsets = [0, 0], sizes = [2, 32], strides = [1, 1]} : vector<8x32xf32> to vector<2x32xf32>
    %c0_126 = arith.constant 0 : index
    %c0_127 = arith.constant 0 : index
    %c8 = arith.constant 8 : index
    %c0_128 = arith.constant 0 : index
    %265 = vector.load %arg5[%c0_126, %c0_127, %c8, %c0_128] : memref<1x2x16x32xf32, #tpu.memory_space<vmem>>, vector<1x2x1x32xf32>
    %266 = vector.shape_cast %265 : vector<1x2x1x32xf32> to vector<2x32xf32>
    %267 = vector.shape_cast %264 : vector<2x32xf32> to vector<1x2x1x32xf32>
    tpu.vector_store %arg5[%c0_126, %c0_127, %c8, %c0_128], %267 {strides = array<i32>} : memref<1x2x16x32xf32, #tpu.memory_space<vmem>>, vector<1x2x1x32xf32>,
    %268 = vector.extract_strided_slice %263 {offsets = [0, 0], sizes = [2, 32], strides = [1, 1]} : vector<8x32xf32> to vector<2x32xf32>
    %c0_129 = arith.constant 0 : index
    %c0_130 = arith.constant 0 : index
    %c9 = arith.constant 9 : index
    %c0_131 = arith.constant 0 : index
    %269 = vector.load %arg5[%c0_129, %c0_130, %c9, %c0_131] : memref<1x2x16x32xf32, #tpu.memory_space<vmem>>, vector<1x2x1x32xf32>
    %270 = vector.shape_cast %269 : vector<1x2x1x32xf32> to vector<2x32xf32>
    %271 = vector.shape_cast %268 : vector<2x32xf32> to vector<1x2x1x32xf32>
    tpu.vector_store %arg5[%c0_129, %c0_130, %c9, %c0_131], %271 {strides = array<i32>} : memref<1x2x16x32xf32, #tpu.memory_space<vmem>>, vector<1x2x1x32xf32>,
    %c5_i32 = arith.constant 5 : i32
    %272 = arith.addi %6, %c5_i32 : i32
    %c0_i32_132 = arith.constant 0 : i32
    %273 = arith.addi %272, %c0_i32_132 : i32
    %c0_133 = arith.constant 0 : index
    %274 = arith.index_cast %273 : i32 to index
    %c0_134 = arith.constant 0 : index
    %c0_135 = arith.constant 0 : index
    %275 = vector.load %arg2[%c0_133, %274, %c0_134, %c0_135] : memref<1x18x8x128xf32, #tpu.memory_space<vmem>>, vector<1x1x8x128xf32>
    %276 = vector.shape_cast %275 : vector<1x1x8x128xf32> to vector<8x128xf32>
    %277 = vector.extract_strided_slice %276 {offsets = [0, 1], sizes = [8, 127], strides = [1, 1]} : vector<8x128xf32> to vector<8x127xf32>
    %278 = vector.extract_strided_slice %276 {offsets = [0, 0], sizes = [8, 1], strides = [1, 1]} : vector<8x128xf32> to vector<8x1xf32>
    %279 = tpu.concatenate %277, %278 in 1 : vector<8x127xf32>, vector<8x1xf32> -> vector<8x128xf32>
    %280 = vector.extract_strided_slice %276 {offsets = [0, 2], sizes = [8, 126], strides = [1, 1]} : vector<8x128xf32> to vector<8x126xf32>
    %281 = vector.extract_strided_slice %276 {offsets = [0, 0], sizes = [8, 2], strides = [1, 1]} : vector<8x128xf32> to vector<8x2xf32>
    %282 = tpu.concatenate %280, %281 in 1 : vector<8x126xf32>, vector<8x2xf32> -> vector<8x128xf32>
    %c5_i32_136 = arith.constant 5 : i32
    %283 = arith.addi %6, %c5_i32_136 : i32
    %c1_i32_137 = arith.constant 1 : i32
    %284 = arith.addi %283, %c1_i32_137 : i32
    %c0_138 = arith.constant 0 : index
    %285 = arith.index_cast %284 : i32 to index
    %c0_139 = arith.constant 0 : index
    %c0_140 = arith.constant 0 : index
    %286 = vector.load %arg2[%c0_138, %285, %c0_139, %c0_140] : memref<1x18x8x128xf32, #tpu.memory_space<vmem>>, vector<1x1x8x128xf32>
    %287 = vector.shape_cast %286 : vector<1x1x8x128xf32> to vector<8x128xf32>
    %288 = vector.extract_strided_slice %287 {offsets = [0, 1], sizes = [8, 127], strides = [1, 1]} : vector<8x128xf32> to vector<8x127xf32>
    %289 = vector.extract_strided_slice %287 {offsets = [0, 0], sizes = [8, 1], strides = [1, 1]} : vector<8x128xf32> to vector<8x1xf32>
    %290 = tpu.concatenate %288, %289 in 1 : vector<8x127xf32>, vector<8x1xf32> -> vector<8x128xf32>
    %291 = vector.extract_strided_slice %287 {offsets = [0, 2], sizes = [8, 126], strides = [1, 1]} : vector<8x128xf32> to vector<8x126xf32>
    %292 = vector.extract_strided_slice %287 {offsets = [0, 0], sizes = [8, 2], strides = [1, 1]} : vector<8x128xf32> to vector<8x2xf32>
    %293 = tpu.concatenate %291, %292 in 1 : vector<8x126xf32>, vector<8x2xf32> -> vector<8x128xf32>
    %c5_i32_141 = arith.constant 5 : i32
    %294 = arith.addi %6, %c5_i32_141 : i32
    %c2_i32_142 = arith.constant 2 : i32
    %295 = arith.addi %294, %c2_i32_142 : i32
    %c0_143 = arith.constant 0 : index
    %296 = arith.index_cast %295 : i32 to index
    %c0_144 = arith.constant 0 : index
    %c0_145 = arith.constant 0 : index
    %297 = vector.load %arg2[%c0_143, %296, %c0_144, %c0_145] : memref<1x18x8x128xf32, #tpu.memory_space<vmem>>, vector<1x1x8x128xf32>
    %298 = vector.shape_cast %297 : vector<1x1x8x128xf32> to vector<8x128xf32>
    %299 = vector.extract_strided_slice %298 {offsets = [0, 1], sizes = [8, 127], strides = [1, 1]} : vector<8x128xf32> to vector<8x127xf32>
    %300 = vector.extract_strided_slice %298 {offsets = [0, 0], sizes = [8, 1], strides = [1, 1]} : vector<8x128xf32> to vector<8x1xf32>
    %301 = tpu.concatenate %299, %300 in 1 : vector<8x127xf32>, vector<8x1xf32> -> vector<8x128xf32>
    %302 = vector.extract_strided_slice %298 {offsets = [0, 2], sizes = [8, 126], strides = [1, 1]} : vector<8x128xf32> to vector<8x126xf32>
    %303 = vector.extract_strided_slice %298 {offsets = [0, 0], sizes = [8, 2], strides = [1, 1]} : vector<8x128xf32> to vector<8x2xf32>
    %304 = tpu.concatenate %302, %303 in 1 : vector<8x126xf32>, vector<8x2xf32> -> vector<8x128xf32>
    %305 = tpu.concatenate %276, %279, %282, %287, %290, %293, %298, %301, %304 in 0 : vector<8x128xf32>, vector<8x128xf32>, vector<8x128xf32>, vector<8x128xf32>, vector<8x128xf32>, vector<8x128xf32>, vector<8x128xf32>, vector<8x128xf32>, vector<8x128xf32> -> vector<72x128xf32>
    %cst_146 = arith.constant dense<0.000000e+00> : vector<32x128xf32>
    %306 = tpu.matmul %0, %305, %cst_146 {dimension_numbers = #tpu.dot_dimension_numbers<[1], [0], [0], [1], [0, 0, 1, 1], [], []>} : vector<32x72xf32>, vector<72x128xf32>, vector<32x128xf32> -> vector<32x128xf32>
    %307 = vector.extract_strided_slice %306 {offsets = [0, 0], sizes = [8, 128], strides = [1, 1]} : vector<32x128xf32> to vector<8x128xf32>
    %cst_147 = arith.constant dense<0.000000e+00> : vector<8x32xf32>
    %308 = tpu.matmul %307, %2, %cst_147 {dimension_numbers = #tpu.dot_dimension_numbers<[1], [0], [0], [1], [0, 0, 1, 1], [], []>} : vector<8x128xf32>, vector<128x32xf32>, vector<8x32xf32> -> vector<8x32xf32>
    %309 = vector.extract_strided_slice %306 {offsets = [8, 0], sizes = [8, 128], strides = [1, 1]} : vector<32x128xf32> to vector<8x128xf32>
    %cst_148 = arith.constant dense<0.000000e+00> : vector<8x32xf32>
    %310 = tpu.matmul %309, %4, %cst_148 {dimension_numbers = #tpu.dot_dimension_numbers<[1], [0], [0], [1], [0, 0, 1, 1], [], []>} : vector<8x128xf32>, vector<128x32xf32>, vector<8x32xf32> -> vector<8x32xf32>
    %311 = arith.addf %308, %310 : vector<8x32xf32>
    %312 = vector.extract_strided_slice %306 {offsets = [16, 0], sizes = [8, 128], strides = [1, 1]} : vector<32x128xf32> to vector<8x128xf32>
    %cst_149 = arith.constant dense<0.000000e+00> : vector<8x32xf32>
    %313 = tpu.matmul %312, %2, %cst_149 {dimension_numbers = #tpu.dot_dimension_numbers<[1], [0], [0], [1], [0, 0, 1, 1], [], []>} : vector<8x128xf32>, vector<128x32xf32>, vector<8x32xf32> -> vector<8x32xf32>
    %314 = vector.extract_strided_slice %306 {offsets = [24, 0], sizes = [8, 128], strides = [1, 1]} : vector<32x128xf32> to vector<8x128xf32>
    %cst_150 = arith.constant dense<0.000000e+00> : vector<8x32xf32>
    %315 = tpu.matmul %314, %4, %cst_150 {dimension_numbers = #tpu.dot_dimension_numbers<[1], [0], [0], [1], [0, 0, 1, 1], [], []>} : vector<8x128xf32>, vector<128x32xf32>, vector<8x32xf32> -> vector<8x32xf32>
    %316 = arith.addf %313, %315 : vector<8x32xf32>
    %317 = vector.extract_strided_slice %311 {offsets = [0, 0], sizes = [2, 32], strides = [1, 1]} : vector<8x32xf32> to vector<2x32xf32>
    %c0_151 = arith.constant 0 : index
    %c0_152 = arith.constant 0 : index
    %c10 = arith.constant 10 : index
    %c0_153 = arith.constant 0 : index
    %318 = vector.load %arg5[%c0_151, %c0_152, %c10, %c0_153] : memref<1x2x16x32xf32, #tpu.memory_space<vmem>>, vector<1x2x1x32xf32>
    %319 = vector.shape_cast %318 : vector<1x2x1x32xf32> to vector<2x32xf32>
    %320 = vector.shape_cast %317 : vector<2x32xf32> to vector<1x2x1x32xf32>
    tpu.vector_store %arg5[%c0_151, %c0_152, %c10, %c0_153], %320 {strides = array<i32>} : memref<1x2x16x32xf32, #tpu.memory_space<vmem>>, vector<1x2x1x32xf32>,
    %321 = vector.extract_strided_slice %316 {offsets = [0, 0], sizes = [2, 32], strides = [1, 1]} : vector<8x32xf32> to vector<2x32xf32>
    %c0_154 = arith.constant 0 : index
    %c0_155 = arith.constant 0 : index
    %c11 = arith.constant 11 : index
    %c0_156 = arith.constant 0 : index
    %322 = vector.load %arg5[%c0_154, %c0_155, %c11, %c0_156] : memref<1x2x16x32xf32, #tpu.memory_space<vmem>>, vector<1x2x1x32xf32>
    %323 = vector.shape_cast %322 : vector<1x2x1x32xf32> to vector<2x32xf32>
    %324 = vector.shape_cast %321 : vector<2x32xf32> to vector<1x2x1x32xf32>
    tpu.vector_store %arg5[%c0_154, %c0_155, %c11, %c0_156], %324 {strides = array<i32>} : memref<1x2x16x32xf32, #tpu.memory_space<vmem>>, vector<1x2x1x32xf32>,
    %c6_i32 = arith.constant 6 : i32
    %325 = arith.addi %6, %c6_i32 : i32
    %c0_i32_157 = arith.constant 0 : i32
    %326 = arith.addi %325, %c0_i32_157 : i32
    %c0_158 = arith.constant 0 : index
    %327 = arith.index_cast %326 : i32 to index
    %c0_159 = arith.constant 0 : index
    %c0_160 = arith.constant 0 : index
    %328 = vector.load %arg2[%c0_158, %327, %c0_159, %c0_160] : memref<1x18x8x128xf32, #tpu.memory_space<vmem>>, vector<1x1x8x128xf32>
    %329 = vector.shape_cast %328 : vector<1x1x8x128xf32> to vector<8x128xf32>
    %330 = vector.extract_strided_slice %329 {offsets = [0, 1], sizes = [8, 127], strides = [1, 1]} : vector<8x128xf32> to vector<8x127xf32>
    %331 = vector.extract_strided_slice %329 {offsets = [0, 0], sizes = [8, 1], strides = [1, 1]} : vector<8x128xf32> to vector<8x1xf32>
    %332 = tpu.concatenate %330, %331 in 1 : vector<8x127xf32>, vector<8x1xf32> -> vector<8x128xf32>
    %333 = vector.extract_strided_slice %329 {offsets = [0, 2], sizes = [8, 126], strides = [1, 1]} : vector<8x128xf32> to vector<8x126xf32>
    %334 = vector.extract_strided_slice %329 {offsets = [0, 0], sizes = [8, 2], strides = [1, 1]} : vector<8x128xf32> to vector<8x2xf32>
    %335 = tpu.concatenate %333, %334 in 1 : vector<8x126xf32>, vector<8x2xf32> -> vector<8x128xf32>
    %c6_i32_161 = arith.constant 6 : i32
    %336 = arith.addi %6, %c6_i32_161 : i32
    %c1_i32_162 = arith.constant 1 : i32
    %337 = arith.addi %336, %c1_i32_162 : i32
    %c0_163 = arith.constant 0 : index
    %338 = arith.index_cast %337 : i32 to index
    %c0_164 = arith.constant 0 : index
    %c0_165 = arith.constant 0 : index
    %339 = vector.load %arg2[%c0_163, %338, %c0_164, %c0_165] : memref<1x18x8x128xf32, #tpu.memory_space<vmem>>, vector<1x1x8x128xf32>
    %340 = vector.shape_cast %339 : vector<1x1x8x128xf32> to vector<8x128xf32>
    %341 = vector.extract_strided_slice %340 {offsets = [0, 1], sizes = [8, 127], strides = [1, 1]} : vector<8x128xf32> to vector<8x127xf32>
    %342 = vector.extract_strided_slice %340 {offsets = [0, 0], sizes = [8, 1], strides = [1, 1]} : vector<8x128xf32> to vector<8x1xf32>
    %343 = tpu.concatenate %341, %342 in 1 : vector<8x127xf32>, vector<8x1xf32> -> vector<8x128xf32>
    %344 = vector.extract_strided_slice %340 {offsets = [0, 2], sizes = [8, 126], strides = [1, 1]} : vector<8x128xf32> to vector<8x126xf32>
    %345 = vector.extract_strided_slice %340 {offsets = [0, 0], sizes = [8, 2], strides = [1, 1]} : vector<8x128xf32> to vector<8x2xf32>
    %346 = tpu.concatenate %344, %345 in 1 : vector<8x126xf32>, vector<8x2xf32> -> vector<8x128xf32>
    %c6_i32_166 = arith.constant 6 : i32
    %347 = arith.addi %6, %c6_i32_166 : i32
    %c2_i32_167 = arith.constant 2 : i32
    %348 = arith.addi %347, %c2_i32_167 : i32
    %c0_168 = arith.constant 0 : index
    %349 = arith.index_cast %348 : i32 to index
    %c0_169 = arith.constant 0 : index
    %c0_170 = arith.constant 0 : index
    %350 = vector.load %arg2[%c0_168, %349, %c0_169, %c0_170] : memref<1x18x8x128xf32, #tpu.memory_space<vmem>>, vector<1x1x8x128xf32>
    %351 = vector.shape_cast %350 : vector<1x1x8x128xf32> to vector<8x128xf32>
    %352 = vector.extract_strided_slice %351 {offsets = [0, 1], sizes = [8, 127], strides = [1, 1]} : vector<8x128xf32> to vector<8x127xf32>
    %353 = vector.extract_strided_slice %351 {offsets = [0, 0], sizes = [8, 1], strides = [1, 1]} : vector<8x128xf32> to vector<8x1xf32>
    %354 = tpu.concatenate %352, %353 in 1 : vector<8x127xf32>, vector<8x1xf32> -> vector<8x128xf32>
    %355 = vector.extract_strided_slice %351 {offsets = [0, 2], sizes = [8, 126], strides = [1, 1]} : vector<8x128xf32> to vector<8x126xf32>
    %356 = vector.extract_strided_slice %351 {offsets = [0, 0], sizes = [8, 2], strides = [1, 1]} : vector<8x128xf32> to vector<8x2xf32>
    %357 = tpu.concatenate %355, %356 in 1 : vector<8x126xf32>, vector<8x2xf32> -> vector<8x128xf32>
    %358 = tpu.concatenate %329, %332, %335, %340, %343, %346, %351, %354, %357 in 0 : vector<8x128xf32>, vector<8x128xf32>, vector<8x128xf32>, vector<8x128xf32>, vector<8x128xf32>, vector<8x128xf32>, vector<8x128xf32>, vector<8x128xf32>, vector<8x128xf32> -> vector<72x128xf32>
    %cst_171 = arith.constant dense<0.000000e+00> : vector<32x128xf32>
    %359 = tpu.matmul %0, %358, %cst_171 {dimension_numbers = #tpu.dot_dimension_numbers<[1], [0], [0], [1], [0, 0, 1, 1], [], []>} : vector<32x72xf32>, vector<72x128xf32>, vector<32x128xf32> -> vector<32x128xf32>
    %360 = vector.extract_strided_slice %359 {offsets = [0, 0], sizes = [8, 128], strides = [1, 1]} : vector<32x128xf32> to vector<8x128xf32>
    %cst_172 = arith.constant dense<0.000000e+00> : vector<8x32xf32>
    %361 = tpu.matmul %360, %2, %cst_172 {dimension_numbers = #tpu.dot_dimension_numbers<[1], [0], [0], [1], [0, 0, 1, 1], [], []>} : vector<8x128xf32>, vector<128x32xf32>, vector<8x32xf32> -> vector<8x32xf32>
    %362 = vector.extract_strided_slice %359 {offsets = [8, 0], sizes = [8, 128], strides = [1, 1]} : vector<32x128xf32> to vector<8x128xf32>
    %cst_173 = arith.constant dense<0.000000e+00> : vector<8x32xf32>
    %363 = tpu.matmul %362, %4, %cst_173 {dimension_numbers = #tpu.dot_dimension_numbers<[1], [0], [0], [1], [0, 0, 1, 1], [], []>} : vector<8x128xf32>, vector<128x32xf32>, vector<8x32xf32> -> vector<8x32xf32>
    %364 = arith.addf %361, %363 : vector<8x32xf32>
    %365 = vector.extract_strided_slice %359 {offsets = [16, 0], sizes = [8, 128], strides = [1, 1]} : vector<32x128xf32> to vector<8x128xf32>
    %cst_174 = arith.constant dense<0.000000e+00> : vector<8x32xf32>
    %366 = tpu.matmul %365, %2, %cst_174 {dimension_numbers = #tpu.dot_dimension_numbers<[1], [0], [0], [1], [0, 0, 1, 1], [], []>} : vector<8x128xf32>, vector<128x32xf32>, vector<8x32xf32> -> vector<8x32xf32>
    %367 = vector.extract_strided_slice %359 {offsets = [24, 0], sizes = [8, 128], strides = [1, 1]} : vector<32x128xf32> to vector<8x128xf32>
    %cst_175 = arith.constant dense<0.000000e+00> : vector<8x32xf32>
    %368 = tpu.matmul %367, %4, %cst_175 {dimension_numbers = #tpu.dot_dimension_numbers<[1], [0], [0], [1], [0, 0, 1, 1], [], []>} : vector<8x128xf32>, vector<128x32xf32>, vector<8x32xf32> -> vector<8x32xf32>
    %369 = arith.addf %366, %368 : vector<8x32xf32>
    %370 = vector.extract_strided_slice %364 {offsets = [0, 0], sizes = [2, 32], strides = [1, 1]} : vector<8x32xf32> to vector<2x32xf32>
    %c0_176 = arith.constant 0 : index
    %c0_177 = arith.constant 0 : index
    %c12 = arith.constant 12 : index
    %c0_178 = arith.constant 0 : index
    %371 = vector.load %arg5[%c0_176, %c0_177, %c12, %c0_178] : memref<1x2x16x32xf32, #tpu.memory_space<vmem>>, vector<1x2x1x32xf32>
    %372 = vector.shape_cast %371 : vector<1x2x1x32xf32> to vector<2x32xf32>
    %373 = vector.shape_cast %370 : vector<2x32xf32> to vector<1x2x1x32xf32>
    tpu.vector_store %arg5[%c0_176, %c0_177, %c12, %c0_178], %373 {strides = array<i32>} : memref<1x2x16x32xf32, #tpu.memory_space<vmem>>, vector<1x2x1x32xf32>,
    %374 = vector.extract_strided_slice %369 {offsets = [0, 0], sizes = [2, 32], strides = [1, 1]} : vector<8x32xf32> to vector<2x32xf32>
    %c0_179 = arith.constant 0 : index
    %c0_180 = arith.constant 0 : index
    %c13 = arith.constant 13 : index
    %c0_181 = arith.constant 0 : index
    %375 = vector.load %arg5[%c0_179, %c0_180, %c13, %c0_181] : memref<1x2x16x32xf32, #tpu.memory_space<vmem>>, vector<1x2x1x32xf32>
    %376 = vector.shape_cast %375 : vector<1x2x1x32xf32> to vector<2x32xf32>
    %377 = vector.shape_cast %374 : vector<2x32xf32> to vector<1x2x1x32xf32>
    tpu.vector_store %arg5[%c0_179, %c0_180, %c13, %c0_181], %377 {strides = array<i32>} : memref<1x2x16x32xf32, #tpu.memory_space<vmem>>, vector<1x2x1x32xf32>,
    %c7_i32 = arith.constant 7 : i32
    %378 = arith.addi %6, %c7_i32 : i32
    %c0_i32_182 = arith.constant 0 : i32
    %379 = arith.addi %378, %c0_i32_182 : i32
    %c0_183 = arith.constant 0 : index
    %380 = arith.index_cast %379 : i32 to index
    %c0_184 = arith.constant 0 : index
    %c0_185 = arith.constant 0 : index
    %381 = vector.load %arg2[%c0_183, %380, %c0_184, %c0_185] : memref<1x18x8x128xf32, #tpu.memory_space<vmem>>, vector<1x1x8x128xf32>
    %382 = vector.shape_cast %381 : vector<1x1x8x128xf32> to vector<8x128xf32>
    %383 = vector.extract_strided_slice %382 {offsets = [0, 1], sizes = [8, 127], strides = [1, 1]} : vector<8x128xf32> to vector<8x127xf32>
    %384 = vector.extract_strided_slice %382 {offsets = [0, 0], sizes = [8, 1], strides = [1, 1]} : vector<8x128xf32> to vector<8x1xf32>
    %385 = tpu.concatenate %383, %384 in 1 : vector<8x127xf32>, vector<8x1xf32> -> vector<8x128xf32>
    %386 = vector.extract_strided_slice %382 {offsets = [0, 2], sizes = [8, 126], strides = [1, 1]} : vector<8x128xf32> to vector<8x126xf32>
    %387 = vector.extract_strided_slice %382 {offsets = [0, 0], sizes = [8, 2], strides = [1, 1]} : vector<8x128xf32> to vector<8x2xf32>
    %388 = tpu.concatenate %386, %387 in 1 : vector<8x126xf32>, vector<8x2xf32> -> vector<8x128xf32>
    %c7_i32_186 = arith.constant 7 : i32
    %389 = arith.addi %6, %c7_i32_186 : i32
    %c1_i32_187 = arith.constant 1 : i32
    %390 = arith.addi %389, %c1_i32_187 : i32
    %c0_188 = arith.constant 0 : index
    %391 = arith.index_cast %390 : i32 to index
    %c0_189 = arith.constant 0 : index
    %c0_190 = arith.constant 0 : index
    %392 = vector.load %arg2[%c0_188, %391, %c0_189, %c0_190] : memref<1x18x8x128xf32, #tpu.memory_space<vmem>>, vector<1x1x8x128xf32>
    %393 = vector.shape_cast %392 : vector<1x1x8x128xf32> to vector<8x128xf32>
    %394 = vector.extract_strided_slice %393 {offsets = [0, 1], sizes = [8, 127], strides = [1, 1]} : vector<8x128xf32> to vector<8x127xf32>
    %395 = vector.extract_strided_slice %393 {offsets = [0, 0], sizes = [8, 1], strides = [1, 1]} : vector<8x128xf32> to vector<8x1xf32>
    %396 = tpu.concatenate %394, %395 in 1 : vector<8x127xf32>, vector<8x1xf32> -> vector<8x128xf32>
    %397 = vector.extract_strided_slice %393 {offsets = [0, 2], sizes = [8, 126], strides = [1, 1]} : vector<8x128xf32> to vector<8x126xf32>
    %398 = vector.extract_strided_slice %393 {offsets = [0, 0], sizes = [8, 2], strides = [1, 1]} : vector<8x128xf32> to vector<8x2xf32>
    %399 = tpu.concatenate %397, %398 in 1 : vector<8x126xf32>, vector<8x2xf32> -> vector<8x128xf32>
    %c7_i32_191 = arith.constant 7 : i32
    %400 = arith.addi %6, %c7_i32_191 : i32
    %c2_i32_192 = arith.constant 2 : i32
    %401 = arith.addi %400, %c2_i32_192 : i32
    %c0_193 = arith.constant 0 : index
    %402 = arith.index_cast %401 : i32 to index
    %c0_194 = arith.constant 0 : index
    %c0_195 = arith.constant 0 : index
    %403 = vector.load %arg2[%c0_193, %402, %c0_194, %c0_195] : memref<1x18x8x128xf32, #tpu.memory_space<vmem>>, vector<1x1x8x128xf32>
    %404 = vector.shape_cast %403 : vector<1x1x8x128xf32> to vector<8x128xf32>
    %405 = vector.extract_strided_slice %404 {offsets = [0, 1], sizes = [8, 127], strides = [1, 1]} : vector<8x128xf32> to vector<8x127xf32>
    %406 = vector.extract_strided_slice %404 {offsets = [0, 0], sizes = [8, 1], strides = [1, 1]} : vector<8x128xf32> to vector<8x1xf32>
    %407 = tpu.concatenate %405, %406 in 1 : vector<8x127xf32>, vector<8x1xf32> -> vector<8x128xf32>
    %408 = vector.extract_strided_slice %404 {offsets = [0, 2], sizes = [8, 126], strides = [1, 1]} : vector<8x128xf32> to vector<8x126xf32>
    %409 = vector.extract_strided_slice %404 {offsets = [0, 0], sizes = [8, 2], strides = [1, 1]} : vector<8x128xf32> to vector<8x2xf32>
    %410 = tpu.concatenate %408, %409 in 1 : vector<8x126xf32>, vector<8x2xf32> -> vector<8x128xf32>
    %411 = tpu.concatenate %382, %385, %388, %393, %396, %399, %404, %407, %410 in 0 : vector<8x128xf32>, vector<8x128xf32>, vector<8x128xf32>, vector<8x128xf32>, vector<8x128xf32>, vector<8x128xf32>, vector<8x128xf32>, vector<8x128xf32>, vector<8x128xf32> -> vector<72x128xf32>
    %cst_196 = arith.constant dense<0.000000e+00> : vector<32x128xf32>
    %412 = tpu.matmul %0, %411, %cst_196 {dimension_numbers = #tpu.dot_dimension_numbers<[1], [0], [0], [1], [0, 0, 1, 1], [], []>} : vector<32x72xf32>, vector<72x128xf32>, vector<32x128xf32> -> vector<32x128xf32>
    %413 = vector.extract_strided_slice %412 {offsets = [0, 0], sizes = [8, 128], strides = [1, 1]} : vector<32x128xf32> to vector<8x128xf32>
    %cst_197 = arith.constant dense<0.000000e+00> : vector<8x32xf32>
    %414 = tpu.matmul %413, %2, %cst_197 {dimension_numbers = #tpu.dot_dimension_numbers<[1], [0], [0], [1], [0, 0, 1, 1], [], []>} : vector<8x128xf32>, vector<128x32xf32>, vector<8x32xf32> -> vector<8x32xf32>
    %415 = vector.extract_strided_slice %412 {offsets = [8, 0], sizes = [8, 128], strides = [1, 1]} : vector<32x128xf32> to vector<8x128xf32>
    %cst_198 = arith.constant dense<0.000000e+00> : vector<8x32xf32>
    %416 = tpu.matmul %415, %4, %cst_198 {dimension_numbers = #tpu.dot_dimension_numbers<[1], [0], [0], [1], [0, 0, 1, 1], [], []>} : vector<8x128xf32>, vector<128x32xf32>, vector<8x32xf32> -> vector<8x32xf32>
    %417 = arith.addf %414, %416 : vector<8x32xf32>
    %418 = vector.extract_strided_slice %412 {offsets = [16, 0], sizes = [8, 128], strides = [1, 1]} : vector<32x128xf32> to vector<8x128xf32>
    %cst_199 = arith.constant dense<0.000000e+00> : vector<8x32xf32>
    %419 = tpu.matmul %418, %2, %cst_199 {dimension_numbers = #tpu.dot_dimension_numbers<[1], [0], [0], [1], [0, 0, 1, 1], [], []>} : vector<8x128xf32>, vector<128x32xf32>, vector<8x32xf32> -> vector<8x32xf32>
    %420 = vector.extract_strided_slice %412 {offsets = [24, 0], sizes = [8, 128], strides = [1, 1]} : vector<32x128xf32> to vector<8x128xf32>
    %cst_200 = arith.constant dense<0.000000e+00> : vector<8x32xf32>
    %421 = tpu.matmul %420, %4, %cst_200 {dimension_numbers = #tpu.dot_dimension_numbers<[1], [0], [0], [1], [0, 0, 1, 1], [], []>} : vector<8x128xf32>, vector<128x32xf32>, vector<8x32xf32> -> vector<8x32xf32>
    %422 = arith.addf %419, %421 : vector<8x32xf32>
    %423 = vector.extract_strided_slice %417 {offsets = [0, 0], sizes = [2, 32], strides = [1, 1]} : vector<8x32xf32> to vector<2x32xf32>
    %c0_201 = arith.constant 0 : index
    %c0_202 = arith.constant 0 : index
    %c14 = arith.constant 14 : index
    %c0_203 = arith.constant 0 : index
    %424 = vector.load %arg5[%c0_201, %c0_202, %c14, %c0_203] : memref<1x2x16x32xf32, #tpu.memory_space<vmem>>, vector<1x2x1x32xf32>
    %425 = vector.shape_cast %424 : vector<1x2x1x32xf32> to vector<2x32xf32>
    %426 = vector.shape_cast %423 : vector<2x32xf32> to vector<1x2x1x32xf32>
    tpu.vector_store %arg5[%c0_201, %c0_202, %c14, %c0_203], %426 {strides = array<i32>} : memref<1x2x16x32xf32, #tpu.memory_space<vmem>>, vector<1x2x1x32xf32>,
    %427 = vector.extract_strided_slice %422 {offsets = [0, 0], sizes = [2, 32], strides = [1, 1]} : vector<8x32xf32> to vector<2x32xf32>
    %c0_204 = arith.constant 0 : index
    %c0_205 = arith.constant 0 : index
    %c15 = arith.constant 15 : index
    %c0_206 = arith.constant 0 : index
    %428 = vector.load %arg5[%c0_204, %c0_205, %c15, %c0_206] : memref<1x2x16x32xf32, #tpu.memory_space<vmem>>, vector<1x2x1x32xf32>
    %429 = vector.shape_cast %428 : vector<1x2x1x32xf32> to vector<2x32xf32>
    %430 = vector.shape_cast %427 : vector<2x32xf32> to vector<1x2x1x32xf32>
    tpu.vector_store %arg5[%c0_204, %c0_205, %c15, %c0_206], %430 {strides = array<i32>} : memref<1x2x16x32xf32, #tpu.memory_space<vmem>>, vector<1x2x1x32xf32>,
    return
  }
  func.func @transform_0(%arg0: i32, %arg1: i32) -> (i32, i32, i32, i32) {
    %c0_i32 = arith.constant 0 : i32
    %c0_i32_0 = arith.constant 0 : i32
    %c0_i32_1 = arith.constant 0 : i32
    %c0_i32_2 = arith.constant 0 : i32
    return %arg0, %c0_i32, %c0_i32_0, %c0_i32_1 : i32, i32, i32, i32
  }
  func.func @transform_1(%arg0: i32, %arg1: i32) -> (i32, i32) {
    %c0_i32 = arith.constant 0 : i32
    %c0_i32_0 = arith.constant 0 : i32
    %c0_i32_1 = arith.constant 0 : i32
    return %c0_i32, %c0_i32_0 : i32, i32
  }
  func.func @transform_2(%arg0: i32, %arg1: i32) -> (i32, i32, i32) {
    %c0_i32 = arith.constant 0 : i32
    %c0_i32_0 = arith.constant 0 : i32
    %c0_i32_1 = arith.constant 0 : i32
    %c0_i32_2 = arith.constant 0 : i32
    return %c0_i32, %c0_i32_0, %c0_i32_1 : i32, i32, i32
  }
  func.func @transform_3(%arg0: i32, %arg1: i32) -> (i32, i32, i32, i32) {
    %c0_i32 = arith.constant 0 : i32
    %c0_i32_0 = arith.constant 0 : i32
    %c0_i32_1 = arith.constant 0 : i32
    return %arg0, %c0_i32, %arg1, %c0_i32_0 : i32, i32, i32, i32
  }
}

</mosaic_0001>

<bundles_post_ra>
// kernel: upsample_forward.1
= control target key start
LH: loop header
LB: loop body
LE: loop exit
PB: predicated region body
PF: predicated region fallthrough
CT: control target
= control target key end

     0   :  { %8 = vsyncpa [#allocation3], 0  ;;  %s8372_s0 = inlined_call_operand.vmem [shape: f32[2,18,8,128], index: 0, kind: input, shape index: {}]   ;;  %s8373_s1 = inlined_call_operand.vmem [shape: f32[32,72], index: 1, kind: input, shape index: {}]   ;;  %s8374_s2 = inlined_call_operand.vmem [shape: f32[2,128,32], index: 2, kind: input, shape index: {}]   ;;  %s8375_s3 = inlined_call_operand.hbm [shape: f32[2,2,32,32], index: 3, kind: output, shape index: {}]  }
   0x1   :  { %10 = vsyncpa [#allocation3 + $0x1], 0  ;;  %s7166_s12 = smov 0   ;;  %s7168_s13 = smov 0  }
   0x2   :  { %s7170_s14 = smov 0   ;;  %s7172_s15 = smov 0  }
   0x3   :  { %s7174_s16 = smov 0   ;;  %s7176_s17 = smov 0  }
   0x4   :  { %s7178_s18 = smov 0   ;;  %s7180_s19 = smov 0  }
   0x5 LB: > { %s3968_s20 = sadd.s32 4294967295, %s7131_s19   ;;  %s3969_s21 = sadd.s32 4294967294, %s7131_s19   ;;  %s7131_s19 = sphi %s7180_s19, %s16_s19   ;;  %s7127_s18 = sphi %s7178_s18, %s8384_s18   ;;  %s7123_s17 = sphi %s7176_s17, %s8383_s17   ;;  %s7119_s16 = sphi %s7174_s16, %s8382_s16   ;;  %s7115_s15 = sphi %s7172_s15, %s8381_s15   ;;  %s7111_s14 = sphi %s7170_s14, %s8380_s14   ;;  %s7107_s13 = sphi %s7168_s13, %s8379_s13   ;;  %s7103_s12 = sphi %s7166_s12, %s8378_s12  }
   0x6   : > { %s25_s22 = sadd.s32 1, %s7123_s17  ;;  %s28_s23 = sadd.s32 1, %s7127_s18 }
   0x7   : > { %p26_p0 = scmp.ge.s32.totalorder %s25_s22, 2  ;;  %p115_p1 = scmp.ne.s32.totalorder %s7111_s14, %s7107_s13 }
   0x8   : > { %p116_p2 = scmp.eq.s32.totalorder %s3968_s20, 3  ;;  %p121_p5 = scmp.ne.s32.totalorder %s7107_s13, %s7103_s12 }
   0x9   : > { %s8386_s22 = smov (%p26_p0, %s25_s22), 0  ;;  %s8388_s23 = smov (!%p26_p0, %s28_s23), %s7127_s18 }
   0xa   : > { %s101_s24 = ssub.s32 %s7123_s17, %s8386_s22  ;;  %p7217_p3 = por %p116_p2, %p115_p1 }
   0xb   : > { %p30_p4 = scmp.ge.s32.totalorder %s8388_s23, 2  ;;  %p122_p6 = scmp.eq.s32.totalorder %s3969_s21, 3 }
   0xc   : > { %p3972_p7 = scmp.ge.s32.totalorder %s7131_s19, 1  ;;  %p154_p9 = scmp.lt.s32.totalorder %s7131_s19, 5 }
   0xd   : > { %s8390_s23 = smov (%p30_p4, %s8388_s23), 0  ;;  %p7226_p8 = por %p122_p6, %p121_p5 }
   0xe   : > { %s100_s27 = ssub.s32 %s7127_s18, %s8390_s23  ;;  %s105_s28 = sadd.s32 1, %s7111_s14 }
   0xf   : > { %s102_s29 = sor.u32 %s101_s24, %s100_s27  ;;  %p155_p10 = pnand %p3972_p7, %p154_p9 }
  0x10   : > { %p103_p11 = scmp.eq.s32.totalorder %s102_s29, 0  ;;  %p178_p12 = scmp.lt.s32.totalorder (!%p155_p10), %s7119_s16, 1  ;;  %v7265_v3 = vld [vmem:[%s8373_s1] sm:$0xff] (!%p155_p10)  ;;  %vm254_vm0 = vcmask (!%p155_p10), 588800   ;;  %v3976_v5 = vld [vmem:[%s8374_s2 + $0x88] sm:$0xff] (!%p155_p10)  ;;  %v3977_v6 = vld [vmem:[%s8374_s2 + $0x90] sm:$0xff] (!%p155_p10) }
  0x11   : > { %158 = sbr.rel (%p155_p10) target bundleno = 2478 (0x9ae), region = 32  ;;  %s4072_s6 = sshll.u32 (!%p155_p10), %s7115_s15, 6  ;;  %4748 = vmatprep.mubr.msk.f32.mxu0 (!%p155_p10), %vm254_vm0, %v7265_v3  ;;  %v3975_v4 = vld [vmem:[%s8374_s2 + $0x80] sm:$0xff] (!%p155_p10)  ;;  %v3978_v8 = vld [vmem:[%s8374_s2 + $0x98] sm:$0xff] (!%p155_p10)  ;;  %v7135_v9 = vmov (!%p155_p10), 0.0|0.0   ;;  %v3980_v12 = vld [vmem:[%s8374_s2 + $0xa8] sm:$0xff] (!%p155_p10) }
  0x12   : > { %s7235_s30 = scalar_select %p103_p11, %s7111_s14, %s105_s28  }
  0x13   : > { %s7133_s11 = smov (!%p155_p10), 127   ;;  %s7134_s20 = smov (!%p155_p10), 126   ;;  %v7286_v7 = vpack.c.bf16 (!%p155_p10), %v3976_v5, %v3975_v4  ;;  %6058 = vmatprep.subr.bf16.mxu1 (!%p155_p10), %v7135_v9  ;;  %v7293_v10 = vpack.c.bf16 (!%p155_p10), %v3978_v8, %v3977_v6  ;;  %v3979_v11 = vld [vmem:[%s8374_s2 + $0xa0] sm:$0xff] (!%p155_p10)  ;;  %v3981_v15 = vld [vmem:[%s8374_s2 + $0xb0] sm:$0xff] (!%p155_p10)  ;;  %v3982_v16 = vld [vmem:[%s8374_s2 + $0xb8] sm:$0xff] (!%p155_p10)  ;;  %vm7136_vm1 = vmmov (!%p155_p10), 0  }
  0x14   : > { %v7310_v14 = vpack.c.bf16 (!%p155_p10), %v3980_v12, %v3979_v11  ;;  %v7324_v17 = vpack.c.bf16 (!%p155_p10), %v3982_v16, %v3981_v15  ;;  %v3983_v18 = vld [vmem:[%s8374_s2 + $0xc0] sm:$0xff] (!%p155_p10)  ;;  %v3984_v19 = vld [vmem:[%s8374_s2 + $0xc8] sm:$0xff] (!%p155_p10)  ;;  %v3985_v21 = vld [vmem:[%s8374_s2 + $0xd0] sm:$0xff] (!%p155_p10)  ;;  %v7137_v43 = vmov (!%p155_p10), 0.0   ;;  %vm657_vm2 = vcmask (!%p155_p10), 253952  }
  0x15   : > { %6060 = vmatpush3.bf16.msra.mxu1 (!%p155_p10), %v7286_v7  ;;  %v7338_v20 = vpack.c.bf16 (!%p155_p10), %v3984_v19, %v3983_v18  ;;  %v3986_v22 = vld [vmem:[%s8374_s2 + $0xd8] sm:$0xff] (!%p155_p10)  ;;  %v3987_v24 = vld [vmem:[%s8374_s2 + $0xe0] sm:$0xff] (!%p155_p10)  ;;  %v3988_v25 = vld [vmem:[%s8374_s2 + $0xe8] sm:$0xff] (!%p155_p10)  ;;  %4786 = vmatprep.mubr.msk.f32.mxu1 (!%p155_p10), %vm7136_vm1, %v7137_v43 }
  0x16   : > { %6061 = vmatprep.subr.bf16.mxu1 (!%p155_p10), %v7135_v9  ;;  %v7352_v23 = vpack.c.bf16 (!%p155_p10), %v3986_v22, %v3985_v21  ;;  %v7362_v26 = vpack.c.bf16 (!%p155_p10), %v3988_v25, %v3987_v24  ;;  %v3989_v27 = vld [vmem:[%s8374_s2 + $0xf0] sm:$0xff] (!%p155_p10)  ;;  %v3990_v28 = vld [vmem:[%s8374_s2 + $0xf8] sm:$0xff] (!%p155_p10)  ;;  %v7383_v40 = vld [vmem:[%s8373_s1 + $0x8] sm:$0xff] (!%p155_p10) }
  0x17   : > { %v7372_v29 = vpack.c.bf16 (!%p155_p10), %v3990_v28, %v3989_v27  ;;  %v7388_v41 = vld [vmem:[%s8373_s1 + $0x10] sm:$0xff] (!%p155_p10)  ;;  %v7398_v42 = vld [vmem:[%s8373_s1 + $0x18] sm:$0xff] (!%p155_p10)  ;;  %v188_v45 = vld [vmem:[%s8374_s2] sm:$0xff] (!%p155_p10) }
  0x18   : > { %s179_s4 = scalar_select %p178_p12, %s7119_s16, 1  ;;  %v189_v46 = vld [vmem:[%s8374_s2 + $0x8] sm:$0xff]  ;;  %v190_v48 = vld [vmem:[%s8374_s2 + $0x10] sm:$0xff]  ;;  %v191_v49 = vld [vmem:[%s8374_s2 + $0x18] sm:$0xff] }
  0x19   : > { %6063 = vmatpush3.bf16.msra.mxu1 %v7293_v10  ;;  %v7443_v47 = vpack.c.bf16 %v189_v46, %v188_v45  ;;  %v7452_v52 = vpack.c.bf16 %v191_v49, %v190_v48  ;;  %v192_v53 = vld [vmem:[%s8374_s2 + $0x20] sm:$0xff]  ;;  %v193_v54 = vld [vmem:[%s8374_s2 + $0x28] sm:$0xff]  ;;  %v194_v58 = vld [vmem:[%s8374_s2 + $0x30] sm:$0xff] }
  0x1a   : > { %s6970_s5 = smul.u32 144, %s179_s4  ;;  %6064 = vmatprep.subr.bf16.mxu1 %v7135_v9  ;;  %v7464_v57 = vpack.c.bf16 %v193_v54, %v192_v53  ;;  %v195_v59 = vld [vmem:[%s8374_s2 + $0x38] sm:$0xff]  ;;  %v196_v61 = vld [vmem:[%s8374_s2 + $0x40] sm:$0xff]  ;;  %v197_v62 = vld [vmem:[%s8374_s2 + $0x48] sm:$0xff] }
  0x1b   : > { %v7478_v60 = vpack.c.bf16 %v195_v59, %v194_v58  ;;  %v7490_v63 = vpack.c.bf16 %v197_v62, %v196_v61  ;;  %v199_v4 = vld [vmem:[%s8374_s2 + $0x58] sm:$0xff]  ;;  %v200_v6 = vld [vmem:[%s8374_s2 + $0x60] sm:$0xff]  ;;  %v201_v8 = vld [vmem:[%s8374_s2 + $0x68] sm:$0xff] }
  0x1c   : > { %s182_s9 = scalar_lea.vmem %s8372_s0, %s6970_s5  ;;  %v7514_v11 = vpack.c.bf16 %v201_v8, %v200_v6  ;;  %v202_v12 = vld [vmem:[%s8374_s2 + $0x70] sm:$0xff]  ;;  %v203_v15 = vld [vmem:[%s8374_s2 + $0x78] sm:$0xff]  ;;  %s175_s5 = sand.u32 1, %s7107_s13  }
  0x1d   : > { %s7243_s10 = scalar_lea.vmem %s182_s9, %s4072_s6  ;;  %6066 = vmatpush3.bf16.msra.mxu1 %v7310_v14  ;;  %v7526_v18 = vpack.c.bf16 %v203_v15, %v202_v12  ;;  %s3973_s6 = sshll.u32 %s175_s5, 5 }
  0x1e   : > { %v7246_v0 = vld [vmem:[%s7243_s10 + $0x8] sm:$0xff]  ;;  %v7249_v1 = vld [vmem:[%s7243_s10] sm:$0xff]  ;;  %v7260_v2 = vld [vmem:[%s7243_s10 + $0x10] sm:$0xff]  ;;  %6067 = vmatprep.subr.bf16.mxu1 %v7135_v9  ;;  %s7607_s7 = scalar_lea.vmem [#allocation2], %s3973_s6 }
  0x1f   : > { %237 = vrot.lane.b32.xlu1 %v7246_v0, %s7133_s11  ;;  %226 = vrot.lane.b32.xlu0 %v7249_v1, %s7133_s11  ;;  %v7307_v13 = vld [vmem:[%s7243_s10 + $0x18] sm:$0xff]  ;;  %v7423_v44 = vld [vmem:[%s7243_s10 + $0x20] sm:$0xff] }
  0x21   : > { %6069 = vmatpush3.bf16.msra.mxu1 %v7324_v17 }
  0x22   : > { %6070 = vmatprep.subr.bf16.mxu1 %v7135_v9 }
  0x23   : > { %240 = vrot.lane.b32.xlu1 %v7246_v0, %s7134_s20  ;;  %229 = vrot.lane.b32.xlu0 %v7249_v1, %s7134_s20 }
  0x25   : > { %6072 = vmatpush3.bf16.msra.mxu1 %v7338_v20 }
  0x26   : > { %6073 = vmatprep.subr.bf16.mxu1 %v7135_v9 }
  0x27   : > { %248 = vrot.lane.b32.xlu0 %v7260_v2, %s7133_s11  ;;  %251 = vrot.lane.b32.xlu1 %v7260_v2, %s7134_s20 }
  0x29   : > { %6075 = vmatpush3.bf16.msra.mxu1 %v7352_v23 }
  0x2a   : > { %6076 = vmatprep.subr.bf16.mxu1 %v7135_v9 }
  0x2b   : > { %689 = vrot.lane.b32.xlu0 %v7246_v0, %s7133_s11  ;;  %692 = vrot.lane.b32.xlu1 %v7246_v0, %s7134_s20 }
  0x2d   : > { %6078 = vmatpush3.bf16.msra.mxu1 %v7362_v26 }
  0x2e   : > { %6079 = vmatprep.subr.bf16.mxu1 %v7135_v9 }
  0x2f   : > { %700 = vrot.lane.b32.xlu1 %v7260_v2, %s7134_s20  ;;  %697 = vrot.lane.b32.xlu0 %v7260_v2, %s7133_s11 }
  0x31   : > { %6081 = vmatpush3.bf16.msra.mxu1 %v7372_v29 }
  0x32   : > { %6082 = vmatprep.subr.bf16.mxu1 %v7135_v9 }
  0x33   : > { %708 = vrot.lane.b32.xlu0 %v7307_v13, %s7133_s11  ;;  %711 = vrot.lane.b32.xlu1 %v7307_v13, %s7134_s20 }
  0x37   : > { %1135 = vrot.lane.b32.xlu0 %v7260_v2, %s7133_s11  ;;  %1138 = vrot.lane.b32.xlu1 %v7260_v2, %s7134_s20 }
  0x3b   : > { %1146 = vrot.lane.b32.xlu1 %v7307_v13, %s7134_s20  ;;  %1143 = vrot.lane.b32.xlu0 %v7307_v13, %s7133_s11 }
  0x3f   : > { %1154 = vrot.lane.b32.xlu0 %v7423_v44, %s7133_s11  ;;  %1157 = vrot.lane.b32.xlu1 %v7423_v44, %s7134_s20 }
  0x43   : > { %1581 = vrot.lane.b32.xlu0 %v7307_v13, %s7133_s11  ;;  %1584 = vrot.lane.b32.xlu1 %v7307_v13, %s7134_s20 }
  0x47   : > { %1592 = vrot.lane.b32.xlu1 %v7423_v44, %s7134_s20  ;;  %1589 = vrot.lane.b32.xlu0 %v7423_v44, %s7133_s11 }
  0x91   : > { %v238_v30 = vpop.permute.xlu1 %237  ;;  %v227_v31 = vpop.permute.xlu0 %226 }
  0x92   : > { %v6042_v32 = vpack.c.bf16 %v227_v31, %v7249_v1  ;;  %v198_v1 = vld [vmem:[%s8374_s2 + $0x50] sm:$0xff]  ;;  %v7586_v31 = vld [vmem:[%s7243_s10 + $0x28] sm:$0xff] }
  0x93   : > { %v7502_v5 = vpack.c.bf16 %v199_v4, %v198_v1  ;;  %1600 = vrot.lane.b32.xlu0 %v7586_v31, %s7133_s11  ;;  %1603 = vrot.lane.b32.xlu1 %v7586_v31, %s7134_s20 }
  0x94   : > { %6043 = vmatprep.subr.bf16.mxu0 %v6042_v32 }
  0x95   : > { %v241_v33 = vpop.permute.xlu1 %240  ;;  %6045 = vmatpush3.bf16.msra.mxu0 %v6042_v32  ;;  %v230_v34 = vpop.permute.xlu0 %229  ;;  %v7138_v32 = vmov 1966171168  }
  0x96   : > { %v6046_v35 = vpack.c.bf16 %v7246_v0, %v230_v34  ;;  %v6050_v36 = vpack.c.bf16 %v241_v33, %v238_v30  ;;  %v634_v33 = vunpack.c.l.s4 %v7138_v32  ;;  %v636_v34 = vlaneseq }
  0x97   : > { %2027 = vrot.lane.b32.xlu0 %v7423_v44, %s7133_s11  ;;  %2030 = vrot.lane.b32.xlu1 %v7423_v44, %s7134_s20 }
  0x98   : > { %6047 = vmatprep.subr.bf16.mxu0 %v6046_v35 }
  0x99   : > { %6049 = vmatpush3.bf16.msra.mxu0 %v6046_v35  ;;  %v249_v37 = vpop.permute.xlu0 %248  ;;  %v252_v39 = vpop.permute.xlu1 %251  ;;  %v635_v35 = vunpack.c.0.s8 %v634_v33 }
  0x9a   : > { %6051 = vmatprep.subr.bf16.mxu0 %v6050_v36  ;;  %v6054_v38 = vpack.c.bf16 %v249_v37, %v7260_v2 }
  0x9b   : > { %2038 = vrot.lane.b32.xlu1 %v7586_v31, %s7134_s20  ;;  %2035 = vrot.lane.b32.xlu0 %v7586_v31, %s7133_s11 }
  0x9d   : > { %6053 = vmatpush3.bf16.msra.mxu0 %v6050_v36  ;;  %v690_v16 = vpop.permute.xlu0 %689  ;;  %v693_v19 = vpop.permute.xlu1 %692  ;;  %v637_v36 = vshrl.u32 %v636_v34, 7 }
  0x9e   : > { %6055 = vmatprep.subr.bf16.mxu0 %v6054_v38  ;;  %v6154_v21 = vpack.c.bf16 %v690_v16, %v7246_v0  ;;  %v6158_v24 = vpack.c.bf16 %v7260_v2, %v693_v19 }
  0x9f   : > { %v7600_v37 = vsub.s32 %v635_v35, %v637_v36 }
  0xa1   : > { %6057 = vmatpush3.bf16.msra.mxu0 %v6054_v38  ;;  %v698_v22 = vpop.permute.xlu0 %697  ;;  %v701_v25 = vpop.permute.xlu1 %700 }
  0xa2   : > { %4746 = vmatprep.subr.mxu0 %v252_v39  ;;  %v6162_v0 = vpack.c.bf16 %v701_v25, %v698_v22  ;;  %v7704_v22 = vld [vmem:[%s7243_s10 + $0x30] sm:$0xff] }
  0xa3   : > { %2046 = vrot.lane.b32.xlu0 %v7704_v22, %s7133_s11  ;;  %2049 = vrot.lane.b32.xlu1 %v7704_v22, %s7134_s20 }
  0xa5   : > { %4747 = vmatpush3.msra.mxu0 %v252_v39  ;;  %v709_v27 = vpop.permute.xlu0 %708  ;;  %v712_v30 = vpop.permute.xlu1 %711 }
  0xa6   : > { %4749 = vmatmul.mubr.msk.f32.vlgmr.msra.gmra.mrb[0].mxu0 %vm254_vm0, %v7383_v40  ;;  %6106 = vmatprep.subr.bf16.mxu0 %v7135_v9  ;;  %v6166_v28 = vpack.c.bf16 %v709_v27, %v7307_v13 }
  0xa7   : > { %4751 = vmatprep.mubr.msk.f32.mxu0 %vm254_vm0, %v7388_v41  ;;  %6108 = vmatpush3.bf16.msra.mxu0 %v7286_v7 }
  0xa8   : > { %6109 = vmatprep.subr.bf16.mxu0 %v7135_v9  ;;  %2473 = vrot.lane.b32.xlu0 %v7586_v31, %s7133_s11 }
  0xa9   : > { %v1136_v1 = vpop.permute.xlu0 %1135  ;;  %v1139_v4 = vpop.permute.xlu1 %1138  ;;  %2476 = vrot.lane.b32.xlu1 %v7586_v31, %s7134_s20 }
  0xaa   : > { %4752 = vmatmul.mubr.msk.f32.gmra.mrb[2].mxu0 %vm254_vm0, %v7398_v42  ;;  %v6266_v6 = vpack.c.bf16 %v1136_v1, %v7260_v2  ;;  %v6270_v12 = vpack.c.bf16 %v7307_v13, %v1139_v4 }
  0xab   : > { %6111 = vmatpush3.bf16.msra.mxu0 %v7293_v10  ;;  %4856 = vmatprep.mubr.msk.f32.mxu0 %vm7136_vm1, %v7137_v43 }
  0xac   : > { %6112 = vmatprep.subr.bf16.mxu0 %v7135_v9  ;;  %2481 = vrot.lane.b32.xlu0 %v7704_v22, %s7133_s11 }
  0xad   : > { %v1144_v8 = vpop.permute.xlu0 %1143  ;;  %v1147_v15 = vpop.permute.xlu1 %1146  ;;  %2484 = vrot.lane.b32.xlu1 %v7704_v22, %s7134_s20 }
  0xae   : > { %v6274_v2 = vpack.c.bf16 %v1147_v15, %v1144_v8 }
  0xaf   : > { %6114 = vmatpush3.bf16.msra.mxu0 %v7310_v14 }
  0xb0   : > { %6115 = vmatprep.subr.bf16.mxu0 %v7135_v9 }
  0xb1   : > { %v1155_v16 = vpop.permute.xlu0 %1154 }
  0xb2   : > { %v6278_v19 = vpack.c.bf16 %v1155_v16, %v7423_v44 }
  0xb3   : > { %6117 = vmatpush3.bf16.msra.mxu0 %v7324_v17 }
  0xb4   : > { %6118 = vmatprep.subr.bf16.mxu0 %v7135_v9 }
  0xb7   : > { %6120 = vmatpush3.bf16.msra.mxu0 %v7338_v20 }
  0xb8   : > { %6121 = vmatprep.subr.bf16.mxu0 %v7135_v9 }
  0xbb   : > { %6123 = vmatpush3.bf16.msra.mxu0 %v7352_v23 }
  0xbc   : > { %6124 = vmatprep.subr.bf16.mxu0 %v7135_v9 }
  0xbf   : > { %6126 = vmatpush3.bf16.msra.mxu0 %v7362_v26 }
  0xc0   : > { %6127 = vmatprep.subr.bf16.mxu0 %v7135_v9 }
  0xc3   : > { %6129 = vmatpush3.bf16.msra.mxu0 %v7372_v29 }
  0xc4   : > { %6130 = vmatprep.subr.bf16.mxu0 %v7135_v9 }
 0x179   : > { %v4750_v50 = vpop.f32.mrb[0].mxu0 }
 0x17a   : > { %v333_v51 = vpop.f32.mrb[1].mxu0  ;;  %4787 = vmatmul.mubr.f32.vlgmr.msra.gmra.mrb[0].mxu1 %v4750_v50 }
 0x17b   : > { %6084 = vmatpush3.bf16.msra.mxu1 %v7443_v47  ;;  %4821 = vmatprep.mubr.msk.f32.mxu1 %vm7136_vm1, %v7137_v43 }
 0x17c   : > { %6085 = vmatprep.subr.bf16.mxu1 %v7135_v9 }
 0x17d   : > { %v4753_v55 = vpop.f32.mrb[2].mxu0 }
 0x17e   : > { %4857 = vmatmul.mubr.f32.vlgmr.msra.gmra.mrb[4].mxu0 %v4753_v55  ;;  %v343_v56 = vpop.f32.mrb[3].mxu0 }
 0x17f   : > { %6087 = vmatpush3.bf16.msra.mxu1 %v7452_v52  ;;  %6132 = vmatpush3.bf16.msra.mxu0 %v7443_v47 }
 0x180   : > { %6088 = vmatprep.subr.bf16.mxu1 %v7135_v9  ;;  %6133 = vmatprep.subr.bf16.mxu0 %v7135_v9 }
 0x181   : > { %4891 = vmatprep.mubr.msk.f32.mxu0 %vm7136_vm1, %v7137_v43 }
 0x183   : > { %6090 = vmatpush3.bf16.msra.mxu1 %v7464_v57  ;;  %6135 = vmatpush3.bf16.msra.mxu0 %v7452_v52 }
 0x184   : > { %6091 = vmatprep.subr.bf16.mxu1 %v7135_v9  ;;  %6136 = vmatprep.subr.bf16.mxu0 %v7135_v9 }
 0x187   : > { %6093 = vmatpush3.bf16.msra.mxu1 %v7478_v60  ;;  %6138 = vmatpush3.bf16.msra.mxu0 %v7464_v57 }
 0x188   : > { %6094 = vmatprep.subr.bf16.mxu1 %v7135_v9  ;;  %6139 = vmatprep.subr.bf16.mxu0 %v7135_v9 }
 0x18b   : > { %6096 = vmatpush3.bf16.msra.mxu1 %v7490_v63  ;;  %6141 = vmatpush3.bf16.msra.mxu0 %v7478_v60 }
 0x18c   : > { %6097 = vmatprep.subr.bf16.mxu1 %v7135_v9  ;;  %6142 = vmatprep.subr.bf16.mxu0 %v7135_v9 }
 0x18f   : > { %6099 = vmatpush3.bf16.msra.mxu1 %v7502_v5  ;;  %6144 = vmatpush3.bf16.msra.mxu0 %v7490_v63 }
 0x190   : > { %6100 = vmatprep.subr.bf16.mxu1 %v7135_v9  ;;  %6145 = vmatprep.subr.bf16.mxu0 %v7135_v9 }
 0x193   : > { %6102 = vmatpush3.bf16.msra.mxu1 %v7514_v11  ;;  %6147 = vmatpush3.bf16.msra.mxu0 %v7502_v5 }
 0x194   : > { %6103 = vmatprep.subr.bf16.mxu1 %v7135_v9  ;;  %6148 = vmatprep.subr.bf16.mxu0 %v7135_v9 }
 0x197   : > { %6105 = vmatpush3.bf16.msra.mxu1 %v7526_v18  ;;  %6150 = vmatpush3.bf16.msra.mxu0 %v7514_v11 }
 0x198   : > { %6155 = vmatprep.subr.bf16.mxu1 %v6154_v21  ;;  %6151 = vmatprep.subr.bf16.mxu0 %v7135_v9 }
 0x19a   : > { %4822 = vmatmul.mubr.f32.vlgmr.msra.gmra.mrb[0].mxu1 %v333_v51 }
 0x19b   : > { %6157 = vmatpush3.bf16.msra.mxu1 %v6154_v21  ;;  %4912 = vmatprep.mubr.msk.f32.mxu1 %vm254_vm0, %v7265_v3  ;;  %v1158_v21 = vpop.permute.xlu1 %1157 }
 0x19c   : > { %6159 = vmatprep.subr.bf16.mxu1 %v6158_v24  ;;  %6153 = vmatpush3.bf16.msra.mxu0 %v7526_v18 }
 0x19d   : > { %6170 = vmatprep.subr.bf16.mxu0 %v7135_v9 }
 0x19f   : > { %6161 = vmatpush3.bf16.msra.mxu1 %v6158_v24  ;;  %4892 = vmatmul.mubr.f32.vlgmr.msra.gmra.mrb[4].mxu0 %v343_v56 }
 0x1a0   : > { %6163 = vmatprep.subr.bf16.mxu1 %v6162_v0  ;;  %6172 = vmatpush3.bf16.msra.mxu0 %v7286_v7 }
 0x1a1   : > { %6173 = vmatprep.subr.bf16.mxu0 %v7135_v9  ;;  %4950 = vmatprep.mubr.msk.f32.mxu0 %vm7136_vm1, %v7137_v43 }
 0x1a3   : > { %6165 = vmatpush3.bf16.msra.mxu1 %v6162_v0 }
 0x1a4   : > { %6167 = vmatprep.subr.bf16.mxu1 %v6166_v28  ;;  %6175 = vmatpush3.bf16.msra.mxu0 %v7293_v10 }
 0x1a5   : > { %6176 = vmatprep.subr.bf16.mxu0 %v7135_v9 }
 0x1a7   : > { %6169 = vmatpush3.bf16.msra.mxu1 %v6166_v28 }
 0x1a8   : > { %4910 = vmatprep.subr.mxu1 %v712_v30  ;;  %6178 = vmatpush3.bf16.msra.mxu0 %v7310_v14 }
 0x1a9   : > { %6179 = vmatprep.subr.bf16.mxu0 %v7135_v9 }
 0x1ab   : > { %4911 = vmatpush3.msra.mxu1 %v712_v30 }
 0x1ac   : > { %4913 = vmatmul.mubr.msk.f32.vlgmr.msra.gmra.mrb[2].mxu1 %vm254_vm0, %v7383_v40  ;;  %6181 = vmatpush3.bf16.msra.mxu0 %v7324_v17 }
 0x1ad   : > { %4915 = vmatprep.mubr.msk.f32.mxu1 %vm254_vm0, %v7388_v41  ;;  %6182 = vmatprep.subr.bf16.mxu0 %v7135_v9 }
 0x1ae   : > { %6218 = vmatprep.subr.bf16.mxu1 %v7135_v9 }
 0x1af   : > { %6220 = vmatpush3.bf16.msra.mxu1 %v7286_v7 }
 0x1b0   : > { %4916 = vmatmul.mubr.msk.f32.gmra.mrb[4].mxu1 %vm254_vm0, %v7398_v42  ;;  %6184 = vmatpush3.bf16.msra.mxu0 %v7338_v20 }
 0x1b1   : > { %6185 = vmatprep.subr.bf16.mxu0 %v7135_v9  ;;  %6221 = vmatprep.subr.bf16.mxu1 %v7135_v9 }
 0x1b2   : > { %5020 = vmatprep.mubr.msk.f32.mxu1 %vm7136_vm1, %v7137_v43 }
 0x1b3   : > { %6223 = vmatpush3.bf16.msra.mxu1 %v7293_v10 }
 0x1b4   : > { %6187 = vmatpush3.bf16.msra.mxu0 %v7352_v23  ;;  %6224 = vmatprep.subr.bf16.mxu1 %v7135_v9 }
 0x1b5   : > { %6188 = vmatprep.subr.bf16.mxu0 %v7135_v9 }
 0x1b7   : > { %6226 = vmatpush3.bf16.msra.mxu1 %v7310_v14 }
 0x1b8   : > { %6190 = vmatpush3.bf16.msra.mxu0 %v7362_v26  ;;  %6227 = vmatprep.subr.bf16.mxu1 %v7135_v9 }
 0x1b9   : > { %6191 = vmatprep.subr.bf16.mxu0 %v7135_v9 }
 0x1bb   : > { %6229 = vmatpush3.bf16.msra.mxu1 %v7324_v17 }
 0x1bc   : > { %6193 = vmatpush3.bf16.msra.mxu0 %v7372_v29  ;;  %6230 = vmatprep.subr.bf16.mxu1 %v7135_v9 }
 0x1bd   : > { %6194 = vmatprep.subr.bf16.mxu0 %v7135_v9 }
 0x1bf   : > { %6232 = vmatpush3.bf16.msra.mxu1 %v7338_v20 }
 0x1c0   : > { %6233 = vmatprep.subr.bf16.mxu1 %v7135_v9 }
 0x1c3   : > { %6235 = vmatpush3.bf16.msra.mxu1 %v7352_v23 }
 0x1c4   : > { %6236 = vmatprep.subr.bf16.mxu1 %v7135_v9 }
 0x1c7   : > { %6238 = vmatpush3.bf16.msra.mxu1 %v7362_v26 }
 0x1c8   : > { %6239 = vmatprep.subr.bf16.mxu1 %v7135_v9 }
 0x1cb   : > { %6241 = vmatpush3.bf16.msra.mxu1 %v7372_v29 }
 0x1cc   : > { %6242 = vmatprep.subr.bf16.mxu1 %v7135_v9 }
 0x26d   : > { %v488_v38 = vpop.f32.mrb[0].mxu1 }
 0x26e   : > { %v639_v39 = vrot.slane %v488_v38, %v7600_v37  ;;  %v4823_v45 = vpop.f32.mrb[1].mxu1 }
 0x270   : > { %v640_v46 = vcombine.high %v639_v39, %v639_v39  ;;  %v647_v48 = vrot.slane %v639_v39, %v7600_v37 }
 0x272   : > { %v654_v49 = vrot.slane %v640_v46, %v7600_v37  ;;  %658 = vst.msk [vmem:[%s7607_s7] sm:$0x1] %vm657_vm2, %v647_v48  ;;  %v628_v50 = vpop.f32.mrb[4].mxu0 }
 0x273   : > { %v667_v51 = vrot.slane %v628_v50, %v7600_v37  ;;  %v4893_v53 = vpop.f32.mrb[5].mxu0  ;;  %v1585_v50 = vpop.permute.xlu1 %1584 }
 0x274   : > { %659 = vst.msk [vmem:[%s7607_s7 + $0x10] sm:$0x1] %vm657_vm2, %v654_v49  ;;  %v1582_v49 = vpop.permute.xlu0 %1581 }
 0x275   : > { %v668_v54 = vcombine.high %v667_v51, %v667_v51  ;;  %v675_v55 = vrot.slane %v667_v51, %v7600_v37  ;;  %v6378_v51 = vpack.c.bf16 %v1582_v49, %v7307_v13 }
 0x277   : > { %v682_v56 = vrot.slane %v668_v54, %v7600_v37  ;;  %685 = vst.msk [vmem:[%s7607_s7 + $0x1] sm:$0x1] %vm657_vm2, %v675_v55  ;;  %v6382_v54 = vpack.c.bf16 %v7423_v44, %v1585_v50  ;;  %v1593_v55 = vpop.permute.xlu1 %1592 }
 0x278   : > { %v1590_v53 = vpop.permute.xlu0 %1589 }
 0x279   : > { %686 = vst.msk [vmem:[%s7607_s7 + $0x11] sm:$0x1] %vm657_vm2, %v682_v56  ;;  %v6386_v13 = vpack.c.bf16 %v1593_v55, %v1590_v53 }
 0x27c   : > { %v1601_v56 = vpop.permute.xlu0 %1600 }
 0x27f   : > { %v4914_v58 = vpop.f32.mrb[2].mxu1 }
 0x280   : > { %v780_v59 = vpop.f32.mrb[3].mxu1  ;;  %4951 = vmatmul.mubr.f32.vlgmr.msra.gmra.mrb[6].mxu0 %v4914_v58  ;;  %v6390_v58 = vpack.c.bf16 %v1601_v56, %v7586_v31 }
 0x281   : > { %6196 = vmatpush3.bf16.msra.mxu0 %v7443_v47  ;;  %4985 = vmatprep.mubr.msk.f32.mxu0 %vm7136_vm1, %v7137_v43 }
 0x282   : > { %6197 = vmatprep.subr.bf16.mxu0 %v7135_v9 }
 0x283   : > { %v4917_v61 = vpop.f32.mrb[4].mxu1 }
 0x284   : > { %5021 = vmatmul.mubr.f32.vlgmr.msra.gmra.mrb[6].mxu1 %v4917_v61  ;;  %v790_v62 = vpop.f32.mrb[5].mxu1 }
 0x285   : > { %6199 = vmatpush3.bf16.msra.mxu0 %v7452_v52  ;;  %6244 = vmatpush3.bf16.msra.mxu1 %v7443_v47 }
 0x286   : > { %6200 = vmatprep.subr.bf16.mxu0 %v7135_v9  ;;  %6245 = vmatprep.subr.bf16.mxu1 %v7135_v9 }
 0x287   : > { %5055 = vmatprep.mubr.msk.f32.mxu1 %vm7136_vm1, %v7137_v43 }
 0x289   : > { %6202 = vmatpush3.bf16.msra.mxu0 %v7464_v57  ;;  %6247 = vmatpush3.bf16.msra.mxu1 %v7452_v52 }
 0x28a   : > { %6203 = vmatprep.subr.bf16.mxu0 %v7135_v9  ;;  %6248 = vmatprep.subr.bf16.mxu1 %v7135_v9 }
 0x28d   : > { %6205 = vmatpush3.bf16.msra.mxu0 %v7478_v60  ;;  %6250 = vmatpush3.bf16.msra.mxu1 %v7464_v57 }
 0x28e   : > { %6206 = vmatprep.subr.bf16.mxu0 %v7135_v9  ;;  %6251 = vmatprep.subr.bf16.mxu1 %v7135_v9 }
 0x291   : > { %6208 = vmatpush3.bf16.msra.mxu0 %v7490_v63  ;;  %6253 = vmatpush3.bf16.msra.mxu1 %v7478_v60 }
 0x292   : > { %6209 = vmatprep.subr.bf16.mxu0 %v7135_v9  ;;  %6254 = vmatprep.subr.bf16.mxu1 %v7135_v9 }
 0x295   : > { %6211 = vmatpush3.bf16.msra.mxu0 %v7502_v5  ;;  %6256 = vmatpush3.bf16.msra.mxu1 %v7490_v63 }
 0x296   : > { %6212 = vmatprep.subr.bf16.mxu0 %v7135_v9  ;;  %6257 = vmatprep.subr.bf16.mxu1 %v7135_v9 }
 0x299   : > { %6214 = vmatpush3.bf16.msra.mxu0 %v7514_v11  ;;  %6259 = vmatpush3.bf16.msra.mxu1 %v7502_v5 }
 0x29a   : > { %6215 = vmatprep.subr.bf16.mxu0 %v7135_v9  ;;  %6260 = vmatprep.subr.bf16.mxu1 %v7135_v9 }
 0x29d   : > { %6217 = vmatpush3.bf16.msra.mxu0 %v7526_v18  ;;  %6262 = vmatpush3.bf16.msra.mxu1 %v7514_v11 }
 0x29e   : > { %6267 = vmatprep.subr.bf16.mxu0 %v6266_v6  ;;  %6263 = vmatprep.subr.bf16.mxu1 %v7135_v9 }
 0x2a0   : > { %4986 = vmatmul.mubr.f32.vlgmr.msra.gmra.mrb[6].mxu0 %v780_v59  ;;  %v7816_v59 = vld [vmem:[%s7243_s10 + $0x38] sm:$0xff] }
 0x2a1   : > { %6269 = vmatpush3.bf16.msra.mxu0 %v6266_v6  ;;  %5076 = vmatprep.mubr.msk.f32.mxu0 %vm254_vm0, %v7265_v3 }
 0x2a2   : > { %6271 = vmatprep.subr.bf16.mxu0 %v6270_v12  ;;  %6265 = vmatpush3.bf16.msra.mxu1 %v7526_v18 }
 0x2a3   : > { %6282 = vmatprep.subr.bf16.mxu1 %v7135_v9  ;;  %2492 = vrot.lane.b32.xlu0 %v7816_v59, %s7133_s11 }
 0x2a4   : > { %2495 = vrot.lane.b32.xlu1 %v7816_v59, %s7134_s20 }
 0x2a5   : > { %6273 = vmatpush3.bf16.msra.mxu0 %v6270_v12  ;;  %5056 = vmatmul.mubr.f32.vlgmr.msra.gmra.mrb[6].mxu1 %v790_v62 }
 0x2a6   : > { %6275 = vmatprep.subr.bf16.mxu0 %v6274_v2  ;;  %6284 = vmatpush3.bf16.msra.mxu1 %v7286_v7 }
 0x2a7   : > { %6285 = vmatprep.subr.bf16.mxu1 %v7135_v9  ;;  %5114 = vmatprep.mubr.msk.f32.mxu1 %vm7136_vm1, %v7137_v43 }
 0x2a8   : > { %2919 = vrot.lane.b32.xlu0 %v7704_v22, %s7133_s11  ;;  %2922 = vrot.lane.b32.xlu1 %v7704_v22, %s7134_s20 }
 0x2a9   : > { %6277 = vmatpush3.bf16.msra.mxu0 %v6274_v2 }
 0x2aa   : > { %6279 = vmatprep.subr.bf16.mxu0 %v6278_v19  ;;  %6287 = vmatpush3.bf16.msra.mxu1 %v7293_v10 }
 0x2ab   : > { %6288 = vmatprep.subr.bf16.mxu1 %v7135_v9 }
 0x2ac   : > { %2930 = vrot.lane.b32.xlu1 %v7816_v59, %s7134_s20  ;;  %2927 = vrot.lane.b32.xlu0 %v7816_v59, %s7133_s11 }
 0x2ad   : > { %6281 = vmatpush3.bf16.msra.mxu0 %v6278_v19 }
 0x2ae   : > { %5074 = vmatprep.subr.mxu0 %v1158_v21  ;;  %6290 = vmatpush3.bf16.msra.mxu1 %v7310_v14 }
 0x2af   : > { %6291 = vmatprep.subr.bf16.mxu1 %v7135_v9 }
 0x2b1   : > { %5075 = vmatpush3.msra.mxu0 %v1158_v21 }
 0x2b2   : > { %5077 = vmatmul.mubr.msk.f32.vlgmr.msra.gmra.mrb[8].mxu0 %vm254_vm0, %v7383_v40  ;;  %6293 = vmatpush3.bf16.msra.mxu1 %v7324_v17 }
 0x2b3   : > { %5079 = vmatprep.mubr.msk.f32.mxu0 %vm254_vm0, %v7388_v41  ;;  %6294 = vmatprep.subr.bf16.mxu1 %v7135_v9 }
 0x2b4   : > { %6330 = vmatprep.subr.bf16.mxu0 %v7135_v9 }
 0x2b5   : > { %6332 = vmatpush3.bf16.msra.mxu0 %v7286_v7 }
 0x2b6   : > { %5080 = vmatmul.mubr.msk.f32.gmra.mrb[10].mxu0 %vm254_vm0, %v7398_v42  ;;  %6296 = vmatpush3.bf16.msra.mxu1 %v7338_v20 }
 0x2b7   : > { %6297 = vmatprep.subr.bf16.mxu1 %v7135_v9  ;;  %6333 = vmatprep.subr.bf16.mxu0 %v7135_v9 }
 0x2b8   : > { %5184 = vmatprep.mubr.msk.f32.mxu0 %vm7136_vm1, %v7137_v43 }
 0x2b9   : > { %6335 = vmatpush3.bf16.msra.mxu0 %v7293_v10 }
 0x2ba   : > { %6299 = vmatpush3.bf16.msra.mxu1 %v7352_v23  ;;  %6336 = vmatprep.subr.bf16.mxu0 %v7135_v9 }
 0x2bb   : > { %6300 = vmatprep.subr.bf16.mxu1 %v7135_v9 }
 0x2bd   : > { %6338 = vmatpush3.bf16.msra.mxu0 %v7310_v14 }
 0x2be   : > { %6302 = vmatpush3.bf16.msra.mxu1 %v7362_v26  ;;  %6339 = vmatprep.subr.bf16.mxu0 %v7135_v9 }
 0x2bf   : > { %6303 = vmatprep.subr.bf16.mxu1 %v7135_v9 }
 0x2c1   : > { %6341 = vmatpush3.bf16.msra.mxu0 %v7324_v17 }
 0x2c2   : > { %6305 = vmatpush3.bf16.msra.mxu1 %v7372_v29  ;;  %6342 = vmatprep.subr.bf16.mxu0 %v7135_v9 }
 0x2c3   : > { %6306 = vmatprep.subr.bf16.mxu1 %v7135_v9 }
 0x2c5   : > { %6344 = vmatpush3.bf16.msra.mxu0 %v7338_v20 }
 0x2c6   : > { %6345 = vmatprep.subr.bf16.mxu0 %v7135_v9 }
 0x2c9   : > { %6347 = vmatpush3.bf16.msra.mxu0 %v7352_v23 }
 0x2ca   : > { %6348 = vmatprep.subr.bf16.mxu0 %v7135_v9 }
 0x2cd   : > { %6350 = vmatpush3.bf16.msra.mxu0 %v7362_v26 }
 0x2ce   : > { %6351 = vmatprep.subr.bf16.mxu0 %v7135_v9 }
 0x2d1   : > { %6353 = vmatpush3.bf16.msra.mxu0 %v7372_v29 }
 0x2d2   : > { %6354 = vmatprep.subr.bf16.mxu0 %v7135_v9 }
 0x373   : > { %v935_v24 = vpop.f32.mrb[6].mxu0 }
 0x374   : > { %v1086_v25 = vrot.slane %v935_v24, %v7600_v37  ;;  %v4987_v0 = vpop.f32.mrb[7].mxu0 }
 0x376   : > { %v1087_v27 = vcombine.high %v1086_v25, %v1086_v25  ;;  %v1094_v28 = vrot.slane %v1086_v25, %v7600_v37 }
 0x378   : > { %v1101_v30 = vrot.slane %v1087_v27, %v7600_v37  ;;  %1104 = vst.msk [vmem:[%s7607_s7 + $0x2] sm:$0x1] %vm657_vm2, %v1094_v28  ;;  %v1075_v32 = vpop.f32.mrb[6].mxu1  ;;  %v2028_v28 = vpop.permute.xlu0 %2027 }
 0x379   : > { %v1113_v33 = vrot.slane %v1075_v32, %v7600_v37  ;;  %v5057_v34 = vpop.f32.mrb[7].mxu1  ;;  %v6490_v32 = vpack.c.bf16 %v2028_v28, %v7423_v44 }
 0x37a   : > { %1105 = vst.msk [vmem:[%s7607_s7 + $0x12] sm:$0x1] %vm657_vm2, %v1101_v30 }
 0x37b   : > { %v1114_v35 = vcombine.high %v1113_v33, %v1113_v33  ;;  %v1121_v36 = vrot.slane %v1113_v33, %v7600_v37 }
 0x37c   : > { %v2036_v33 = vpop.permute.xlu0 %2035 }
 0x37d   : > { %v1128_v38 = vrot.slane %v1114_v35, %v7600_v37  ;;  %1131 = vst.msk [vmem:[%s7607_s7 + $0x3] sm:$0x1] %vm657_vm2, %v1121_v36  ;;  %v7882_v36 = vld [vmem:[%s8373_s1] sm:$0xff] }
 0x37f   : > { %1132 = vst.msk [vmem:[%s7607_s7 + $0x13] sm:$0x1] %vm657_vm2, %v1128_v38 }
 0x380   : > { %v2047_v38 = vpop.permute.xlu0 %2046 }
 0x385   : > { %v5078_v39 = vpop.f32.mrb[8].mxu0 }
 0x386   : > { %v1226_v45 = vpop.f32.mrb[9].mxu0  ;;  %5115 = vmatmul.mubr.f32.vlgmr.msra.gmra.mrb[8].mxu1 %v5078_v39  ;;  %v6502_v39 = vpack.c.bf16 %v2047_v38, %v7704_v22 }
 0x387   : > { %6308 = vmatpush3.bf16.msra.mxu1 %v7443_v47  ;;  %5149 = vmatprep.mubr.msk.f32.mxu1 %vm7136_vm1, %v7137_v43 }
 0x388   : > { %6309 = vmatprep.subr.bf16.mxu1 %v7135_v9 }
 0x389   : > { %v5081_v46 = vpop.f32.mrb[10].mxu0 }
 0x38a   : > { %5185 = vmatmul.mubr.f32.vlgmr.msra.gmra.mrb[12].mxu0 %v5081_v46  ;;  %v1236_v48 = vpop.f32.mrb[11].mxu0 }
 0x38b   : > { %6311 = vmatpush3.bf16.msra.mxu1 %v7452_v52  ;;  %6356 = vmatpush3.bf16.msra.mxu0 %v7443_v47 }
 0x38c   : > { %6312 = vmatprep.subr.bf16.mxu1 %v7135_v9  ;;  %6357 = vmatprep.subr.bf16.mxu0 %v7135_v9 }
 0x38d   : > { %5219 = vmatprep.mubr.msk.f32.mxu0 %vm7136_vm1, %v7137_v43 }
 0x38f   : > { %6314 = vmatpush3.bf16.msra.mxu1 %v7464_v57  ;;  %6359 = vmatpush3.bf16.msra.mxu0 %v7452_v52 }
 0x390   : > { %6315 = vmatprep.subr.bf16.mxu1 %v7135_v9  ;;  %6360 = vmatprep.subr.bf16.mxu0 %v7135_v9 }
 0x393   : > { %6317 = vmatpush3.bf16.msra.mxu1 %v7478_v60  ;;  %6362 = vmatpush3.bf16.msra.mxu0 %v7464_v57 }
 0x394   : > { %6318 = vmatprep.subr.bf16.mxu1 %v7135_v9  ;;  %6363 = vmatprep.subr.bf16.mxu0 %v7135_v9 }
 0x397   : > { %6320 = vmatpush3.bf16.msra.mxu1 %v7490_v63  ;;  %6365 = vmatpush3.bf16.msra.mxu0 %v7478_v60 }
 0x398   : > { %6321 = vmatprep.subr.bf16.mxu1 %v7135_v9  ;;  %6366 = vmatprep.subr.bf16.mxu0 %v7135_v9 }
 0x39b   : > { %6323 = vmatpush3.bf16.msra.mxu1 %v7502_v5  ;;  %6368 = vmatpush3.bf16.msra.mxu0 %v7490_v63 }
 0x39c   : > { %6324 = vmatprep.subr.bf16.mxu1 %v7135_v9  ;;  %6369 = vmatprep.subr.bf16.mxu0 %v7135_v9 }
 0x39f   : > { %6326 = vmatpush3.bf16.msra.mxu1 %v7514_v11  ;;  %6371 = vmatpush3.bf16.msra.mxu0 %v7502_v5 }
 0x3a0   : > { %6327 = vmatprep.subr.bf16.mxu1 %v7135_v9  ;;  %6372 = vmatprep.subr.bf16.mxu0 %v7135_v9 }
 0x3a3   : > { %6329 = vmatpush3.bf16.msra.mxu1 %v7526_v18  ;;  %6374 = vmatpush3.bf16.msra.mxu0 %v7514_v11 }
 0x3a4   : > { %6379 = vmatprep.subr.bf16.mxu1 %v6378_v51  ;;  %6375 = vmatprep.subr.bf16.mxu0 %v7135_v9 }
 0x3a6   : > { %5150 = vmatmul.mubr.f32.vlgmr.msra.gmra.mrb[8].mxu1 %v1226_v45 }
 0x3a7   : > { %6381 = vmatpush3.bf16.msra.mxu1 %v6378_v51  ;;  %5240 = vmatprep.mubr.msk.f32.mxu1 %vm254_vm0, %v7265_v3  ;;  %v1604_v3 = vpop.permute.xlu1 %1603 }
 0x3a8   : > { %6383 = vmatprep.subr.bf16.mxu1 %v6382_v54  ;;  %6377 = vmatpush3.bf16.msra.mxu0 %v7526_v18 }
 0x3a9   : > { %6394 = vmatprep.subr.bf16.mxu0 %v7135_v9 }
 0x3ab   : > { %6385 = vmatpush3.bf16.msra.mxu1 %v6382_v54  ;;  %5220 = vmatmul.mubr.f32.vlgmr.msra.gmra.mrb[12].mxu0 %v1236_v48  ;;  %v2031_v30 = vpop.permute.xlu1 %2030 }
 0x3ac   : > { %6387 = vmatprep.subr.bf16.mxu1 %v6386_v13  ;;  %6396 = vmatpush3.bf16.msra.mxu0 %v7286_v7  ;;  %v6494_v34 = vpack.c.bf16 %v7586_v31, %v2031_v30 }
 0x3ad   : > { %6397 = vmatprep.subr.bf16.mxu0 %v7135_v9  ;;  %5278 = vmatprep.mubr.msk.f32.mxu0 %vm7136_vm1, %v7137_v43 }
 0x3af   : > { %6389 = vmatpush3.bf16.msra.mxu1 %v6386_v13  ;;  %v2039_v35 = vpop.permute.xlu1 %2038 }
 0x3b0   : > { %6391 = vmatprep.subr.bf16.mxu1 %v6390_v58  ;;  %6399 = vmatpush3.bf16.msra.mxu0 %v7293_v10  ;;  %v6498_v44 = vpack.c.bf16 %v2039_v35, %v2036_v33 }
 0x3b1   : > { %6400 = vmatprep.subr.bf16.mxu0 %v7135_v9 }
 0x3b3   : > { %6393 = vmatpush3.bf16.msra.mxu1 %v6390_v58  ;;  %v2050_v45 = vpop.permute.xlu1 %2049 }
 0x3b4   : > { %5238 = vmatprep.subr.mxu1 %v1604_v3  ;;  %6402 = vmatpush3.bf16.msra.mxu0 %v7310_v14 }
 0x3b5   : > { %6403 = vmatprep.subr.bf16.mxu0 %v7135_v9 }
 0x3b7   : > { %5239 = vmatpush3.msra.mxu1 %v1604_v3 }
 0x3b8   : > { %5241 = vmatmul.mubr.msk.f32.vlgmr.msra.gmra.mrb[10].mxu1 %vm254_vm0, %v7383_v40  ;;  %6405 = vmatpush3.bf16.msra.mxu0 %v7324_v17 }
 0x3b9   : > { %5243 = vmatprep.mubr.msk.f32.mxu1 %vm254_vm0, %v7388_v41  ;;  %6406 = vmatprep.subr.bf16.mxu0 %v7135_v9 }
 0x3ba   : > { %6442 = vmatprep.subr.bf16.mxu1 %v7135_v9 }
 0x3bb   : > { %6444 = vmatpush3.bf16.msra.mxu1 %v7286_v7 }
 0x3bc   : > { %5244 = vmatmul.mubr.msk.f32.gmra.mrb[12].mxu1 %vm254_vm0, %v7398_v42  ;;  %6408 = vmatpush3.bf16.msra.mxu0 %v7338_v20 }
 0x3bd   : > { %6409 = vmatprep.subr.bf16.mxu0 %v7135_v9  ;;  %6445 = vmatprep.subr.bf16.mxu1 %v7135_v9 }
 0x3be   : > { %5348 = vmatprep.mubr.msk.f32.mxu1 %vm7136_vm1, %v7137_v43 }
 0x3bf   : > { %6447 = vmatpush3.bf16.msra.mxu1 %v7293_v10 }
 0x3c0   : > { %6411 = vmatpush3.bf16.msra.mxu0 %v7352_v23  ;;  %6448 = vmatprep.subr.bf16.mxu1 %v7135_v9 }
 0x3c1   : > { %6412 = vmatprep.subr.bf16.mxu0 %v7135_v9 }
 0x3c3   : > { %6450 = vmatpush3.bf16.msra.mxu1 %v7310_v14 }
 0x3c4   : > { %6414 = vmatpush3.bf16.msra.mxu0 %v7362_v26  ;;  %6451 = vmatprep.subr.bf16.mxu1 %v7135_v9 }
 0x3c5   : > { %6415 = vmatprep.subr.bf16.mxu0 %v7135_v9 }
 0x3c7   : > { %6453 = vmatpush3.bf16.msra.mxu1 %v7324_v17 }
 0x3c8   : > { %6417 = vmatpush3.bf16.msra.mxu0 %v7372_v29  ;;  %6454 = vmatprep.subr.bf16.mxu1 %v7135_v9 }
 0x3c9   : > { %6418 = vmatprep.subr.bf16.mxu0 %v7135_v9 }
 0x3cb   : > { %6456 = vmatpush3.bf16.msra.mxu1 %v7338_v20 }
 0x3cc   : > { %6457 = vmatprep.subr.bf16.mxu1 %v7135_v9 }
 0x3cf   : > { %6459 = vmatpush3.bf16.msra.mxu1 %v7352_v23 }
 0x3d0   : > { %6460 = vmatprep.subr.bf16.mxu1 %v7135_v9 }
 0x3d3   : > { %6462 = vmatpush3.bf16.msra.mxu1 %v7362_v26 }
 0x3d4   : > { %6463 = vmatprep.subr.bf16.mxu1 %v7135_v9 }
 0x3d7   : > { %6465 = vmatpush3.bf16.msra.mxu1 %v7372_v29 }
 0x3d8   : > { %6466 = vmatprep.subr.bf16.mxu1 %v7135_v9 }
 0x479   : > { %v1381_v61 = vpop.f32.mrb[8].mxu1 }
 0x47a   : > { %v1532_v62 = vrot.slane %v1381_v61, %v7600_v37  ;;  %v5151_v1 = vpop.f32.mrb[9].mxu1 }
 0x47b   : > { %v2474_v1 = vpop.permute.xlu0 %2473 }
 0x47c   : > { %v1533_v4 = vcombine.high %v1532_v62, %v1532_v62  ;;  %v1540_v6 = vrot.slane %v1532_v62, %v7600_v37 }
 0x47e   : > { %v1547_v8 = vrot.slane %v1533_v4, %v7600_v37  ;;  %1550 = vst.msk [vmem:[%s7607_s7 + $0x4] sm:$0x1] %vm657_vm2, %v1540_v6  ;;  %v1521_v12 = vpop.f32.mrb[12].mxu0  ;;  %v2477_v4 = vpop.permute.xlu1 %2476  ;;  %v6602_v6 = vpack.c.bf16 %v2474_v1, %v7586_v31 }
 0x47f   : > { %v1559_v15 = vrot.slane %v1521_v12, %v7600_v37  ;;  %v5221_v2 = vpop.f32.mrb[13].mxu0  ;;  %v6606_v12 = vpack.c.bf16 %v7704_v22, %v2477_v4 }
 0x480   : > { %1551 = vst.msk [vmem:[%s7607_s7 + $0x14] sm:$0x1] %vm657_vm2, %v1547_v8  ;;  %v2482_v8 = vpop.permute.xlu0 %2481 }
 0x481   : > { %v1560_v16 = vcombine.high %v1559_v15, %v1559_v15  ;;  %v1567_v19 = vrot.slane %v1559_v15, %v7600_v37 }
 0x482   : > { %v2485_v15 = vpop.permute.xlu1 %2484 }
 0x483   : > { %v1574_v21 = vrot.slane %v1560_v16, %v7600_v37  ;;  %1577 = vst.msk [vmem:[%s7607_s7 + $0x5] sm:$0x1] %vm657_vm2, %v1567_v19  ;;  %v6610_v31 = vpack.c.bf16 %v2485_v15, %v2482_v8 }
 0x484   : > { %v2493_v2 = vpop.permute.xlu0 %2492 }
 0x485   : > { %1578 = vst.msk [vmem:[%s7607_s7 + $0x15] sm:$0x1] %vm657_vm2, %v1574_v21  ;;  %v6614_v16 = vpack.c.bf16 %v2493_v2, %v7816_v59  ;;  %v8012_v21 = vld [vmem:[%s8373_s1 + $0x8] sm:$0xff] }
 0x486   : > { %v2496_v19 = vpop.permute.xlu1 %2495 }
 0x48b   : > { %v5242_v24 = vpop.f32.mrb[10].mxu1 }
 0x48c   : > { %v1672_v25 = vpop.f32.mrb[11].mxu1  ;;  %5279 = vmatmul.mubr.f32.vlgmr.msra.gmra.mrb[14].mxu0 %v5242_v24  ;;  %v8020_v24 = vld [vmem:[%s8373_s1 + $0x10] sm:$0xff] }
 0x48d   : > { %6420 = vmatpush3.bf16.msra.mxu0 %v7443_v47  ;;  %5313 = vmatprep.mubr.msk.f32.mxu0 %vm7136_vm1, %v7137_v43 }
 0x48e   : > { %6421 = vmatprep.subr.bf16.mxu0 %v7135_v9 }
 0x48f   : > { %v5245_v0 = vpop.f32.mrb[12].mxu1 }
 0x490   : > { %5349 = vmatmul.mubr.f32.vlgmr.msra.gmra.mrb[14].mxu1 %v5245_v0  ;;  %v1682_v27 = vpop.f32.mrb[13].mxu1  ;;  %v8060_v0 = vld [vmem:[%s7243_s10 + $0x48] sm:$0xff] }
 0x491   : > { %6423 = vmatpush3.bf16.msra.mxu0 %v7452_v52  ;;  %6468 = vmatpush3.bf16.msra.mxu1 %v7443_v47 }
 0x492   : > { %6424 = vmatprep.subr.bf16.mxu0 %v7135_v9  ;;  %6469 = vmatprep.subr.bf16.mxu1 %v7135_v9 }
 0x493   : > { %5383 = vmatprep.mubr.msk.f32.mxu1 %vm7136_vm1, %v7137_v43 }
 0x495   : > { %6426 = vmatpush3.bf16.msra.mxu0 %v7464_v57  ;;  %6471 = vmatpush3.bf16.msra.mxu1 %v7452_v52 }
 0x496   : > { %6427 = vmatprep.subr.bf16.mxu0 %v7135_v9  ;;  %6472 = vmatprep.subr.bf16.mxu1 %v7135_v9 }
 0x499   : > { %6429 = vmatpush3.bf16.msra.mxu0 %v7478_v60  ;;  %6474 = vmatpush3.bf16.msra.mxu1 %v7464_v57 }
 0x49a   : > { %6430 = vmatprep.subr.bf16.mxu0 %v7135_v9  ;;  %6475 = vmatprep.subr.bf16.mxu1 %v7135_v9 }
 0x49d   : > { %6432 = vmatpush3.bf16.msra.mxu0 %v7490_v63  ;;  %6477 = vmatpush3.bf16.msra.mxu1 %v7478_v60 }
 0x49e   : > { %6433 = vmatprep.subr.bf16.mxu0 %v7135_v9  ;;  %6478 = vmatprep.subr.bf16.mxu1 %v7135_v9 }
 0x4a1   : > { %6435 = vmatpush3.bf16.msra.mxu0 %v7502_v5  ;;  %6480 = vmatpush3.bf16.msra.mxu1 %v7490_v63 }
 0x4a2   : > { %6436 = vmatprep.subr.bf16.mxu0 %v7135_v9  ;;  %6481 = vmatprep.subr.bf16.mxu1 %v7135_v9 }
 0x4a5   : > { %6438 = vmatpush3.bf16.msra.mxu0 %v7514_v11  ;;  %6483 = vmatpush3.bf16.msra.mxu1 %v7502_v5 }
 0x4a6   : > { %6439 = vmatprep.subr.bf16.mxu0 %v7135_v9  ;;  %6484 = vmatprep.subr.bf16.mxu1 %v7135_v9 }
 0x4a9   : > { %6441 = vmatpush3.bf16.msra.mxu0 %v7526_v18  ;;  %6486 = vmatpush3.bf16.msra.mxu1 %v7514_v11 }
 0x4aa   : > { %6491 = vmatprep.subr.bf16.mxu0 %v6490_v32  ;;  %6487 = vmatprep.subr.bf16.mxu1 %v7135_v9 }
 0x4ac   : > { %5314 = vmatmul.mubr.f32.vlgmr.msra.gmra.mrb[14].mxu0 %v1672_v25  ;;  %v8030_v25 = vld [vmem:[%s8373_s1 + $0x18] sm:$0xff] }
 0x4ad   : > { %6493 = vmatpush3.bf16.msra.mxu0 %v6490_v32  ;;  %5404 = vmatprep.mubr.msk.f32.mxu0 %vm254_vm0, %v7882_v36 }
 0x4ae   : > { %6495 = vmatprep.subr.bf16.mxu0 %v6494_v34  ;;  %6489 = vmatpush3.bf16.msra.mxu1 %v7526_v18 }
 0x4af   : > { %6506 = vmatprep.subr.bf16.mxu1 %v7135_v9 }
 0x4b1   : > { %6497 = vmatpush3.bf16.msra.mxu0 %v6494_v34  ;;  %5384 = vmatmul.mubr.f32.vlgmr.msra.gmra.mrb[14].mxu1 %v1682_v27 }
 0x4b2   : > { %6499 = vmatprep.subr.bf16.mxu0 %v6498_v44  ;;  %6508 = vmatpush3.bf16.msra.mxu1 %v7286_v7 }
 0x4b3   : > { %6509 = vmatprep.subr.bf16.mxu1 %v7135_v9  ;;  %5442 = vmatprep.mubr.msk.f32.mxu1 %vm7136_vm1, %v7137_v43 }
 0x4b5   : > { %6501 = vmatpush3.bf16.msra.mxu0 %v6498_v44 }
 0x4b6   : > { %6503 = vmatprep.subr.bf16.mxu0 %v6502_v39  ;;  %6511 = vmatpush3.bf16.msra.mxu1 %v7293_v10 }
 0x4b7   : > { %6512 = vmatprep.subr.bf16.mxu1 %v7135_v9 }
 0x4b9   : > { %6505 = vmatpush3.bf16.msra.mxu0 %v6502_v39 }
 0x4ba   : > { %5402 = vmatprep.subr.mxu0 %v2050_v45  ;;  %6514 = vmatpush3.bf16.msra.mxu1 %v7310_v14 }
 0x4bb   : > { %6515 = vmatprep.subr.bf16.mxu1 %v7135_v9 }
 0x4bd   : > { %5403 = vmatpush3.msra.mxu0 %v2050_v45 }
 0x4be   : > { %5405 = vmatmul.mubr.msk.f32.vlgmr.msra.gmra.mrb[16].mxu0 %vm254_vm0, %v7383_v40  ;;  %6517 = vmatpush3.bf16.msra.mxu1 %v7324_v17  ;;  %v7933_v40 = vld [vmem:[%s7243_s10 + $0x40] sm:$0xff]  ;;  %s3810_s10 = scalar_lea.sflag [#allocation3], %s175_s5 }
 0x4bf   : > { %5407 = vmatprep.mubr.msk.f32.mxu0 %vm254_vm0, %v7388_v41  ;;  %6518 = vmatprep.subr.bf16.mxu1 %v7135_v9 }
 0x4c0   : > { %6554 = vmatprep.subr.bf16.mxu0 %v7135_v9  ;;  %2938 = vrot.lane.b32.xlu0 %v7933_v40, %s7133_s11 }
 0x4c1   : > { %6556 = vmatpush3.bf16.msra.mxu0 %v7286_v7  ;;  %2941 = vrot.lane.b32.xlu1 %v7933_v40, %s7134_s20 }
 0x4c2   : > { %5408 = vmatmul.mubr.msk.f32.gmra.mrb[18].mxu0 %vm254_vm0, %v7398_v42  ;;  %6520 = vmatpush3.bf16.msra.mxu1 %v7338_v20 }
 0x4c3   : > { %6521 = vmatprep.subr.bf16.mxu1 %v7135_v9  ;;  %6557 = vmatprep.subr.bf16.mxu0 %v7135_v9 }
 0x4c4   : > { %5512 = vmatprep.mubr.msk.f32.mxu0 %vm7136_vm1, %v7137_v43  ;;  %3365 = vrot.lane.b32.xlu0 %v7816_v59, %s7133_s11 }
 0x4c5   : > { %6559 = vmatpush3.bf16.msra.mxu0 %v7293_v10  ;;  %3368 = vrot.lane.b32.xlu1 %v7816_v59, %s7134_s20 }
 0x4c6   : > { %6523 = vmatpush3.bf16.msra.mxu1 %v7352_v23  ;;  %6560 = vmatprep.subr.bf16.mxu0 %v7135_v9 }
 0x4c7   : > { %6524 = vmatprep.subr.bf16.mxu1 %v7135_v9 }
 0x4c8   : > { %3373 = vrot.lane.b32.xlu0 %v7933_v40, %s7133_s11 }
 0x4c9   : > { %6562 = vmatpush3.bf16.msra.mxu0 %v7310_v14  ;;  %3376 = vrot.lane.b32.xlu1 %v7933_v40, %s7134_s20 }
 0x4ca   : > { %6526 = vmatpush3.bf16.msra.mxu1 %v7362_v26  ;;  %6563 = vmatprep.subr.bf16.mxu0 %v7135_v9 }
 0x4cb   : > { %6527 = vmatprep.subr.bf16.mxu1 %v7135_v9 }
 0x4cc   : > { %3384 = vrot.lane.b32.xlu0 %v8060_v0, %s7133_s11 }
 0x4cd   : > { %6565 = vmatpush3.bf16.msra.mxu0 %v7324_v17  ;;  %3387 = vrot.lane.b32.xlu1 %v8060_v0, %s7134_s20 }
 0x4ce   : > { %6529 = vmatpush3.bf16.msra.mxu1 %v7372_v29  ;;  %6566 = vmatprep.subr.bf16.mxu0 %v7135_v9 }
 0x4cf   : > { %6530 = vmatprep.subr.bf16.mxu1 %v7135_v9 }
 0x4d1   : > { %6568 = vmatpush3.bf16.msra.mxu0 %v7338_v20 }
 0x4d2   : > { %6569 = vmatprep.subr.bf16.mxu0 %v7135_v9 }
 0x4d5   : > { %6571 = vmatpush3.bf16.msra.mxu0 %v7352_v23 }
 0x4d6   : > { %6572 = vmatprep.subr.bf16.mxu0 %v7135_v9 }
 0x4d9   : > { %6574 = vmatpush3.bf16.msra.mxu0 %v7362_v26 }
 0x4da   : > { %6575 = vmatprep.subr.bf16.mxu0 %v7135_v9 }
 0x4dd   : > { %6577 = vmatpush3.bf16.msra.mxu0 %v7372_v29 }
 0x4de   : > { %6578 = vmatprep.subr.bf16.mxu0 %v7135_v9 }
 0x57f   : > { %v1827_v41 = vpop.f32.mrb[14].mxu0 }
 0x580   : > { %v1978_v42 = vrot.slane %v1827_v41, %v7600_v37  ;;  %v5315_v46 = vpop.f32.mrb[15].mxu0 }
 0x582   : > { %v1979_v48 = vcombine.high %v1978_v42, %v1978_v42  ;;  %v1986_v49 = vrot.slane %v1978_v42, %v7600_v37 }
 0x584   : > { %v1993_v50 = vrot.slane %v1979_v48, %v7600_v37  ;;  %1996 = vst.msk [vmem:[%s7607_s7 + $0x6] sm:$0x1] %vm657_vm2, %v1986_v49  ;;  %v1967_v51 = vpop.f32.mrb[14].mxu1 }
 0x585   : > { %v2005_v53 = vrot.slane %v1967_v51, %v7600_v37  ;;  %v5385_v54 = vpop.f32.mrb[15].mxu1  ;;  %v2923_v51 = vpop.permute.xlu1 %2922 }
 0x586   : > { %1997 = vst.msk [vmem:[%s7607_s7 + $0x16] sm:$0x1] %vm657_vm2, %v1993_v50  ;;  %v2920_v50 = vpop.permute.xlu0 %2919 }
 0x587   : > { %v2006_v55 = vcombine.high %v2005_v53, %v2005_v53  ;;  %v2013_v13 = vrot.slane %v2005_v53, %v7600_v37  ;;  %v6714_v53 = vpack.c.bf16 %v2920_v50, %v7704_v22 }
 0x589   : > { %v2020_v56 = vrot.slane %v2006_v55, %v7600_v37  ;;  %2023 = vst.msk [vmem:[%s7607_s7 + $0x7] sm:$0x1] %vm657_vm2, %v2013_v13  ;;  %v6718_v55 = vpack.c.bf16 %v7816_v59, %v2923_v51  ;;  %v2931_v13 = vpop.permute.xlu1 %2930 }
 0x58a   : > { %v2928_v54 = vpop.permute.xlu0 %2927 }
 0x58b   : > { %2024 = vst.msk [vmem:[%s7607_s7 + $0x17] sm:$0x1] %vm657_vm2, %v2020_v56  ;;  %v6722_v22 = vpack.c.bf16 %v2931_v13, %v2928_v54 }
 0x58e   : > { %v2939_v56 = vpop.permute.xlu0 %2938 }
 0x591   : > { %v5406_v58 = vpop.f32.mrb[16].mxu0 }
 0x592   : > { %v2118_v3 = vpop.f32.mrb[17].mxu0  ;;  %5443 = vmatmul.mubr.f32.vlgmr.msra.gmra.mrb[16].mxu1 %v5406_v58  ;;  %v6726_v58 = vpack.c.bf16 %v2939_v56, %v7933_v40 }
 0x593   : > { %6532 = vmatpush3.bf16.msra.mxu1 %v7443_v47  ;;  %5477 = vmatprep.mubr.msk.f32.mxu1 %vm7136_vm1, %v7137_v43 }
 0x594   : > { %6533 = vmatprep.subr.bf16.mxu1 %v7135_v9 }
 0x595   : > { %v5409_v61 = vpop.f32.mrb[18].mxu0 }
 0x596   : > { %5513 = vmatmul.mubr.f32.vlgmr.msra.gmra.mrb[20].mxu0 %v5409_v61  ;;  %v2128_v62 = vpop.f32.mrb[19].mxu0 }
 0x597   : > { %6535 = vmatpush3.bf16.msra.mxu1 %v7452_v52  ;;  %6580 = vmatpush3.bf16.msra.mxu0 %v7443_v47 }
 0x598   : > { %6536 = vmatprep.subr.bf16.mxu1 %v7135_v9  ;;  %6581 = vmatprep.subr.bf16.mxu0 %v7135_v9 }
 0x599   : > { %5547 = vmatprep.mubr.msk.f32.mxu0 %vm7136_vm1, %v7137_v43 }
 0x59b   : > { %6538 = vmatpush3.bf16.msra.mxu1 %v7464_v57  ;;  %6583 = vmatpush3.bf16.msra.mxu0 %v7452_v52 }
 0x59c   : > { %6539 = vmatprep.subr.bf16.mxu1 %v7135_v9  ;;  %6584 = vmatprep.subr.bf16.mxu0 %v7135_v9 }
 0x59f   : > { %6541 = vmatpush3.bf16.msra.mxu1 %v7478_v60  ;;  %6586 = vmatpush3.bf16.msra.mxu0 %v7464_v57 }
 0x5a0   : > { %6542 = vmatprep.subr.bf16.mxu1 %v7135_v9  ;;  %6587 = vmatprep.subr.bf16.mxu0 %v7135_v9 }
 0x5a3   : > { %6544 = vmatpush3.bf16.msra.mxu1 %v7490_v63  ;;  %6589 = vmatpush3.bf16.msra.mxu0 %v7478_v60 }
 0x5a4   : > { %6545 = vmatprep.subr.bf16.mxu1 %v7135_v9  ;;  %6590 = vmatprep.subr.bf16.mxu0 %v7135_v9 }
 0x5a7   : > { %6547 = vmatpush3.bf16.msra.mxu1 %v7502_v5  ;;  %6592 = vmatpush3.bf16.msra.mxu0 %v7490_v63 }
 0x5a8   : > { %6548 = vmatprep.subr.bf16.mxu1 %v7135_v9  ;;  %6593 = vmatprep.subr.bf16.mxu0 %v7135_v9 }
 0x5ab   : > { %6550 = vmatpush3.bf16.msra.mxu1 %v7514_v11  ;;  %6595 = vmatpush3.bf16.msra.mxu0 %v7502_v5 }
 0x5ac   : > { %6551 = vmatprep.subr.bf16.mxu1 %v7135_v9  ;;  %6596 = vmatprep.subr.bf16.mxu0 %v7135_v9 }
 0x5af   : > { %6553 = vmatpush3.bf16.msra.mxu1 %v7526_v18  ;;  %6598 = vmatpush3.bf16.msra.mxu0 %v7514_v11 }
 0x5b0   : > { %6603 = vmatprep.subr.bf16.mxu1 %v6602_v6  ;;  %6599 = vmatprep.subr.bf16.mxu0 %v7135_v9 }
 0x5b2   : > { %5478 = vmatmul.mubr.f32.vlgmr.msra.gmra.mrb[16].mxu1 %v2118_v3  ;;  %v2942_v3 = vpop.permute.xlu1 %2941 }
 0x5b3   : > { %6605 = vmatpush3.bf16.msra.mxu1 %v6602_v6  ;;  %5568 = vmatprep.mubr.msk.f32.mxu1 %vm254_vm0, %v7882_v36 }
 0x5b4   : > { %6607 = vmatprep.subr.bf16.mxu1 %v6606_v12  ;;  %6601 = vmatpush3.bf16.msra.mxu0 %v7526_v18 }
 0x5b5   : > { %6618 = vmatprep.subr.bf16.mxu0 %v7135_v9 }
 0x5b7   : > { %6609 = vmatpush3.bf16.msra.mxu1 %v6606_v12  ;;  %5548 = vmatmul.mubr.f32.vlgmr.msra.gmra.mrb[20].mxu0 %v2128_v62 }
 0x5b8   : > { %6611 = vmatprep.subr.bf16.mxu1 %v6610_v31  ;;  %6620 = vmatpush3.bf16.msra.mxu0 %v7286_v7 }
 0x5b9   : > { %6621 = vmatprep.subr.bf16.mxu0 %v7135_v9  ;;  %5606 = vmatprep.mubr.msk.f32.mxu0 %vm7136_vm1, %v7137_v43 }
 0x5bb   : > { %6613 = vmatpush3.bf16.msra.mxu1 %v6610_v31 }
 0x5bc   : > { %6615 = vmatprep.subr.bf16.mxu1 %v6614_v16  ;;  %6623 = vmatpush3.bf16.msra.mxu0 %v7293_v10 }
 0x5bd   : > { %6624 = vmatprep.subr.bf16.mxu0 %v7135_v9 }
 0x5bf   : > { %6617 = vmatpush3.bf16.msra.mxu1 %v6614_v16 }
 0x5c0   : > { %5566 = vmatprep.subr.mxu1 %v2496_v19  ;;  %6626 = vmatpush3.bf16.msra.mxu0 %v7310_v14 }
 0x5c1   : > { %6627 = vmatprep.subr.bf16.mxu0 %v7135_v9 }
 0x5c3   : > { %5567 = vmatpush3.msra.mxu1 %v2496_v19 }
 0x5c4   : > { %5569 = vmatmul.mubr.msk.f32.vlgmr.msra.gmra.mrb[18].mxu1 %vm254_vm0, %v8012_v21  ;;  %6629 = vmatpush3.bf16.msra.mxu0 %v7324_v17 }
 0x5c5   : > { %5571 = vmatprep.mubr.msk.f32.mxu1 %vm254_vm0, %v8020_v24  ;;  %6630 = vmatprep.subr.bf16.mxu0 %v7135_v9 }
 0x5c6   : > { %6666 = vmatprep.subr.bf16.mxu1 %v7135_v9 }
 0x5c7   : > { %6668 = vmatpush3.bf16.msra.mxu1 %v7286_v7 }
 0x5c8   : > { %5572 = vmatmul.mubr.msk.f32.gmra.mrb[20].mxu1 %vm254_vm0, %v8030_v25  ;;  %6632 = vmatpush3.bf16.msra.mxu0 %v7338_v20 }
 0x5c9   : > { %6633 = vmatprep.subr.bf16.mxu0 %v7135_v9  ;;  %6669 = vmatprep.subr.bf16.mxu1 %v7135_v9 }
 0x5ca   : > { %5676 = vmatprep.mubr.msk.f32.mxu1 %vm7136_vm1, %v7137_v43 }
 0x5cb   : > { %6671 = vmatpush3.bf16.msra.mxu1 %v7293_v10 }
 0x5cc   : > { %6635 = vmatpush3.bf16.msra.mxu0 %v7352_v23  ;;  %6672 = vmatprep.subr.bf16.mxu1 %v7135_v9 }
 0x5cd   : > { %6636 = vmatprep.subr.bf16.mxu0 %v7135_v9 }
 0x5cf   : > { %6674 = vmatpush3.bf16.msra.mxu1 %v7310_v14 }
 0x5d0   : > { %6638 = vmatpush3.bf16.msra.mxu0 %v7362_v26  ;;  %6675 = vmatprep.subr.bf16.mxu1 %v7135_v9 }
 0x5d1   : > { %6639 = vmatprep.subr.bf16.mxu0 %v7135_v9 }
 0x5d3   : > { %6677 = vmatpush3.bf16.msra.mxu1 %v7324_v17 }
 0x5d4   : > { %6641 = vmatpush3.bf16.msra.mxu0 %v7372_v29  ;;  %6678 = vmatprep.subr.bf16.mxu1 %v7135_v9 }
 0x5d5   : > { %6642 = vmatprep.subr.bf16.mxu0 %v7135_v9 }
 0x5d7   : > { %6680 = vmatpush3.bf16.msra.mxu1 %v7338_v20 }
 0x5d8   : > { %6681 = vmatprep.subr.bf16.mxu1 %v7135_v9 }
 0x5db   : > { %6683 = vmatpush3.bf16.msra.mxu1 %v7352_v23 }
 0x5dc   : > { %6684 = vmatprep.subr.bf16.mxu1 %v7135_v9 }
 0x5df   : > { %6686 = vmatpush3.bf16.msra.mxu1 %v7362_v26 }
 0x5e0   : > { %6687 = vmatprep.subr.bf16.mxu1 %v7135_v9 }
 0x5e3   : > { %6689 = vmatpush3.bf16.msra.mxu1 %v7372_v29 }
 0x5e4   : > { %6690 = vmatprep.subr.bf16.mxu1 %v7135_v9 }
 0x685   : > { %v2273_v27 = vpop.f32.mrb[16].mxu1 }
 0x686   : > { %v2424_v28 = vrot.slane %v2273_v27, %v7600_v37  ;;  %v5479_v30 = vpop.f32.mrb[17].mxu1 }
 0x688   : > { %v2425_v32 = vcombine.high %v2424_v28, %v2424_v28  ;;  %v2432_v33 = vrot.slane %v2424_v28, %v7600_v37 }
 0x68a   : > { %v2439_v34 = vrot.slane %v2425_v32, %v7600_v37  ;;  %2442 = vst.msk [vmem:[%s7607_s7 + $0x8] sm:$0x1] %vm657_vm2, %v2432_v33  ;;  %v2413_v35 = vpop.f32.mrb[20].mxu0  ;;  %v3366_v33 = vpop.permute.xlu0 %3365 }
 0x68b   : > { %v2451_v44 = vrot.slane %v2413_v35, %v7600_v37  ;;  %v5549_v38 = vpop.f32.mrb[21].mxu0  ;;  %v6826_v35 = vpack.c.bf16 %v3366_v33, %v7816_v59 }
 0x68c   : > { %2443 = vst.msk [vmem:[%s7607_s7 + $0x18] sm:$0x1] %vm657_vm2, %v2439_v34  ;;  %v3369_v34 = vpop.permute.xlu1 %3368 }
 0x68d   : > { %v2452_v39 = vcombine.high %v2451_v44, %v2451_v44  ;;  %v2459_v45 = vrot.slane %v2451_v44, %v7600_v37  ;;  %v6830_v38 = vpack.c.bf16 %v7933_v40, %v3369_v34 }
 0x68e   : > { %v3374_v44 = vpop.permute.xlu0 %3373 }
 0x68f   : > { %v2466_v41 = vrot.slane %v2452_v39, %v7600_v37  ;;  %2469 = vst.msk [vmem:[%s7607_s7 + $0x9] sm:$0x1] %vm657_vm2, %v2459_v45 }
 0x690   : > { %v3377_v39 = vpop.permute.xlu1 %3376 }
 0x691   : > { %2470 = vst.msk [vmem:[%s7607_s7 + $0x19] sm:$0x1] %vm657_vm2, %v2466_v41  ;;  %v6834_v59 = vpack.c.bf16 %v3377_v39, %v3374_v44 }
 0x692   : > { %v3385_v45 = vpop.permute.xlu0 %3384 }
 0x693   : > { %v6838_v40 = vpack.c.bf16 %v3385_v45, %v8060_v0 }
 0x697   : > { %v5570_v42 = vpop.f32.mrb[18].mxu1 }
 0x698   : > { %v2564_v46 = vpop.f32.mrb[19].mxu1  ;;  %5607 = vmatmul.mubr.f32.vlgmr.msra.gmra.mrb[22].mxu0 %v5570_v42 }
 0x699   : > { %6644 = vmatpush3.bf16.msra.mxu0 %v7443_v47  ;;  %5641 = vmatprep.mubr.msk.f32.mxu0 %vm7136_vm1, %v7137_v43 }
 0x69a   : > { %6645 = vmatprep.subr.bf16.mxu0 %v7135_v9 }
 0x69b   : > { %v5573_v48 = vpop.f32.mrb[20].mxu1 }
 0x69c   : > { %5677 = vmatmul.mubr.f32.vlgmr.msra.gmra.mrb[22].mxu1 %v5573_v48  ;;  %v2574_v49 = vpop.f32.mrb[21].mxu1 }
 0x69d   : > { %6647 = vmatpush3.bf16.msra.mxu0 %v7452_v52  ;;  %6692 = vmatpush3.bf16.msra.mxu1 %v7443_v47 }
 0x69e   : > { %6648 = vmatprep.subr.bf16.mxu0 %v7135_v9  ;;  %6693 = vmatprep.subr.bf16.mxu1 %v7135_v9 }
 0x69f   : > { %5711 = vmatprep.mubr.msk.f32.mxu1 %vm7136_vm1, %v7137_v43 }
 0x6a1   : > { %6650 = vmatpush3.bf16.msra.mxu0 %v7464_v57  ;;  %6695 = vmatpush3.bf16.msra.mxu1 %v7452_v52 }
 0x6a2   : > { %6651 = vmatprep.subr.bf16.mxu0 %v7135_v9  ;;  %6696 = vmatprep.subr.bf16.mxu1 %v7135_v9 }
 0x6a5   : > { %6653 = vmatpush3.bf16.msra.mxu0 %v7478_v60  ;;  %6698 = vmatpush3.bf16.msra.mxu1 %v7464_v57 }
 0x6a6   : > { %6654 = vmatprep.subr.bf16.mxu0 %v7135_v9  ;;  %6699 = vmatprep.subr.bf16.mxu1 %v7135_v9 }
 0x6a9   : > { %6656 = vmatpush3.bf16.msra.mxu0 %v7490_v63  ;;  %6701 = vmatpush3.bf16.msra.mxu1 %v7478_v60 }
 0x6aa   : > { %6657 = vmatprep.subr.bf16.mxu0 %v7135_v9  ;;  %6702 = vmatprep.subr.bf16.mxu1 %v7135_v9 }
 0x6ad   : > { %6659 = vmatpush3.bf16.msra.mxu0 %v7502_v5  ;;  %6704 = vmatpush3.bf16.msra.mxu1 %v7490_v63 }
 0x6ae   : > { %6660 = vmatprep.subr.bf16.mxu0 %v7135_v9  ;;  %6705 = vmatprep.subr.bf16.mxu1 %v7135_v9 }
 0x6b1   : > { %6662 = vmatpush3.bf16.msra.mxu0 %v7514_v11  ;;  %6707 = vmatpush3.bf16.msra.mxu1 %v7502_v5 }
 0x6b2   : > { %6663 = vmatprep.subr.bf16.mxu0 %v7135_v9  ;;  %6708 = vmatprep.subr.bf16.mxu1 %v7135_v9 }
 0x6b5   : > { %6665 = vmatpush3.bf16.msra.mxu0 %v7526_v18  ;;  %6710 = vmatpush3.bf16.msra.mxu1 %v7514_v11 }
 0x6b6   : > { %6715 = vmatprep.subr.bf16.mxu0 %v6714_v53  ;;  %6711 = vmatprep.subr.bf16.mxu1 %v7135_v9 }
 0x6b8   : > { %5642 = vmatmul.mubr.f32.vlgmr.msra.gmra.mrb[22].mxu0 %v2564_v46 }
 0x6b9   : > { %6717 = vmatpush3.bf16.msra.mxu0 %v6714_v53  ;;  %5732 = vmatprep.mubr.msk.f32.mxu0 %vm254_vm0, %v7882_v36 }
 0x6ba   : > { %6719 = vmatprep.subr.bf16.mxu0 %v6718_v55  ;;  %6713 = vmatpush3.bf16.msra.mxu1 %v7526_v18 }
 0x6bb   : > { %6730 = vmatprep.subr.bf16.mxu1 %v7135_v9 }
 0x6bd   : > { %6721 = vmatpush3.bf16.msra.mxu0 %v6718_v55  ;;  %5712 = vmatmul.mubr.f32.vlgmr.msra.gmra.mrb[22].mxu1 %v2574_v49 }
 0x6be   : > { %6723 = vmatprep.subr.bf16.mxu0 %v6722_v22  ;;  %6732 = vmatpush3.bf16.msra.mxu1 %v7286_v7 }
 0x6bf   : > { %6733 = vmatprep.subr.bf16.mxu1 %v7135_v9  ;;  %5770 = vmatprep.mubr.msk.f32.mxu1 %vm7136_vm1, %v7137_v43 }
 0x6c1   : > { %6725 = vmatpush3.bf16.msra.mxu0 %v6722_v22 }
 0x6c2   : > { %6727 = vmatprep.subr.bf16.mxu0 %v6726_v58  ;;  %6735 = vmatpush3.bf16.msra.mxu1 %v7293_v10 }
 0x6c3   : > { %6736 = vmatprep.subr.bf16.mxu1 %v7135_v9 }
 0x6c5   : > { %6729 = vmatpush3.bf16.msra.mxu0 %v6726_v58 }
 0x6c6   : > { %5730 = vmatprep.subr.mxu0 %v2942_v3  ;;  %6738 = vmatpush3.bf16.msra.mxu1 %v7310_v14 }
 0x6c7   : > { %6739 = vmatprep.subr.bf16.mxu1 %v7135_v9 }
 0x6c9   : > { %5731 = vmatpush3.msra.mxu0 %v2942_v3 }
 0x6ca   : > { %5733 = vmatmul.mubr.msk.f32.vlgmr.msra.gmra.mrb[24].mxu0 %vm254_vm0, %v8012_v21  ;;  %6741 = vmatpush3.bf16.msra.mxu1 %v7324_v17 }
 0x6cb   : > { %5735 = vmatprep.mubr.msk.f32.mxu0 %vm254_vm0, %v8020_v24  ;;  %6742 = vmatprep.subr.bf16.mxu1 %v7135_v9 }
 0x6cc   : > { %6778 = vmatprep.subr.bf16.mxu0 %v7135_v9 }
 0x6cd   : > { %6780 = vmatpush3.bf16.msra.mxu0 %v7286_v7 }
 0x6ce   : > { %5736 = vmatmul.mubr.msk.f32.gmra.mrb[26].mxu0 %vm254_vm0, %v8030_v25  ;;  %6744 = vmatpush3.bf16.msra.mxu1 %v7338_v20 }
 0x6cf   : > { %6745 = vmatprep.subr.bf16.mxu1 %v7135_v9  ;;  %6781 = vmatprep.subr.bf16.mxu0 %v7135_v9 }
 0x6d0   : > { %5840 = vmatprep.mubr.msk.f32.mxu0 %vm7136_vm1, %v7137_v43 }
 0x6d1   : > { %6783 = vmatpush3.bf16.msra.mxu0 %v7293_v10 }
 0x6d2   : > { %6747 = vmatpush3.bf16.msra.mxu1 %v7352_v23  ;;  %6784 = vmatprep.subr.bf16.mxu0 %v7135_v9 }
 0x6d3   : > { %6748 = vmatprep.subr.bf16.mxu1 %v7135_v9 }
 0x6d5   : > { %6786 = vmatpush3.bf16.msra.mxu0 %v7310_v14 }
 0x6d6   : > { %6750 = vmatpush3.bf16.msra.mxu1 %v7362_v26  ;;  %6787 = vmatprep.subr.bf16.mxu0 %v7135_v9 }
 0x6d7   : > { %6751 = vmatprep.subr.bf16.mxu1 %v7135_v9 }
 0x6d9   : > { %6789 = vmatpush3.bf16.msra.mxu0 %v7324_v17 }
 0x6da   : > { %6753 = vmatpush3.bf16.msra.mxu1 %v7372_v29  ;;  %6790 = vmatprep.subr.bf16.mxu0 %v7135_v9 }
 0x6db   : > { %6754 = vmatprep.subr.bf16.mxu1 %v7135_v9 }
 0x6dd   : > { %6792 = vmatpush3.bf16.msra.mxu0 %v7338_v20 }
 0x6de   : > { %6793 = vmatprep.subr.bf16.mxu0 %v7135_v9 }
 0x6e1   : > { %6795 = vmatpush3.bf16.msra.mxu0 %v7352_v23 }
 0x6e2   : > { %6796 = vmatprep.subr.bf16.mxu0 %v7135_v9 }
 0x6e5   : > { %6798 = vmatpush3.bf16.msra.mxu0 %v7362_v26 }
 0x6e6   : > { %6799 = vmatprep.subr.bf16.mxu0 %v7135_v9 }
 0x6e9   : > { %6801 = vmatpush3.bf16.msra.mxu0 %v7372_v29 }
 0x6ea   : > { %6802 = vmatprep.subr.bf16.mxu0 %v7135_v9 }
 0x78b   : > { %v2719_v61 = vpop.f32.mrb[22].mxu0 }
 0x78c   : > { %v2870_v62 = vrot.slane %v2719_v61, %v7600_v37  ;;  %v5643_v1 = vpop.f32.mrb[23].mxu0 }
 0x78e   : > { %v2871_v4 = vcombine.high %v2870_v62, %v2870_v62  ;;  %v2878_v6 = vrot.slane %v2870_v62, %v7600_v37 }
 0x790   : > { %v2885_v8 = vrot.slane %v2871_v4, %v7600_v37  ;;  %2888 = vst.msk [vmem:[%s7607_s7 + $0xa] sm:$0x1] %vm657_vm2, %v2878_v6  ;;  %v2859_v12 = vpop.f32.mrb[22].mxu1 }
 0x791   : > { %v2897_v15 = vrot.slane %v2859_v12, %v7600_v37  ;;  %v5713_v31 = vpop.f32.mrb[23].mxu1 }
 0x792   : > { %2889 = vst.msk [vmem:[%s7607_s7 + $0x1a] sm:$0x1] %vm657_vm2, %v2885_v8 }
 0x793   : > { %v2898_v2 = vcombine.high %v2897_v15, %v2897_v15  ;;  %v2905_v16 = vrot.slane %v2897_v15, %v7600_v37 }
 0x795   : > { %v2912_v19 = vrot.slane %v2898_v2, %v7600_v37  ;;  %2915 = vst.msk [vmem:[%s7607_s7 + $0xb] sm:$0x1] %vm657_vm2, %v2905_v16 }
 0x797   : > { %2916 = vst.msk [vmem:[%s7607_s7 + $0x1b] sm:$0x1] %vm657_vm2, %v2912_v19 }
 0x79d   : > { %v5734_v27 = vpop.f32.mrb[24].mxu0 }
 0x79e   : > { %v3010_v28 = vpop.f32.mrb[25].mxu0  ;;  %5771 = vmatmul.mubr.f32.vlgmr.msra.gmra.mrb[24].mxu1 %v5734_v27 }
 0x79f   : > { %6756 = vmatpush3.bf16.msra.mxu1 %v7443_v47  ;;  %5805 = vmatprep.mubr.msk.f32.mxu1 %vm7136_vm1, %v7137_v43 }
 0x7a0   : > { %6757 = vmatprep.subr.bf16.mxu1 %v7135_v9 }
 0x7a1   : > { %v5737_v30 = vpop.f32.mrb[26].mxu0 }
 0x7a2   : > { %5841 = vmatmul.mubr.f32.vlgmr.msra.gmra.mrb[28].mxu0 %v5737_v30  ;;  %v3020_v32 = vpop.f32.mrb[27].mxu0 }
 0x7a3   : > { %6759 = vmatpush3.bf16.msra.mxu1 %v7452_v52  ;;  %6804 = vmatpush3.bf16.msra.mxu0 %v7443_v47 }
 0x7a4   : > { %6760 = vmatprep.subr.bf16.mxu1 %v7135_v9  ;;  %6805 = vmatprep.subr.bf16.mxu0 %v7135_v9 }
 0x7a5   : > { %5875 = vmatprep.mubr.msk.f32.mxu0 %vm7136_vm1, %v7137_v43 }
 0x7a7   : > { %6762 = vmatpush3.bf16.msra.mxu1 %v7464_v57  ;;  %6807 = vmatpush3.bf16.msra.mxu0 %v7452_v52 }
 0x7a8   : > { %6763 = vmatprep.subr.bf16.mxu1 %v7135_v9  ;;  %6808 = vmatprep.subr.bf16.mxu0 %v7135_v9 }
 0x7ab   : > { %6765 = vmatpush3.bf16.msra.mxu1 %v7478_v60  ;;  %6810 = vmatpush3.bf16.msra.mxu0 %v7464_v57 }
 0x7ac   : > { %6766 = vmatprep.subr.bf16.mxu1 %v7135_v9  ;;  %6811 = vmatprep.subr.bf16.mxu0 %v7135_v9 }
 0x7af   : > { %6768 = vmatpush3.bf16.msra.mxu1 %v7490_v63  ;;  %6813 = vmatpush3.bf16.msra.mxu0 %v7478_v60 }
 0x7b0   : > { %6769 = vmatprep.subr.bf16.mxu1 %v7135_v9  ;;  %6814 = vmatprep.subr.bf16.mxu0 %v7135_v9 }
 0x7b3   : > { %6771 = vmatpush3.bf16.msra.mxu1 %v7502_v5  ;;  %6816 = vmatpush3.bf16.msra.mxu0 %v7490_v63 }
 0x7b4   : > { %6772 = vmatprep.subr.bf16.mxu1 %v7135_v9  ;;  %6817 = vmatprep.subr.bf16.mxu0 %v7135_v9 }
 0x7b7   : > { %6774 = vmatpush3.bf16.msra.mxu1 %v7514_v11  ;;  %6819 = vmatpush3.bf16.msra.mxu0 %v7502_v5 }
 0x7b8   : > { %6775 = vmatprep.subr.bf16.mxu1 %v7135_v9  ;;  %6820 = vmatprep.subr.bf16.mxu0 %v7135_v9 }
 0x7bb   : > { %6777 = vmatpush3.bf16.msra.mxu1 %v7526_v18  ;;  %6822 = vmatpush3.bf16.msra.mxu0 %v7514_v11 }
 0x7bc   : > { %6827 = vmatprep.subr.bf16.mxu1 %v6826_v35  ;;  %6823 = vmatprep.subr.bf16.mxu0 %v7135_v9 }
 0x7be   : > { %5806 = vmatmul.mubr.f32.vlgmr.msra.gmra.mrb[24].mxu1 %v3010_v28 }
 0x7bf   : > { %6829 = vmatpush3.bf16.msra.mxu1 %v6826_v35  ;;  %5896 = vmatprep.mubr.msk.f32.mxu1 %vm254_vm0, %v7882_v36  ;;  %v3388_v36 = vpop.permute.xlu1 %3387 }
 0x7c0   : > { %6831 = vmatprep.subr.bf16.mxu1 %v6830_v38  ;;  %6825 = vmatpush3.bf16.msra.mxu0 %v7526_v18 }
 0x7c1   : > { %6842 = vmatprep.subr.bf16.mxu0 %v7135_v9 }
 0x7c3   : > { %6833 = vmatpush3.bf16.msra.mxu1 %v6830_v38  ;;  %5876 = vmatmul.mubr.f32.vlgmr.msra.gmra.mrb[28].mxu0 %v3020_v32 }
 0x7c4   : > { %6835 = vmatprep.subr.bf16.mxu1 %v6834_v59  ;;  %6844 = vmatpush3.bf16.msra.mxu0 %v7286_v7 }
 0x7c5   : > { %6845 = vmatprep.subr.bf16.mxu0 %v7135_v9  ;;  %5934 = vmatprep.mubr.msk.f32.mxu0 %vm7136_vm1, %v7137_v43 }
 0x7c7   : > { %6837 = vmatpush3.bf16.msra.mxu1 %v6834_v59 }
 0x7c8   : > { %6839 = vmatprep.subr.bf16.mxu1 %v6838_v40  ;;  %6847 = vmatpush3.bf16.msra.mxu0 %v7293_v10 }
 0x7c9   : > { %6848 = vmatprep.subr.bf16.mxu0 %v7135_v9 }
 0x7cb   : > { %6841 = vmatpush3.bf16.msra.mxu1 %v6838_v40 }
 0x7cc   : > { %5894 = vmatprep.subr.mxu1 %v3388_v36  ;;  %6850 = vmatpush3.bf16.msra.mxu0 %v7310_v14 }
 0x7cd   : > { %6851 = vmatprep.subr.bf16.mxu0 %v7135_v9 }
 0x7cf   : > { %5895 = vmatpush3.msra.mxu1 %v3388_v36 }
 0x7d0   : > { %5897 = vmatmul.mubr.msk.f32.vlgmr.msra.gmra.mrb[26].mxu1 %vm254_vm0, %v8012_v21  ;;  %6890 = vmatprep.subr.bf16.mxu1 %v7135_v9 }
 0x7d1   : > { %5899 = vmatprep.mubr.msk.f32.mxu1 %vm254_vm0, %v8020_v24  ;;  %6892 = vmatpush3.bf16.msra.mxu1 %v7286_v7 }
 0x7d2   : > { %6893 = vmatprep.subr.bf16.mxu1 %v7135_v9  ;;  %6853 = vmatpush3.bf16.msra.mxu0 %v7324_v17 }
 0x7d3   : > { %6854 = vmatprep.subr.bf16.mxu0 %v7135_v9 }
 0x7d4   : > { %5900 = vmatmul.mubr.msk.f32.gmra.mrb[28].mxu1 %vm254_vm0, %v8030_v25 }
 0x7d5   : > { %6895 = vmatpush3.bf16.msra.mxu1 %v7293_v10  ;;  %6004 = vmatprep.mubr.msk.f32.mxu1 %vm7136_vm1, %v7137_v43 }
 0x7d6   : > { %6896 = vmatprep.subr.bf16.mxu1 %v7135_v9  ;;  %6856 = vmatpush3.bf16.msra.mxu0 %v7338_v20 }
 0x7d7   : > { %6857 = vmatprep.subr.bf16.mxu0 %v7135_v9 }
 0x7d9   : > { %6898 = vmatpush3.bf16.msra.mxu1 %v7310_v14 }
 0x7da   : > { %6899 = vmatprep.subr.bf16.mxu1 %v7135_v9  ;;  %6859 = vmatpush3.bf16.msra.mxu0 %v7352_v23 }
 0x7db   : > { %6860 = vmatprep.subr.bf16.mxu0 %v7135_v9 }
 0x7dd   : > { %6901 = vmatpush3.bf16.msra.mxu1 %v7324_v17 }
 0x7de   : > { %6902 = vmatprep.subr.bf16.mxu1 %v7135_v9  ;;  %6862 = vmatpush3.bf16.msra.mxu0 %v7362_v26 }
 0x7df   : > { %6863 = vmatprep.subr.bf16.mxu0 %v7135_v9 }
 0x7e1   : > { %6904 = vmatpush3.bf16.msra.mxu1 %v7338_v20 }
 0x7e2   : > { %6905 = vmatprep.subr.bf16.mxu1 %v7135_v9  ;;  %6865 = vmatpush3.bf16.msra.mxu0 %v7372_v29 }
 0x7e3   : > { %6866 = vmatprep.subr.bf16.mxu0 %v7135_v9 }
 0x7e5   : > { %6907 = vmatpush3.bf16.msra.mxu1 %v7352_v23 }
 0x7e6   : > { %6908 = vmatprep.subr.bf16.mxu1 %v7135_v9 }
 0x7e9   : > { %6910 = vmatpush3.bf16.msra.mxu1 %v7362_v26 }
 0x7ea   : > { %6911 = vmatprep.subr.bf16.mxu1 %v7135_v9 }
 0x7ed   : > { %6913 = vmatpush3.bf16.msra.mxu1 %v7372_v29 }
 0x7ee   : > { %6914 = vmatprep.subr.bf16.mxu1 %v7135_v9 }
 0x891   : > { %v3165_v7 = vpop.f32.mrb[24].mxu1 }
 0x892   : > { %v3316_v10 = vrot.slane %v3165_v7, %v7600_v37  ;;  %v5807_v14 = vpop.f32.mrb[25].mxu1 }
 0x894   : > { %v3317_v17 = vcombine.high %v3316_v10, %v3316_v10  ;;  %v3324_v20 = vrot.slane %v3316_v10, %v7600_v37 }
 0x896   : > { %v3331_v23 = vrot.slane %v3317_v17, %v7600_v37  ;;  %3334 = vst.msk [vmem:[%s7607_s7 + $0xc] sm:$0x1] %vm657_vm2, %v3324_v20  ;;  %v3305_v26 = vpop.f32.mrb[28].mxu0 }
 0x897   : > { %v3343_v21 = vrot.slane %v3305_v26, %v7600_v37  ;;  %v5877_v24 = vpop.f32.mrb[29].mxu0 }
 0x898   : > { %3335 = vst.msk [vmem:[%s7607_s7 + $0x1c] sm:$0x1] %vm657_vm2, %v3331_v23 }
 0x899   : > { %v3344_v29 = vcombine.high %v3343_v21, %v3343_v21  ;;  %v3351_v25 = vrot.slane %v3343_v21, %v7600_v37 }
 0x89b   : > { %v3358_v0 = vrot.slane %v3344_v29, %v7600_v37  ;;  %3361 = vst.msk [vmem:[%s7607_s7 + $0xd] sm:$0x1] %vm657_vm2, %v3351_v25 }
 0x89d   : > { %3362 = vst.msk [vmem:[%s7607_s7 + $0x1d] sm:$0x1] %vm657_vm2, %v3358_v0 }
 0x8a3   : > { %v5898_v41 = vpop.f32.mrb[26].mxu1 }
 0x8a4   : > { %v3456_v42 = vpop.f32.mrb[27].mxu1  ;;  %5935 = vmatmul.mubr.f32.vlgmr.msra.gmra.mrb[30].mxu0 %v5898_v41 }
 0x8a5   : > { %6868 = vmatpush3.bf16.msra.mxu0 %v7443_v47  ;;  %5969 = vmatprep.mubr.msk.f32.mxu0 %vm7136_vm1, %v7137_v43 }
 0x8a6   : > { %6869 = vmatprep.subr.bf16.mxu0 %v7135_v9 }
 0x8a7   : > { %v5901_v46 = vpop.f32.mrb[28].mxu1 }
 0x8a8   : > { %v3466_v48 = vpop.f32.mrb[29].mxu1  ;;  %6005 = vmatmul.mubr.f32.vlgmr.msra.gmra.mrb[30].mxu1 %v5901_v46 }
 0x8a9   : > { %6871 = vmatpush3.bf16.msra.mxu0 %v7452_v52  ;;  %6916 = vmatpush3.bf16.msra.mxu1 %v7443_v47 }
 0x8aa   : > { %6872 = vmatprep.subr.bf16.mxu0 %v7135_v9  ;;  %6917 = vmatprep.subr.bf16.mxu1 %v7135_v9 }
 0x8ab   : > { %6039 = vmatprep.mubr.msk.f32.mxu1 %vm7136_vm1, %v7137_v43 }
 0x8ad   : > { %6874 = vmatpush3.bf16.msra.mxu0 %v7464_v57  ;;  %6919 = vmatpush3.bf16.msra.mxu1 %v7452_v52 }
 0x8ae   : > { %6875 = vmatprep.subr.bf16.mxu0 %v7135_v9  ;;  %6920 = vmatprep.subr.bf16.mxu1 %v7135_v9 }
 0x8b1   : > { %6877 = vmatpush3.bf16.msra.mxu0 %v7478_v60  ;;  %6922 = vmatpush3.bf16.msra.mxu1 %v7464_v57 }
 0x8b2   : > { %6878 = vmatprep.subr.bf16.mxu0 %v7135_v9  ;;  %6923 = vmatprep.subr.bf16.mxu1 %v7135_v9 }
 0x8b5   : > { %6880 = vmatpush3.bf16.msra.mxu0 %v7490_v63  ;;  %6925 = vmatpush3.bf16.msra.mxu1 %v7478_v60 }
 0x8b6   : > { %6881 = vmatprep.subr.bf16.mxu0 %v7135_v9  ;;  %6926 = vmatprep.subr.bf16.mxu1 %v7135_v9 }
 0x8b9   : > { %6883 = vmatpush3.bf16.msra.mxu0 %v7502_v5  ;;  %6928 = vmatpush3.bf16.msra.mxu1 %v7490_v63 }
 0x8ba   : > { %6884 = vmatprep.subr.bf16.mxu0 %v7135_v9  ;;  %6929 = vmatprep.subr.bf16.mxu1 %v7135_v9 }
 0x8bd   : > { %6886 = vmatpush3.bf16.msra.mxu0 %v7514_v11  ;;  %6931 = vmatpush3.bf16.msra.mxu1 %v7502_v5 }
 0x8be   : > { %6887 = vmatprep.subr.bf16.mxu0 %v7135_v9  ;;  %6932 = vmatprep.subr.bf16.mxu1 %v7135_v9 }
 0x8c1   : > { %6889 = vmatpush3.bf16.msra.mxu0 %v7526_v18  ;;  %6934 = vmatpush3.bf16.msra.mxu1 %v7514_v11 }
 0x8c2   : > { %6935 = vmatprep.subr.bf16.mxu1 %v7135_v9 }
 0x8c4   : > { %5970 = vmatmul.mubr.f32.vlgmr.msra.gmra.mrb[30].mxu0 %v3456_v42 }
 0x8c5   : > { %6937 = vmatpush3.bf16.msra.mxu1 %v7526_v18 }
 0x8c8   : > { %6040 = vmatmul.mubr.f32.vlgmr.msra.gmra.mrb[30].mxu1 %v3466_v48 }
 0x997   : > { %v3611_v43 = vpop.f32.mrb[30].mxu0 }
 0x998   : > { %v3762_v47 = vrot.slane %v3611_v43, %v7600_v37  ;;  %v5971_v52 = vpop.f32.mrb[31].mxu0 }
 0x99a   : > { %v3763_v57 = vcombine.high %v3762_v47, %v3762_v47  ;;  %v3770_v60 = vrot.slane %v3762_v47, %v7600_v37 }
 0x99b   : > { %v3751_v63 = vpop.f32.mrb[30].mxu1 }
 0x99c   : > { %v3777_v5 = vrot.slane %v3763_v57, %v7600_v37  ;;  %3780 = vst.msk [vmem:[%s7607_s7 + $0xe] sm:$0x1] %vm657_vm2, %v3770_v60  ;;  %v3789_v9 = vrot.slane %v3751_v63, %v7600_v37  ;;  %v6041_v11 = vpop.f32.mrb[31].mxu1 }
 0x99e   : > { %3781 = vst.msk [vmem:[%s7607_s7 + $0x1e] sm:$0x1] %vm657_vm2, %v3777_v5  ;;  %v3790_v18 = vcombine.high %v3789_v9, %v3789_v9  ;;  %v3797_v49 = vrot.slane %v3789_v9, %v7600_v37 }
 0x9a0   : > { %v3804_v50 = vrot.slane %v3790_v18, %v7600_v37  ;;  %3807 = vst.msk [vmem:[%s7607_s7 + $0xf] sm:$0x1] %vm657_vm2, %v3797_v49 }
 0x9a2   : > { %3808 = vst.msk [vmem:[%s7607_s7 + $0x1f] sm:$0x1] %vm657_vm2, %v3804_v50 }
 0x9a3   : > { %s4067_s11 = sshll.u32 %s7115_s15, 1  ;;  %s4068_s20 = sshll.u32 %s7119_s16, 3 }
 0x9a4   : > { %s3822_s6 = sadd.s32 %s4068_s20, %s4067_s11  ;;  %s3841_s8 = sshll.u32 %s7607_s7, 4  ;;  %s3842_s8 = int_to_ptr.vmem [resolvable:$true] %s3841_s8 }
 0x9a5   : > { %s4069_s9 = sshll.u32 %s3822_s6, 7  ;;  %s7139_s27 = smov 256  }
 0x9a6   : > { %s3824_s5 = scalar_lea.hbm %s8375_s3, %s4069_s9  ;;  %6971 = sst [smem:[#allocation5]] (%p7217_p3), %s7139_s27 }
 0x9a7   : > { %s7140_s28 = smov 512   ;;  %s7141_s29 = smov 2  }
 0x9a8   : > { %6972 = sst [smem:[#allocation5 + $0x1]] (%p7217_p3), %s7140_s28  ;;  %s7142_s15 = smov 128  }
 0x9a9   : > { %6973 = sst [smem:[#allocation5 + $0x2]] (%p7217_p3), %s7141_s29  ;;  %s7143_s16 = smov 8  }
 0x9aa   : > { %6974 = sst [smem:[#allocation5 + $0x3]] (%p7217_p3), %s7142_s15  ;;  %s7144_s7 = smov [#allocation4]  }
 0x9ab   : > { %6975 = sst [smem:[#allocation5 + $0x4]] (%p7217_p3), %s7142_s15  ;;  %s7145_s4 = smov 0  }
 0x9ac   : > { %6976 = sst [smem:[#allocation5 + $0x5]] (%p7217_p3), %s7143_s16 }
 0x9ad   : > { %6977 = dma.general (%p7217_p3), %s3842_s8, 512, %s3824_s5, %s3810_s10, %s7144_s7, [#allocation5], %s7145_s4, 0  }
 0x9ae PF: > { %p6983_p13 = scmp.ge.s32.totalorder %s7131_s19, 2  ;;  %s3869_s11 = sand.u32 1, %s7103_s12  }
 0x9af   : > { %s3870_s20 = scalar_lea.sflag [#allocation3], %s3869_s11 }
 0x9b0   : > { %p6980_p0 = pnand %p6983_p13, %p7226_p8 }
 0x9b2   : > { %7098 = dma.done.wait (!%p6980_p0), %s3870_s20, 512  }
 0x9b3   : > { %7100 = vsyncadd (!%p6980_p0), %s3870_s20, 4294966784  ;;  %s16_s19 = sadd.s32 1, %s7131_s19   ;;  %s8378_s12 = smov %s7107_s13 }
 0x9b4   : > { %p13_p1 = scmp.ge.s32.totalorder %s16_s19, 6   ;;  %s8379_s13 = smov %s7111_s14 }
 0x9b5   : > { %s8380_s14 = smov %s7235_s30  ;;  %s8381_s15 = smov %s7123_s17 }
 0x9b6   : > { %s8382_s16 = smov %s7127_s18  ;;  %s8383_s17 = smov %s8386_s22 }
 0x9b7   : > { %s8384_s18 = smov %s8390_s23  ;;  %15 = sbr.rel (!%p13_p1) target bundleno = 5 (0x5), region = 83 }
 0x9be   :  { %3875 = vsyncpa [#allocation3], 1 }
 0x9bf   :  { %3877 = vsyncpa [#allocation3 + $0x1], 1 }

</bundles_post_ra>
